<compile_context>
chip_gen: v7x
topology: tpu7x:2x2x1
jax: 0.10.0
libtpu: 0.0.40
codegen_flags: <defaults>
</compile_context>

<pallas_src>
import math
from functools import partial

import jax
import jax.numpy as jnp
from jax import lax
from jax.experimental import pallas as pl
from jax.experimental.pallas import tpu as pltpu


def _round_up(x, m):
    return (x + m - 1) // m * m


def _layer_norm(x, g, b, eps):
    # PyTorch BertLayerNorm: biased variance; rsqrt keeps the divide on the EUP.
    u = jnp.mean(x, axis=-1, keepdims=True)
    xc = x - u
    s = jnp.mean(xc * xc, axis=-1, keepdims=True)
    return xc * lax.rsqrt(s + eps) * g + b


# indices into the packed E-width vector bundle
_LN1_G, _LN1_B, _BQ, _BK, _BV, _BO, _LN2_G, _LN2_B, _BO2, _LN3_G, _LN3_B = range(11)
# indices into the packed C-width vector bundle
_BP, _LN4_G, _LN4_B = range(3)


def _wikikg_kernel(num_heads, batch_block, t_pad, n_pad, return_probs, mm_dtype,
                   approx_gelu,
                   # batched activations (row-flattened per grid step)
                   span_ref, wee_ref, bert_ref, mask_ref, ctx_ref,
                   # packed weights (block index constant across the grid)
                   wq_ref, wk_ref, wv_ref, wo_ref, wi_ref, wo2_ref, wp_ref,
                   vec_e_ref, bi_ref, vec_c_ref,
                   # outputs then scratch
                   out_ctx_ref, *rest):
    if return_probs:
        out_probs_ref, ctx_sc = rest
    else:
        out_probs_ref = None
        (ctx_sc,) = rest

    H, Bb, T, N = num_heads, batch_block, t_pad, n_pad
    E = wq_ref.shape[0]
    d = E // H

    vE = vec_e_ref[...]                       # (11, E) f32 LN params + biases
    vC = vec_c_ref[...]                       # (3, C)  f32
    bi = bi_ref[...]                          # (1, I)  f32

    def row(vec, i):
        return vec[i:i + 1, :]                # (1, dim), broadcasts over rows

    # ---- spans_with_entities = LN(span_repr + dropout(weighted_entity_emb)) --
    spans = span_ref[...] + wee_ref[...]                       # (Bb*N, E) f32
    spans_ln = _layer_norm(spans, row(vE, _LN1_G), row(vE, _LN1_B), 1e-5)
    spans_mm = spans_ln.astype(mm_dtype)

    # ---- Q / K / V projections as fat row-flattened MXU matmuls -------------
    # (1/sqrt(d) is already folded into wq and bq by the wrapper.)
    x = bert_ref[...]                                          # (Bb*T, E) f32
    q = jnp.dot(x.astype(mm_dtype), wq_ref[...],
                preferred_element_type=jnp.float32) + row(vE, _BQ)
    k = jnp.dot(spans_mm, wk_ref[...],
                preferred_element_type=jnp.float32) + row(vE, _BK)
    v = jnp.dot(spans_mm, wv_ref[...],
                preferred_element_type=jnp.float32) + row(vE, _BV)

    q_mm = q.astype(mm_dtype)
    k_mm = k.astype(mm_dtype)
    v_mm = v.astype(mm_dtype)

    # Hoist the per-head lane splits out of the batch loop: 3*H slices per
    # grid step instead of 3*H*Bb.
    q_h = [q_mm[:, h * d:(h + 1) * d] for h in range(H)]       # each (Bb*T, d)
    k_h = [k_mm[:, h * d:(h + 1) * d] for h in range(H)]       # each (Bb*N, d)
    v_h = [v_mm[:, h * d:(h + 1) * d] for h in range(H)]

    # ---- SpanWordAttention: per-batch scores / softmax / PV -----------------
    # Per-head contexts are written straight into a (Bb*T, E) f32 scratch; the
    # BertSelfOutput wo projection runs once over the whole slab afterwards.
    for b in range(Bb):                       # static; Bb kept small (grid >= 8)
        rq = slice(b * T, (b + 1) * T)
        rk = slice(b * N, (b + 1) * N)
        # extend_attention_mask_for_bert: (1 - mask) * -10000, hoisted broadcast
        negb = jnp.broadcast_to((1.0 - mask_ref[b]) * -10000.0, (T, N))
        probs_heads = []
        for h in range(H):                    # static head loop
            # scores = q_h @ k_h^T without materializing a transpose
            s = lax.dot_general(q_h[h][rq], k_h[h][rk],
                                (((1,), (1,)), ((), ())),
                                preferred_element_type=jnp.float32) + negb
            m = jnp.max(s, axis=-1, keepdims=True)
            e = jnp.exp(s - m)
            denom = jnp.sum(e, axis=-1, keepdims=True)
            # exact reciprocal only when the probs are an actual output
            p = e * pl.reciprocal(denom, approx=not return_probs)
            if return_probs:
                probs_heads.append(p)
            ctx_sc[rq, h * d:(h + 1) * d] = jnp.dot(
                p.astype(mm_dtype), v_h[h][rk],
                preferred_element_type=jnp.float32)            # (T, d)
        if return_probs:
            # stage all heads and store once per batch element
            out_probs_ref[b] = jnp.stack(probs_heads, axis=0).astype(
                out_probs_ref.dtype)

    # ---- BertSelfOutput: ONE fat wo matmul + dropout(id) + LN(residual) -----
    attn_out = jnp.dot(ctx_sc[...].astype(mm_dtype), wo_ref[...],
                       preferred_element_type=jnp.float32) + row(vE, _BO)
    attention_output = _layer_norm(attn_out + x,
                                   row(vE, _LN2_G), row(vE, _LN2_B), 1e-12)

    # ---- BertIntermediate: Linear + gelu ------------------------------------
    inter = jnp.dot(attention_output.astype(mm_dtype), wi_ref[...],
                    preferred_element_type=jnp.float32) + bi
    if approx_gelu:
        c0 = math.sqrt(2.0 / math.pi)
        inter = 0.5 * inter * (1.0 + jnp.tanh(
            c0 * (inter + 0.044715 * inter * inter * inter)))
    else:
        inter = 0.5 * inter * (1.0 + lax.erf(inter * (1.0 / math.sqrt(2.0))))

    # ---- BertOutput: Linear + dropout(id) + LN(residual) --------------------
    layer = jnp.dot(inter.astype(mm_dtype), wo2_ref[...],
                    preferred_element_type=jnp.float32) + row(vE, _BO2)
    layer_output = _layer_norm(layer + attention_output,
                               row(vE, _LN3_G), row(vE, _LN3_B), 1e-12)

    # ---- kg_to_bert_projection + output_layer_norm --------------------------
    proj = jnp.dot(layer_output.astype(mm_dtype), wp_ref[...],
                   preferred_element_type=jnp.float32) + row(vC, _BP)
    out_ctx_ref[...] = _layer_norm(ctx_ref[...] + proj,
                                   row(vC, _LN4_G), row(vC, _LN4_B), 1e-5)


def init_params(key, entity_dim, contextual_dim, num_heads, intermediate_size,
                init_range=0.02):
    E, C, I = entity_dim, contextual_dim, intermediate_size
    keys = jax.random.split(key, 8)
    n = lambda k, shape: init_range * jax.random.normal(k, shape, jnp.float32)
    # Linear weights are stored pre-transposed as (in, out): y = x @ W + b,
    # semantically identical to PyTorch's x @ weight.T + bias.
    return dict(
        num_heads=num_heads,
        ln1_g=jnp.ones((1, E), jnp.float32), ln1_b=jnp.zeros((1, E), jnp.float32),
        wq=n(keys[0], (E, E)), bq=jnp.zeros((1, E), jnp.float32),
        wk=n(keys[1], (E, E)), bk=jnp.zeros((1, E), jnp.float32),
        wv=n(keys[2], (E, E)), bv=jnp.zeros((1, E), jnp.float32),
        wo=n(keys[3], (E, E)), bo=jnp.zeros((1, E), jnp.float32),
        ln2_g=jnp.ones((1, E), jnp.float32), ln2_b=jnp.zeros((1, E), jnp.float32),
        wi=n(keys[4], (E, I)), bi=jnp.zeros((1, I), jnp.float32),
        wo2=n(keys[5], (I, E)), bo2=jnp.zeros((1, E), jnp.float32),
        ln3_g=jnp.ones((1, E), jnp.float32), ln3_b=jnp.zeros((1, E), jnp.float32),
        # TODO(synk): real model initializes kg_to_bert_projection from the
        # pseudo-inverse of entity_linker.disambiguator.bert_to_kg_projector;
        # the linker is not available, so use a deterministic random init.
        wp=n(keys[6], (E, C)), bp=jnp.zeros((1, C), jnp.float32),
        ln4_g=jnp.ones((1, C), jnp.float32), ln4_b=jnp.zeros((1, C), jnp.float32),
    )


def _default_batch_block(B):
    # Keep >= min(B, 8) grid steps so the software pipeline has a steady state
    # (>= 4 steps per v7x TensorCore pair) and cap the per-step batch block at
    # 8 to bound unrolled code size / live VMEM.
    target = min(B, 8)
    bb = 1
    for cand in range(1, min(B, 8) + 1):
        if B % cand == 0 and B // cand >= target:
            bb = cand
    return bb


def _vmem_capacity_bytes():
    try:
        return int(pltpu.get_tpu_info().vmem_capacity_bytes)
    except Exception:
        return 64 << 20            # conservative (v7x has 64 MiB per TensorCore)


def wikikg_forward(params,
                   contextual_embeddings,            # (B, T, C)
                   projected_bert_representations,   # (B, T, E)
                   projected_span_representations,   # (B, N, E)
                   weighted_entity_embeddings,       # (B, N, E)
                   candidate_spans,                  # (B, N, 2) int32
                   linking_scores,                   # passthrough
                   *, batch_block=None,
                   matmul_dtype=jnp.bfloat16,
                   probs_dtype=jnp.bfloat16,
                   return_attention_probs=False,     # production default: off
                   approx_gelu=False):
    B, T, E = projected_bert_representations.shape
    N = projected_span_representations.shape[1]
    C = contextual_embeddings.shape[-1]
    I = params["wi"].shape[-1]
    H = params["num_heads"]
    d = E // H

    if batch_block is None:
        batch_block = _default_batch_block(B)
    assert B % batch_block == 0, "batch_block must divide the batch size"
    Bb = batch_block
    G = B // Bb

    # Pad row axes (timesteps / entity spans) to multiples of 8 so the
    # flattened blocks are sublane aligned.  Padded entity rows get mask=0 ->
    # -10000 -> exp underflows to exactly 0 (no effect); padded timestep rows
    # are stripped after the call.
    T_pad, N_pad = _round_up(T, 8), _round_up(N, 8)

    def pad_rows(a, size):
        if a.shape[1] == size:
            return a
        w = [(0, 0)] * a.ndim
        w[1] = (0, size - a.shape[1])
        return jnp.pad(a, w)

    bert = pad_rows(projected_bert_representations, T_pad).reshape(B * T_pad, E)
    ctx = pad_rows(contextual_embeddings, T_pad).reshape(B * T_pad, C)
    span = pad_rows(projected_span_representations, N_pad).reshape(B * N_pad, E)
    wee = pad_rows(weighted_entity_embeddings, N_pad).reshape(B * N_pad, E)
    entity_mask = (candidate_spans[:, :, 0] > -1).astype(jnp.float32)    # (B, N)
    mask = pad_rows(entity_mask, N_pad).reshape(B, 1, N_pad)

    # ---- weight packing: 7 MXU matrices + 3 f32 vector bundles --------------
    mm = matmul_dtype
    scale = 1.0 / math.sqrt(d)                 # folded into q projection
    wq = (params["wq"] * scale).astype(mm)
    wk = params["wk"].astype(mm)
    wv = params["wv"].astype(mm)
    wo = params["wo"].astype(mm)
    wi = params["wi"].astype(mm)
    wo2 = params["wo2"].astype(mm)
    wp = params["wp"].astype(mm)
    vec_e = jnp.concatenate(
        [params["ln1_g"], params["ln1_b"], params["bq"] * scale,
         params["bk"], params["bv"], params["bo"],
         params["ln2_g"], params["ln2_b"], params["bo2"],
         params["ln3_g"], params["ln3_b"]], axis=0)              # (11, E)
    vec_c = jnp.concatenate(
        [params["bp"], params["ln4_g"], params["ln4_b"]], axis=0)  # (3, C)
    bi_vec = params["bi"]                                          # (1, I)
    weights = (wq, wk, wv, wo, wi, wo2, wp, vec_e, bi_vec, vec_c)

    def rows_spec(r, c):
        return pl.BlockSpec((Bb * r, c), lambda g: (g, 0))

    # ---- cost estimate (hints XLA's scheduler around the custom call) -------
    flops = 2 * B * (2 * T_pad * E * E + 2 * N_pad * E * E
                     + 2 * T_pad * N_pad * E + 2 * T_pad * E * I + T_pad * E * C)
    transcendentals = B * (H * T_pad * N_pad + T_pad * I)
    w_bytes = sum(int(a.size) * a.dtype.itemsize for a in weights)
    io_bytes = sum(int(a.size) * a.dtype.itemsize
                   for a in (span, wee, bert, mask, ctx))
    out_bytes = 4 * B * T_pad * C
    probs_bytes = (jnp.dtype(probs_dtype).itemsize * B * H * T_pad * N_pad
                   if return_attention_probs else 0)
    cost = pl.CostEstimate(
        flops=int(flops), transcendentals=int(transcendentals),
        bytes_accessed=int(w_bytes + io_bytes + out_bytes + probs_bytes))

    # ---- per-generation VMEM budget (v5e/v6e 128 MiB, v7x 64 MiB) -----------
    cap = _vmem_capacity_bytes()
    act_block = (io_bytes + out_bytes + probs_bytes) // G        # one grid step
    tmp_bytes = (4 * Bb * (T_pad * (4 * E + I) + 3 * N_pad * E)
                 + 8 * H * T_pad * N_pad)
    est = 2 * act_block + 2 * w_bytes + tmp_bytes + (8 << 20)
    vmem_limit = int(min(int(cap * 0.8), max(32 << 20, est)))

    out_specs = [rows_spec(T_pad, C)]
    out_shape = [jax.ShapeDtypeStruct((B * T_pad, C), jnp.float32)]
    if return_attention_probs:
        out_specs.append(pl.BlockSpec((Bb, H, T_pad, N_pad),
                                      lambda g: (g, 0, 0, 0)))
        out_shape.append(jax.ShapeDtypeStruct((B, H, T_pad, N_pad), probs_dtype))

    def build(single_buffer_weights):
        def wspec(a):
            nd = a.ndim
            idx = lambda g, _nd=nd: (0,) * _nd
            if single_buffer_weights:
                # weights have a constant block index -> no need for 2 buffers
                return pl.BlockSpec(a.shape, idx, pipeline_mode=pl.Buffered(1))
            return pl.BlockSpec(a.shape, idx)

        in_specs = [rows_spec(N_pad, E),                                # span reprs
                    rows_spec(N_pad, E),                                # weighted entity emb
                    rows_spec(T_pad, E),                                # projected bert reprs
                    pl.BlockSpec((Bb, 1, N_pad), lambda g: (g, 0, 0)),  # entity mask
                    rows_spec(T_pad, C)] + [wspec(a) for a in weights]

        return pl.pallas_call(
            partial(_wikikg_kernel, H, Bb, T_pad, N_pad,
                    return_attention_probs, mm, approx_gelu),
            grid=(G,),
            in_specs=in_specs,
            out_specs=tuple(out_specs),
            out_shape=tuple(out_shape),
            scratch_shapes=[pltpu.VMEM((Bb * T_pad, E), jnp.float32)],
            compiler_params=pltpu.CompilerParams(
                dimension_semantics=("parallel",),
                vmem_limit_bytes=vmem_limit),
            cost_estimate=cost,
        )

    args = (span, wee, bert, mask, ctx) + weights
    try:
        outs = build(True)(*args)
    except Exception:
        # pipeline_mode=pl.Buffered(1) unsupported on this JAX version ->
        # fall back to default double-buffered weight streams.
        outs = build(False)(*args)

    new_ctx = outs[0].reshape(B, T_pad, C)[:, :T, :]
    result = {"contextual_embeddings": new_ctx, "linking_scores": linking_scores}
    if return_attention_probs:
        result["entity_attention_probs"] = outs[1][:, :, :T, :N]
    return result


def _wikikg_reference(params, ctx, bert, span, wee, candidate_spans):
    """Pure-JAX f32 mirror of the PyTorch forward (dropout = identity)."""
    H = params["num_heads"]
    E = params["wq"].shape[0]
    d = E // H

    def ln(x, g, b, eps):
        u = x.mean(-1, keepdims=True)
        s = ((x - u) ** 2).mean(-1, keepdims=True)
        return (x - u) / jnp.sqrt(s + eps) * g + b

    spans_we = ln(span + wee, params["ln1_g"], params["ln1_b"], 1e-5)
    q = bert @ params["wq"] + params["bq"]
    k = spans_we @ params["wk"] + params["bk"]
    v = spans_we @ params["wv"] + params["bv"]
    B, T, _ = q.shape
    split = lambda a: a.reshape(B, a.shape[1], H, d).transpose(0, 2, 1, 3)
    qh, kh, vh = split(q), split(k), split(v)
    mask = (candidate_spans[:, :, 0] > -1).astype(jnp.float32)
    scores = jnp.einsum("bhtd,bhnd->bhtn", qh, kh) / math.sqrt(d)
    scores = scores + ((1.0 - mask) * -10000.0)[:, None, None, :]
    probs = jax.nn.softmax(scores, axis=-1)
    ctx_l = jnp.einsum("bhtn,bhnd->bhtd", probs, vh).transpose(0, 2, 1, 3).reshape(B, T, E)
    attn = ln(ctx_l @ params["wo"] + params["bo"] + bert,
              params["ln2_g"], params["ln2_b"], 1e-12)
    inter = attn @ params["wi"] + params["bi"]
    inter = 0.5 * inter * (1.0 + lax.erf(inter / math.sqrt(2.0)))
    layer = ln(inter @ params["wo2"] + params["bo2"] + attn,
               params["ln3_g"], params["ln3_b"], 1e-12)
    proj = layer @ params["wp"] + params["bp"]
    return ln(ctx + proj, params["ln4_g"], params["ln4_b"], 1e-5), probs


if __name__ == "__main__":
    # Small shapes consistent with the forward pass.
    B, T, N = 4, 8, 6          # batch, timesteps, num candidate entity spans
    E = 32                     # entity_embedding_dim == span-attention hidden_size
    C = 48                     # contextual_embedding_dim
    HEADS, INTER = 4, 64       # num_attention_heads, intermediate_size

    key = jax.random.PRNGKey(0)
    k_p, k1, k2, k3, k4, k5 = jax.random.split(key, 6)
    params = init_params(k_p, E, C, HEADS, INTER)

    contextual_embeddings = jax.random.normal(k1, (B, T, C), jnp.float32)
    projected_bert_representations = jax.random.normal(k2, (B, T, E), jnp.float32)
    projected_span_representations = jax.random.normal(k3, (B, N, E), jnp.float32)
    weighted_entity_embeddings = jax.random.normal(k4, (B, N, E), jnp.float32)
    linking_scores = jax.random.normal(k5, (B, N), jnp.float32)

    # candidate_spans: start index > -1 marks a real span; -1 marks padding.
    starts = jnp.arange(B * N, dtype=jnp.int32).reshape(B, N) % 7
    starts = starts.at[1, -2:].set(-1)
    starts = starts.at[3, -1:].set(-1)
    candidate_spans = jnp.stack([starts, starts + 1], axis=-1)   # (B, N, 2)

    # Fast path: bf16 MXU operands, f32 accumulation, bf16 attention-probs out.
    out = wikikg_forward(params,
                         contextual_embeddings,
                         projected_bert_representations,
                         projected_span_representations,
                         weighted_entity_embeddings,
                         candidate_spans,
                         linking_scores,
                         return_attention_probs=True)
    jax.block_until_ready(out)
    assert out["contextual_embeddings"].shape == (B, T, C)
    assert out["entity_attention_probs"].shape == (B, HEADS, T, N)
    assert bool(jnp.all(jnp.isfinite(out["contextual_embeddings"])))

    # Correctness spot-check: run the kernel with f32 matmuls / f32 probs and
    # compare against a pure-JAX reference (only summation order differs).
    out32 = wikikg_forward(params,
                           contextual_embeddings,
                           projected_bert_representations,
                           projected_span_representations,
                           weighted_entity_embeddings,
                           candidate_spans,
                           linking_scores,
                           matmul_dtype=jnp.float32,
                           probs_dtype=jnp.float32,
                           return_attention_probs=True)
    ref_ctx, ref_probs = _wikikg_reference(
        params, contextual_embeddings, projected_bert_representations,
        projected_span_representations, weighted_entity_embeddings,
        candidate_spans)
    jax.block_until_ready((out32, ref_ctx, ref_probs))
    assert float(jnp.max(jnp.abs(out32["contextual_embeddings"] - ref_ctx))) < 3e-2
    assert float(jnp.max(jnp.abs(out32["entity_attention_probs"] - ref_probs))) < 1e-2

    print("KERNEL_OK")
</pallas_src>

<mosaic_0001>
module attributes {stable_mosaic.version = 11 : i64} {
  func.func @_wikikg_kernel(%arg0: i32, %arg1: memref<8x32xf32, #tpu.memory_space<vmem>>, %arg2: memref<8x32xf32, #tpu.memory_space<vmem>>, %arg3: memref<8x32xf32, #tpu.memory_space<vmem>>, %arg4: memref<1x1x8xf32, #tpu.memory_space<vmem>>, %arg5: memref<8x48xf32, #tpu.memory_space<vmem>>, %arg6: memref<32x32xbf16, #tpu.memory_space<vmem>>, %arg7: memref<32x32xbf16, #tpu.memory_space<vmem>>, %arg8: memref<32x32xbf16, #tpu.memory_space<vmem>>, %arg9: memref<32x32xbf16, #tpu.memory_space<vmem>>, %arg10: memref<32x64xbf16, #tpu.memory_space<vmem>>, %arg11: memref<64x32xbf16, #tpu.memory_space<vmem>>, %arg12: memref<32x48xbf16, #tpu.memory_space<vmem>>, %arg13: memref<11x32xf32, #tpu.memory_space<vmem>>, %arg14: memref<1x64xf32, #tpu.memory_space<vmem>>, %arg15: memref<3x48xf32, #tpu.memory_space<vmem>>, %arg16: memref<8x48xf32, #tpu.memory_space<vmem>>, %arg17: memref<1x4x8x8xbf16, #tpu.memory_space<vmem>>, %arg18: memref<8x32xf32, #tpu.memory_space<vmem>>) attributes {dimension_semantics = [#tpu.dimension_semantics<parallel>], iteration_bounds = array<i64: 4>, scalar_prefetch = 0 : i64, scratch_operands = 1 : i64, tpu.core_type = #tpu.core_type<tc>, window_params = [{transform_indices = @transform_0, window_bounds = array<i64: 8, 32>}, {transform_indices = @transform_1, window_bounds = array<i64: 8, 32>}, {transform_indices = @transform_2, window_bounds = array<i64: 8, 32>}, {transform_indices = @transform_3, window_bounds = array<i64: 1, 1, 8>}, {transform_indices = @transform_4, window_bounds = array<i64: 8, 48>}, {pipeline_mode = #tpu.pipeline_mode<synchronous>, transform_indices = @transform_5, window_bounds = array<i64: 32, 32>}, {pipeline_mode = #tpu.pipeline_mode<synchronous>, transform_indices = @transform_6, window_bounds = array<i64: 32, 32>}, {pipeline_mode = #tpu.pipeline_mode<synchronous>, transform_indices = @transform_7, window_bounds = array<i64: 32, 32>}, {pipeline_mode = #tpu.pipeline_mode<synchronous>, transform_indices = @transform_8, window_bounds = array<i64: 32, 32>}, {pipeline_mode = #tpu.pipeline_mode<synchronous>, transform_indices = @transform_9, window_bounds = array<i64: 32, 64>}, {pipeline_mode = #tpu.pipeline_mode<synchronous>, transform_indices = @transform_10, window_bounds = array<i64: 64, 32>}, {pipeline_mode = #tpu.pipeline_mode<synchronous>, transform_indices = @transform_11, window_bounds = array<i64: 32, 48>}, {pipeline_mode = #tpu.pipeline_mode<synchronous>, transform_indices = @transform_12, window_bounds = array<i64: 11, 32>}, {pipeline_mode = #tpu.pipeline_mode<synchronous>, transform_indices = @transform_13, window_bounds = array<i64: 1, 64>}, {pipeline_mode = #tpu.pipeline_mode<synchronous>, transform_indices = @transform_14, window_bounds = array<i64: 3, 48>}, {transform_indices = @transform_15, window_bounds = array<i64: 8, 48>}, {transform_indices = @transform_16, window_bounds = array<i64: 1, 4, 8, 8>}]} {
    %c0 = arith.constant 0 : index
    %c0_0 = arith.constant 0 : index
    %0 = vector.load %arg13[%c0, %c0_0] : memref<11x32xf32, #tpu.memory_space<vmem>>, vector<11x32xf32>
    %c0_1 = arith.constant 0 : index
    %c0_2 = arith.constant 0 : index
    %1 = vector.load %arg15[%c0_1, %c0_2] : memref<3x48xf32, #tpu.memory_space<vmem>>, vector<3x48xf32>
    %c0_3 = arith.constant 0 : index
    %c0_4 = arith.constant 0 : index
    %2 = vector.load %arg14[%c0_3, %c0_4] : memref<1x64xf32, #tpu.memory_space<vmem>>, vector<1x64xf32>
    %c0_5 = arith.constant 0 : index
    %c0_6 = arith.constant 0 : index
    %3 = vector.load %arg1[%c0_5, %c0_6] : memref<8x32xf32, #tpu.memory_space<vmem>>, vector<8x32xf32>
    %c0_7 = arith.constant 0 : index
    %c0_8 = arith.constant 0 : index
    %4 = vector.load %arg2[%c0_7, %c0_8] : memref<8x32xf32, #tpu.memory_space<vmem>>, vector<8x32xf32>
    %5 = arith.addf %3, %4 : vector<8x32xf32>
    %6 = vector.extract_strided_slice %0 {offsets = [0, 0], sizes = [1, 32], strides = [1, 1]} : vector<11x32xf32> to vector<1x32xf32>
    %7 = vector.extract_strided_slice %0 {offsets = [1, 0], sizes = [1, 32], strides = [1, 1]} : vector<11x32xf32> to vector<1x32xf32>
    %cst = arith.constant dense<0.000000e+00> : vector<8xf32>
    %8 = vector.multi_reduction <add>, %5, %cst [1] : vector<8x32xf32> to vector<8xf32>
    %9 = vector.shape_cast %8 : vector<8xf32> to vector<8x1xf32>
    %cst_9 = arith.constant 3.200000e+01 : f32
    %10 = vector.broadcast %cst_9 : f32 to vector<8x1xf32>
    %11 = arith.divf %9, %10 : vector<8x1xf32>
    %12 = vector.broadcast %11 : vector<8x1xf32> to vector<8x32xf32>
    %13 = arith.subf %5, %12 : vector<8x32xf32>
    %14 = arith.mulf %13, %13 : vector<8x32xf32>
    %cst_10 = arith.constant dense<0.000000e+00> : vector<8xf32>
    %15 = vector.multi_reduction <add>, %14, %cst_10 [1] : vector<8x32xf32> to vector<8xf32>
    %16 = vector.shape_cast %15 : vector<8xf32> to vector<8x1xf32>
    %cst_11 = arith.constant 3.200000e+01 : f32
    %17 = vector.broadcast %cst_11 : f32 to vector<8x1xf32>
    %18 = arith.divf %16, %17 : vector<8x1xf32>
    %cst_12 = arith.constant 9.99999974E-6 : f32
    %19 = vector.broadcast %cst_12 : f32 to vector<8x1xf32>
    %20 = arith.addf %18, %19 : vector<8x1xf32>
    %21 = math.rsqrt %20 : vector<8x1xf32>
    %22 = vector.broadcast %21 : vector<8x1xf32> to vector<8x32xf32>
    %23 = arith.mulf %13, %22 : vector<8x32xf32>
    %24 = vector.broadcast %6 : vector<1x32xf32> to vector<8x32xf32>
    %25 = arith.mulf %23, %24 : vector<8x32xf32>
    %26 = vector.broadcast %7 : vector<1x32xf32> to vector<8x32xf32>
    %27 = arith.addf %25, %26 : vector<8x32xf32>
    %28 = arith.truncf %27 : vector<8x32xf32> to vector<8x32xbf16>
    %c0_13 = arith.constant 0 : index
    %c0_14 = arith.constant 0 : index
    %29 = vector.load %arg3[%c0_13, %c0_14] : memref<8x32xf32, #tpu.memory_space<vmem>>, vector<8x32xf32>
    %30 = arith.truncf %29 : vector<8x32xf32> to vector<8x32xbf16>
    %c0_15 = arith.constant 0 : index
    %c0_16 = arith.constant 0 : index
    %31 = vector.load %arg6[%c0_15, %c0_16] : memref<32x32xbf16, #tpu.memory_space<vmem>>, vector<32x32xbf16>
    %cst_17 = arith.constant dense<0.000000e+00> : vector<8x32xf32>
    %32 = tpu.matmul %30, %31, %cst_17 {dimension_numbers = #tpu.dot_dimension_numbers<[1], [0], [0], [1], [0, 0, 1, 1], [], []>} : vector<8x32xbf16>, vector<32x32xbf16>, vector<8x32xf32> -> vector<8x32xf32>
    %33 = vector.extract_strided_slice %0 {offsets = [2, 0], sizes = [1, 32], strides = [1, 1]} : vector<11x32xf32> to vector<1x32xf32>
    %34 = vector.broadcast %33 : vector<1x32xf32> to vector<8x32xf32>
    %35 = arith.addf %32, %34 : vector<8x32xf32>
    %c0_18 = arith.constant 0 : index
    %c0_19 = arith.constant 0 : index
    %36 = vector.load %arg7[%c0_18, %c0_19] : memref<32x32xbf16, #tpu.memory_space<vmem>>, vector<32x32xbf16>
    %cst_20 = arith.constant dense<0.000000e+00> : vector<8x32xf32>
    %37 = tpu.matmul %28, %36, %cst_20 {dimension_numbers = #tpu.dot_dimension_numbers<[1], [0], [0], [1], [0, 0, 1, 1], [], []>} : vector<8x32xbf16>, vector<32x32xbf16>, vector<8x32xf32> -> vector<8x32xf32>
    %38 = vector.extract_strided_slice %0 {offsets = [3, 0], sizes = [1, 32], strides = [1, 1]} : vector<11x32xf32> to vector<1x32xf32>
    %39 = vector.broadcast %38 : vector<1x32xf32> to vector<8x32xf32>
    %40 = arith.addf %37, %39 : vector<8x32xf32>
    %c0_21 = arith.constant 0 : index
    %c0_22 = arith.constant 0 : index
    %41 = vector.load %arg8[%c0_21, %c0_22] : memref<32x32xbf16, #tpu.memory_space<vmem>>, vector<32x32xbf16>
    %cst_23 = arith.constant dense<0.000000e+00> : vector<8x32xf32>
    %42 = tpu.matmul %28, %41, %cst_23 {dimension_numbers = #tpu.dot_dimension_numbers<[1], [0], [0], [1], [0, 0, 1, 1], [], []>} : vector<8x32xbf16>, vector<32x32xbf16>, vector<8x32xf32> -> vector<8x32xf32>
    %43 = vector.extract_strided_slice %0 {offsets = [4, 0], sizes = [1, 32], strides = [1, 1]} : vector<11x32xf32> to vector<1x32xf32>
    %44 = vector.broadcast %43 : vector<1x32xf32> to vector<8x32xf32>
    %45 = arith.addf %42, %44 : vector<8x32xf32>
    %46 = arith.truncf %35 : vector<8x32xf32> to vector<8x32xbf16>
    %47 = arith.truncf %40 : vector<8x32xf32> to vector<8x32xbf16>
    %48 = arith.truncf %45 : vector<8x32xf32> to vector<8x32xbf16>
    %49 = vector.extract_strided_slice %46 {offsets = [0, 0], sizes = [8, 8], strides = [1, 1]} : vector<8x32xbf16> to vector<8x8xbf16>
    %50 = vector.extract_strided_slice %46 {offsets = [0, 8], sizes = [8, 8], strides = [1, 1]} : vector<8x32xbf16> to vector<8x8xbf16>
    %51 = vector.extract_strided_slice %46 {offsets = [0, 16], sizes = [8, 8], strides = [1, 1]} : vector<8x32xbf16> to vector<8x8xbf16>
    %52 = vector.extract_strided_slice %46 {offsets = [0, 24], sizes = [8, 8], strides = [1, 1]} : vector<8x32xbf16> to vector<8x8xbf16>
    %53 = vector.extract_strided_slice %47 {offsets = [0, 0], sizes = [8, 8], strides = [1, 1]} : vector<8x32xbf16> to vector<8x8xbf16>
    %54 = vector.extract_strided_slice %47 {offsets = [0, 8], sizes = [8, 8], strides = [1, 1]} : vector<8x32xbf16> to vector<8x8xbf16>
    %55 = vector.extract_strided_slice %47 {offsets = [0, 16], sizes = [8, 8], strides = [1, 1]} : vector<8x32xbf16> to vector<8x8xbf16>
    %56 = vector.extract_strided_slice %47 {offsets = [0, 24], sizes = [8, 8], strides = [1, 1]} : vector<8x32xbf16> to vector<8x8xbf16>
    %57 = vector.extract_strided_slice %48 {offsets = [0, 0], sizes = [8, 8], strides = [1, 1]} : vector<8x32xbf16> to vector<8x8xbf16>
    %58 = vector.extract_strided_slice %48 {offsets = [0, 8], sizes = [8, 8], strides = [1, 1]} : vector<8x32xbf16> to vector<8x8xbf16>
    %59 = vector.extract_strided_slice %48 {offsets = [0, 16], sizes = [8, 8], strides = [1, 1]} : vector<8x32xbf16> to vector<8x8xbf16>
    %60 = vector.extract_strided_slice %48 {offsets = [0, 24], sizes = [8, 8], strides = [1, 1]} : vector<8x32xbf16> to vector<8x8xbf16>
    %c0_24 = arith.constant 0 : index
    %c0_25 = arith.constant 0 : index
    %c0_26 = arith.constant 0 : index
    %61 = vector.load %arg4[%c0_24, %c0_25, %c0_26] : memref<1x1x8xf32, #tpu.memory_space<vmem>>, vector<1x1x8xf32>
    %62 = vector.shape_cast %61 : vector<1x1x8xf32> to vector<1x8xf32>
    %cst_27 = arith.constant 1.000000e+00 : f32
    %63 = vector.broadcast %cst_27 : f32 to vector<1x8xf32>
    %64 = arith.subf %63, %62 : vector<1x8xf32>
    %cst_28 = arith.constant -1.000000e+04 : f32
    %65 = vector.broadcast %cst_28 : f32 to vector<1x8xf32>
    %66 = arith.mulf %64, %65 : vector<1x8xf32>
    %67 = vector.shape_cast %66 : vector<1x8xf32> to vector<1x8xf32>
    %68 = vector.broadcast %67 : vector<1x8xf32> to vector<8x8xf32>
    %cst_29 = arith.constant dense<0.000000e+00> : vector<8x8xf32>
    %69 = tpu.matmul %49, %53, %cst_29 {dimension_numbers = #tpu.dot_dimension_numbers<[1], [1], [0], [0], [0, 0, 1, 0], [], []>} : vector<8x8xbf16>, vector<8x8xbf16>, vector<8x8xf32> -> vector<8x8xf32>
    %70 = arith.addf %69, %68 : vector<8x8xf32>
    %cst_30 = arith.constant dense<0xFF800000> : vector<8xf32>
    %71 = vector.multi_reduction <maximumf>, %70, %cst_30 [1] : vector<8x8xf32> to vector<8xf32>
    %72 = vector.shape_cast %71 : vector<8xf32> to vector<8x1xf32>
    %73 = vector.broadcast %72 : vector<8x1xf32> to vector<8x8xf32>
    %74 = arith.subf %70, %73 : vector<8x8xf32>
    %75 = math.exp %74 : vector<8x8xf32>
    %cst_31 = arith.constant dense<0.000000e+00> : vector<8xf32>
    %76 = vector.multi_reduction <add>, %75, %cst_31 [1] : vector<8x8xf32> to vector<8xf32>
    %77 = vector.shape_cast %76 : vector<8xf32> to vector<8x1xf32>
    %78 = tpu.reciprocal %77 : vector<8x1xf32> -> vector<8x1xf32>
    %79 = vector.broadcast %78 : vector<8x1xf32> to vector<8x8xf32>
    %80 = arith.mulf %75, %79 : vector<8x8xf32>
    %81 = arith.truncf %80 : vector<8x8xf32> to vector<8x8xbf16>
    %cst_32 = arith.constant dense<0.000000e+00> : vector<8x8xf32>
    %82 = tpu.matmul %81, %57, %cst_32 {dimension_numbers = #tpu.dot_dimension_numbers<[1], [0], [0], [1], [0, 0, 1, 1], [], []>} : vector<8x8xbf16>, vector<8x8xbf16>, vector<8x8xf32> -> vector<8x8xf32>
    %c0_33 = arith.constant 0 : index
    %c0_34 = arith.constant 0 : index
    %83 = vector.load %arg18[%c0_33, %c0_34] : memref<8x32xf32, #tpu.memory_space<vmem>>, vector<8x8xf32>
    tpu.vector_store %arg18[%c0_33, %c0_34], %82 {strides = array<i32>} : memref<8x32xf32, #tpu.memory_space<vmem>>, vector<8x8xf32>,
    %cst_35 = arith.constant dense<0.000000e+00> : vector<8x8xf32>
    %84 = tpu.matmul %50, %54, %cst_35 {dimension_numbers = #tpu.dot_dimension_numbers<[1], [1], [0], [0], [0, 0, 1, 0], [], []>} : vector<8x8xbf16>, vector<8x8xbf16>, vector<8x8xf32> -> vector<8x8xf32>
    %85 = arith.addf %84, %68 : vector<8x8xf32>
    %cst_36 = arith.constant dense<0xFF800000> : vector<8xf32>
    %86 = vector.multi_reduction <maximumf>, %85, %cst_36 [1] : vector<8x8xf32> to vector<8xf32>
    %87 = vector.shape_cast %86 : vector<8xf32> to vector<8x1xf32>
    %88 = vector.broadcast %87 : vector<8x1xf32> to vector<8x8xf32>
    %89 = arith.subf %85, %88 : vector<8x8xf32>
    %90 = math.exp %89 : vector<8x8xf32>
    %cst_37 = arith.constant dense<0.000000e+00> : vector<8xf32>
    %91 = vector.multi_reduction <add>, %90, %cst_37 [1] : vector<8x8xf32> to vector<8xf32>
    %92 = vector.shape_cast %91 : vector<8xf32> to vector<8x1xf32>
    %93 = tpu.reciprocal %92 : vector<8x1xf32> -> vector<8x1xf32>
    %94 = vector.broadcast %93 : vector<8x1xf32> to vector<8x8xf32>
    %95 = arith.mulf %90, %94 : vector<8x8xf32>
    %96 = arith.truncf %95 : vector<8x8xf32> to vector<8x8xbf16>
    %cst_38 = arith.constant dense<0.000000e+00> : vector<8x8xf32>
    %97 = tpu.matmul %96, %58, %cst_38 {dimension_numbers = #tpu.dot_dimension_numbers<[1], [0], [0], [1], [0, 0, 1, 1], [], []>} : vector<8x8xbf16>, vector<8x8xbf16>, vector<8x8xf32> -> vector<8x8xf32>
    %c0_39 = arith.constant 0 : index
    %c8 = arith.constant 8 : index
    %98 = vector.load %arg18[%c0_39, %c8] : memref<8x32xf32, #tpu.memory_space<vmem>>, vector<8x8xf32>
    tpu.vector_store %arg18[%c0_39, %c8], %97 {strides = array<i32>} : memref<8x32xf32, #tpu.memory_space<vmem>>, vector<8x8xf32>,
    %cst_40 = arith.constant dense<0.000000e+00> : vector<8x8xf32>
    %99 = tpu.matmul %51, %55, %cst_40 {dimension_numbers = #tpu.dot_dimension_numbers<[1], [1], [0], [0], [0, 0, 1, 0], [], []>} : vector<8x8xbf16>, vector<8x8xbf16>, vector<8x8xf32> -> vector<8x8xf32>
    %100 = arith.addf %99, %68 : vector<8x8xf32>
    %cst_41 = arith.constant dense<0xFF800000> : vector<8xf32>
    %101 = vector.multi_reduction <maximumf>, %100, %cst_41 [1] : vector<8x8xf32> to vector<8xf32>
    %102 = vector.shape_cast %101 : vector<8xf32> to vector<8x1xf32>
    %103 = vector.broadcast %102 : vector<8x1xf32> to vector<8x8xf32>
    %104 = arith.subf %100, %103 : vector<8x8xf32>
    %105 = math.exp %104 : vector<8x8xf32>
    %cst_42 = arith.constant dense<0.000000e+00> : vector<8xf32>
    %106 = vector.multi_reduction <add>, %105, %cst_42 [1] : vector<8x8xf32> to vector<8xf32>
    %107 = vector.shape_cast %106 : vector<8xf32> to vector<8x1xf32>
    %108 = tpu.reciprocal %107 : vector<8x1xf32> -> vector<8x1xf32>
    %109 = vector.broadcast %108 : vector<8x1xf32> to vector<8x8xf32>
    %110 = arith.mulf %105, %109 : vector<8x8xf32>
    %111 = arith.truncf %110 : vector<8x8xf32> to vector<8x8xbf16>
    %cst_43 = arith.constant dense<0.000000e+00> : vector<8x8xf32>
    %112 = tpu.matmul %111, %59, %cst_43 {dimension_numbers = #tpu.dot_dimension_numbers<[1], [0], [0], [1], [0, 0, 1, 1], [], []>} : vector<8x8xbf16>, vector<8x8xbf16>, vector<8x8xf32> -> vector<8x8xf32>
    %c0_44 = arith.constant 0 : index
    %c16 = arith.constant 16 : index
    %113 = vector.load %arg18[%c0_44, %c16] : memref<8x32xf32, #tpu.memory_space<vmem>>, vector<8x8xf32>
    tpu.vector_store %arg18[%c0_44, %c16], %112 {strides = array<i32>} : memref<8x32xf32, #tpu.memory_space<vmem>>, vector<8x8xf32>,
    %cst_45 = arith.constant dense<0.000000e+00> : vector<8x8xf32>
    %114 = tpu.matmul %52, %56, %cst_45 {dimension_numbers = #tpu.dot_dimension_numbers<[1], [1], [0], [0], [0, 0, 1, 0], [], []>} : vector<8x8xbf16>, vector<8x8xbf16>, vector<8x8xf32> -> vector<8x8xf32>
    %115 = arith.addf %114, %68 : vector<8x8xf32>
    %cst_46 = arith.constant dense<0xFF800000> : vector<8xf32>
    %116 = vector.multi_reduction <maximumf>, %115, %cst_46 [1] : vector<8x8xf32> to vector<8xf32>
    %117 = vector.shape_cast %116 : vector<8xf32> to vector<8x1xf32>
    %118 = vector.broadcast %117 : vector<8x1xf32> to vector<8x8xf32>
    %119 = arith.subf %115, %118 : vector<8x8xf32>
    %120 = math.exp %119 : vector<8x8xf32>
    %cst_47 = arith.constant dense<0.000000e+00> : vector<8xf32>
    %121 = vector.multi_reduction <add>, %120, %cst_47 [1] : vector<8x8xf32> to vector<8xf32>
    %122 = vector.shape_cast %121 : vector<8xf32> to vector<8x1xf32>
    %123 = tpu.reciprocal %122 : vector<8x1xf32> -> vector<8x1xf32>
    %124 = vector.broadcast %123 : vector<8x1xf32> to vector<8x8xf32>
    %125 = arith.mulf %120, %124 : vector<8x8xf32>
    %126 = arith.truncf %125 : vector<8x8xf32> to vector<8x8xbf16>
    %cst_48 = arith.constant dense<0.000000e+00> : vector<8x8xf32>
    %127 = tpu.matmul %126, %60, %cst_48 {dimension_numbers = #tpu.dot_dimension_numbers<[1], [0], [0], [1], [0, 0, 1, 1], [], []>} : vector<8x8xbf16>, vector<8x8xbf16>, vector<8x8xf32> -> vector<8x8xf32>
    %c0_49 = arith.constant 0 : index
    %c24 = arith.constant 24 : index
    %128 = vector.load %arg18[%c0_49, %c24] : memref<8x32xf32, #tpu.memory_space<vmem>>, vector<8x8xf32>
    tpu.vector_store %arg18[%c0_49, %c24], %127 {strides = array<i32>} : memref<8x32xf32, #tpu.memory_space<vmem>>, vector<8x8xf32>,
    %129 = vector.shape_cast %80 : vector<8x8xf32> to vector<1x8x8xf32>
    %130 = vector.shape_cast %95 : vector<8x8xf32> to vector<1x8x8xf32>
    %131 = vector.shape_cast %110 : vector<8x8xf32> to vector<1x8x8xf32>
    %132 = vector.shape_cast %125 : vector<8x8xf32> to vector<1x8x8xf32>
    %133 = tpu.concatenate %129, %130, %131, %132 in 0 : vector<1x8x8xf32>, vector<1x8x8xf32>, vector<1x8x8xf32>, vector<1x8x8xf32> -> vector<4x8x8xf32>
    %134 = arith.truncf %133 : vector<4x8x8xf32> to vector<4x8x8xbf16>
    %c0_50 = arith.constant 0 : index
    %c0_51 = arith.constant 0 : index
    %c0_52 = arith.constant 0 : index
    %c0_53 = arith.constant 0 : index
    %135 = vector.load %arg17[%c0_50, %c0_51, %c0_52, %c0_53] : memref<1x4x8x8xbf16, #tpu.memory_space<vmem>>, vector<1x4x8x8xbf16>
    %136 = vector.shape_cast %135 : vector<1x4x8x8xbf16> to vector<4x8x8xbf16>
    %137 = vector.shape_cast %134 : vector<4x8x8xbf16> to vector<1x4x8x8xbf16>
    tpu.vector_store %arg17[%c0_50, %c0_51, %c0_52, %c0_53], %137 {strides = array<i32>} : memref<1x4x8x8xbf16, #tpu.memory_space<vmem>>, vector<1x4x8x8xbf16>,
    %c0_54 = arith.constant 0 : index
    %c0_55 = arith.constant 0 : index
    %138 = vector.load %arg18[%c0_54, %c0_55] : memref<8x32xf32, #tpu.memory_space<vmem>>, vector<8x32xf32>
    %139 = arith.truncf %138 : vector<8x32xf32> to vector<8x32xbf16>
    %c0_56 = arith.constant 0 : index
    %c0_57 = arith.constant 0 : index
    %140 = vector.load %arg9[%c0_56, %c0_57] : memref<32x32xbf16, #tpu.memory_space<vmem>>, vector<32x32xbf16>
    %cst_58 = arith.constant dense<0.000000e+00> : vector<8x32xf32>
    %141 = tpu.matmul %139, %140, %cst_58 {dimension_numbers = #tpu.dot_dimension_numbers<[1], [0], [0], [1], [0, 0, 1, 1], [], []>} : vector<8x32xbf16>, vector<32x32xbf16>, vector<8x32xf32> -> vector<8x32xf32>
    %142 = vector.extract_strided_slice %0 {offsets = [5, 0], sizes = [1, 32], strides = [1, 1]} : vector<11x32xf32> to vector<1x32xf32>
    %143 = vector.broadcast %142 : vector<1x32xf32> to vector<8x32xf32>
    %144 = arith.addf %141, %143 : vector<8x32xf32>
    %145 = arith.addf %144, %29 : vector<8x32xf32>
    %146 = vector.extract_strided_slice %0 {offsets = [6, 0], sizes = [1, 32], strides = [1, 1]} : vector<11x32xf32> to vector<1x32xf32>
    %147 = vector.extract_strided_slice %0 {offsets = [7, 0], sizes = [1, 32], strides = [1, 1]} : vector<11x32xf32> to vector<1x32xf32>
    %cst_59 = arith.constant dense<0.000000e+00> : vector<8xf32>
    %148 = vector.multi_reduction <add>, %145, %cst_59 [1] : vector<8x32xf32> to vector<8xf32>
    %149 = vector.shape_cast %148 : vector<8xf32> to vector<8x1xf32>
    %cst_60 = arith.constant 3.200000e+01 : f32
    %150 = vector.broadcast %cst_60 : f32 to vector<8x1xf32>
    %151 = arith.divf %149, %150 : vector<8x1xf32>
    %152 = vector.broadcast %151 : vector<8x1xf32> to vector<8x32xf32>
    %153 = arith.subf %145, %152 : vector<8x32xf32>
    %154 = arith.mulf %153, %153 : vector<8x32xf32>
    %cst_61 = arith.constant dense<0.000000e+00> : vector<8xf32>
    %155 = vector.multi_reduction <add>, %154, %cst_61 [1] : vector<8x32xf32> to vector<8xf32>
    %156 = vector.shape_cast %155 : vector<8xf32> to vector<8x1xf32>
    %cst_62 = arith.constant 3.200000e+01 : f32
    %157 = vector.broadcast %cst_62 : f32 to vector<8x1xf32>
    %158 = arith.divf %156, %157 : vector<8x1xf32>
    %cst_63 = arith.constant 9.99999996E-13 : f32
    %159 = vector.broadcast %cst_63 : f32 to vector<8x1xf32>
    %160 = arith.addf %158, %159 : vector<8x1xf32>
    %161 = math.rsqrt %160 : vector<8x1xf32>
    %162 = vector.broadcast %161 : vector<8x1xf32> to vector<8x32xf32>
    %163 = arith.mulf %153, %162 : vector<8x32xf32>
    %164 = vector.broadcast %146 : vector<1x32xf32> to vector<8x32xf32>
    %165 = arith.mulf %163, %164 : vector<8x32xf32>
    %166 = vector.broadcast %147 : vector<1x32xf32> to vector<8x32xf32>
    %167 = arith.addf %165, %166 : vector<8x32xf32>
    %168 = arith.truncf %167 : vector<8x32xf32> to vector<8x32xbf16>
    %c0_64 = arith.constant 0 : index
    %c0_65 = arith.constant 0 : index
    %169 = vector.load %arg10[%c0_64, %c0_65] : memref<32x64xbf16, #tpu.memory_space<vmem>>, vector<32x64xbf16>
    %cst_66 = arith.constant dense<0.000000e+00> : vector<8x64xf32>
    %170 = tpu.matmul %168, %169, %cst_66 {dimension_numbers = #tpu.dot_dimension_numbers<[1], [0], [0], [1], [0, 0, 1, 1], [], []>} : vector<8x32xbf16>, vector<32x64xbf16>, vector<8x64xf32> -> vector<8x64xf32>
    %171 = vector.broadcast %2 : vector<1x64xf32> to vector<8x64xf32>
    %172 = arith.addf %170, %171 : vector<8x64xf32>
    %cst_67 = arith.constant 5.000000e-01 : f32
    %173 = vector.broadcast %cst_67 : f32 to vector<8x64xf32>
    %174 = arith.mulf %173, %172 : vector<8x64xf32>
    %cst_68 = arith.constant 0.707106769 : f32
    %175 = vector.broadcast %cst_68 : f32 to vector<8x64xf32>
    %176 = arith.mulf %172, %175 : vector<8x64xf32>
    %177 = math.erf %176 : vector<8x64xf32>
    %cst_69 = arith.constant 1.000000e+00 : f32
    %178 = vector.broadcast %cst_69 : f32 to vector<8x64xf32>
    %179 = arith.addf %178, %177 : vector<8x64xf32>
    %180 = arith.mulf %174, %179 : vector<8x64xf32>
    %181 = arith.truncf %180 : vector<8x64xf32> to vector<8x64xbf16>
    %c0_70 = arith.constant 0 : index
    %c0_71 = arith.constant 0 : index
    %182 = vector.load %arg11[%c0_70, %c0_71] : memref<64x32xbf16, #tpu.memory_space<vmem>>, vector<64x32xbf16>
    %cst_72 = arith.constant dense<0.000000e+00> : vector<8x32xf32>
    %183 = tpu.matmul %181, %182, %cst_72 {dimension_numbers = #tpu.dot_dimension_numbers<[1], [0], [0], [1], [0, 0, 1, 1], [], []>} : vector<8x64xbf16>, vector<64x32xbf16>, vector<8x32xf32> -> vector<8x32xf32>
    %184 = vector.extract_strided_slice %0 {offsets = [8, 0], sizes = [1, 32], strides = [1, 1]} : vector<11x32xf32> to vector<1x32xf32>
    %185 = vector.broadcast %184 : vector<1x32xf32> to vector<8x32xf32>
    %186 = arith.addf %183, %185 : vector<8x32xf32>
    %187 = arith.addf %186, %167 : vector<8x32xf32>
    %188 = vector.extract_strided_slice %0 {offsets = [9, 0], sizes = [1, 32], strides = [1, 1]} : vector<11x32xf32> to vector<1x32xf32>
    %189 = vector.extract_strided_slice %0 {offsets = [10, 0], sizes = [1, 32], strides = [1, 1]} : vector<11x32xf32> to vector<1x32xf32>
    %cst_73 = arith.constant dense<0.000000e+00> : vector<8xf32>
    %190 = vector.multi_reduction <add>, %187, %cst_73 [1] : vector<8x32xf32> to vector<8xf32>
    %191 = vector.shape_cast %190 : vector<8xf32> to vector<8x1xf32>
    %cst_74 = arith.constant 3.200000e+01 : f32
    %192 = vector.broadcast %cst_74 : f32 to vector<8x1xf32>
    %193 = arith.divf %191, %192 : vector<8x1xf32>
    %194 = vector.broadcast %193 : vector<8x1xf32> to vector<8x32xf32>
    %195 = arith.subf %187, %194 : vector<8x32xf32>
    %196 = arith.mulf %195, %195 : vector<8x32xf32>
    %cst_75 = arith.constant dense<0.000000e+00> : vector<8xf32>
    %197 = vector.multi_reduction <add>, %196, %cst_75 [1] : vector<8x32xf32> to vector<8xf32>
    %198 = vector.shape_cast %197 : vector<8xf32> to vector<8x1xf32>
    %cst_76 = arith.constant 3.200000e+01 : f32
    %199 = vector.broadcast %cst_76 : f32 to vector<8x1xf32>
    %200 = arith.divf %198, %199 : vector<8x1xf32>
    %cst_77 = arith.constant 9.99999996E-13 : f32
    %201 = vector.broadcast %cst_77 : f32 to vector<8x1xf32>
    %202 = arith.addf %200, %201 : vector<8x1xf32>
    %203 = math.rsqrt %202 : vector<8x1xf32>
    %204 = vector.broadcast %203 : vector<8x1xf32> to vector<8x32xf32>
    %205 = arith.mulf %195, %204 : vector<8x32xf32>
    %206 = vector.broadcast %188 : vector<1x32xf32> to vector<8x32xf32>
    %207 = arith.mulf %205, %206 : vector<8x32xf32>
    %208 = vector.broadcast %189 : vector<1x32xf32> to vector<8x32xf32>
    %209 = arith.addf %207, %208 : vector<8x32xf32>
    %210 = arith.truncf %209 : vector<8x32xf32> to vector<8x32xbf16>
    %c0_78 = arith.constant 0 : index
    %c0_79 = arith.constant 0 : index
    %211 = vector.load %arg12[%c0_78, %c0_79] : memref<32x48xbf16, #tpu.memory_space<vmem>>, vector<32x48xbf16>
    %cst_80 = arith.constant dense<0.000000e+00> : vector<8x48xf32>
    %212 = tpu.matmul %210, %211, %cst_80 {dimension_numbers = #tpu.dot_dimension_numbers<[1], [0], [0], [1], [0, 0, 1, 1], [], []>} : vector<8x32xbf16>, vector<32x48xbf16>, vector<8x48xf32> -> vector<8x48xf32>
    %213 = vector.extract_strided_slice %1 {offsets = [0, 0], sizes = [1, 48], strides = [1, 1]} : vector<3x48xf32> to vector<1x48xf32>
    %214 = vector.broadcast %213 : vector<1x48xf32> to vector<8x48xf32>
    %215 = arith.addf %212, %214 : vector<8x48xf32>
    %c0_81 = arith.constant 0 : index
    %c0_82 = arith.constant 0 : index
    %216 = vector.load %arg5[%c0_81, %c0_82] : memref<8x48xf32, #tpu.memory_space<vmem>>, vector<8x48xf32>
    %217 = arith.addf %216, %215 : vector<8x48xf32>
    %218 = vector.extract_strided_slice %1 {offsets = [1, 0], sizes = [1, 48], strides = [1, 1]} : vector<3x48xf32> to vector<1x48xf32>
    %219 = vector.extract_strided_slice %1 {offsets = [2, 0], sizes = [1, 48], strides = [1, 1]} : vector<3x48xf32> to vector<1x48xf32>
    %cst_83 = arith.constant dense<0.000000e+00> : vector<8xf32>
    %220 = vector.multi_reduction <add>, %217, %cst_83 [1] : vector<8x48xf32> to vector<8xf32>
    %221 = vector.shape_cast %220 : vector<8xf32> to vector<8x1xf32>
    %cst_84 = arith.constant 4.800000e+01 : f32
    %222 = vector.broadcast %cst_84 : f32 to vector<8x1xf32>
    %223 = arith.divf %221, %222 : vector<8x1xf32>
    %224 = vector.broadcast %223 : vector<8x1xf32> to vector<8x48xf32>
    %225 = arith.subf %217, %224 : vector<8x48xf32>
    %226 = arith.mulf %225, %225 : vector<8x48xf32>
    %cst_85 = arith.constant dense<0.000000e+00> : vector<8xf32>
    %227 = vector.multi_reduction <add>, %226, %cst_85 [1] : vector<8x48xf32> to vector<8xf32>
    %228 = vector.shape_cast %227 : vector<8xf32> to vector<8x1xf32>
    %cst_86 = arith.constant 4.800000e+01 : f32
    %229 = vector.broadcast %cst_86 : f32 to vector<8x1xf32>
    %230 = arith.divf %228, %229 : vector<8x1xf32>
    %cst_87 = arith.constant 9.99999974E-6 : f32
    %231 = vector.broadcast %cst_87 : f32 to vector<8x1xf32>
    %232 = arith.addf %230, %231 : vector<8x1xf32>
    %233 = math.rsqrt %232 : vector<8x1xf32>
    %234 = vector.broadcast %233 : vector<8x1xf32> to vector<8x48xf32>
    %235 = arith.mulf %225, %234 : vector<8x48xf32>
    %236 = vector.broadcast %218 : vector<1x48xf32> to vector<8x48xf32>
    %237 = arith.mulf %235, %236 : vector<8x48xf32>
    %238 = vector.broadcast %219 : vector<1x48xf32> to vector<8x48xf32>
    %239 = arith.addf %237, %238 : vector<8x48xf32>
    %c0_88 = arith.constant 0 : index
    %c0_89 = arith.constant 0 : index
    %240 = vector.load %arg16[%c0_88, %c0_89] : memref<8x48xf32, #tpu.memory_space<vmem>>, vector<8x48xf32>
    tpu.vector_store %arg16[%c0_88, %c0_89], %239 {strides = array<i32>} : memref<8x48xf32, #tpu.memory_space<vmem>>, vector<8x48xf32>,
    return
  }
  func.func @transform_0(%arg0: i32) -> (i32, i32) {
    %c0_i32 = arith.constant 0 : i32
    %c0_i32_0 = arith.constant 0 : i32
    return %arg0, %c0_i32 : i32, i32
  }
  func.func @transform_1(%arg0: i32) -> (i32, i32) {
    %c0_i32 = arith.constant 0 : i32
    %c0_i32_0 = arith.constant 0 : i32
    return %arg0, %c0_i32 : i32, i32
  }
  func.func @transform_2(%arg0: i32) -> (i32, i32) {
    %c0_i32 = arith.constant 0 : i32
    %c0_i32_0 = arith.constant 0 : i32
    return %arg0, %c0_i32 : i32, i32
  }
  func.func @transform_3(%arg0: i32) -> (i32, i32, i32) {
    %c0_i32 = arith.constant 0 : i32
    %c0_i32_0 = arith.constant 0 : i32
    %c0_i32_1 = arith.constant 0 : i32
    return %arg0, %c0_i32, %c0_i32_0 : i32, i32, i32
  }
  func.func @transform_4(%arg0: i32) -> (i32, i32) {
    %c0_i32 = arith.constant 0 : i32
    %c0_i32_0 = arith.constant 0 : i32
    return %arg0, %c0_i32 : i32, i32
  }
  func.func @transform_5(%arg0: i32) -> (i32, i32) {
    %c0_i32 = arith.constant 0 : i32
    %c0_i32_0 = arith.constant 0 : i32
    %c0_i32_1 = arith.constant 0 : i32
    return %c0_i32, %c0_i32_0 : i32, i32
  }
  func.func @transform_6(%arg0: i32) -> (i32, i32) {
    %c0_i32 = arith.constant 0 : i32
    %c0_i32_0 = arith.constant 0 : i32
    %c0_i32_1 = arith.constant 0 : i32
    return %c0_i32, %c0_i32_0 : i32, i32
  }
  func.func @transform_7(%arg0: i32) -> (i32, i32) {
    %c0_i32 = arith.constant 0 : i32
    %c0_i32_0 = arith.constant 0 : i32
    %c0_i32_1 = arith.constant 0 : i32
    return %c0_i32, %c0_i32_0 : i32, i32
  }
  func.func @transform_8(%arg0: i32) -> (i32, i32) {
    %c0_i32 = arith.constant 0 : i32
    %c0_i32_0 = arith.constant 0 : i32
    %c0_i32_1 = arith.constant 0 : i32
    return %c0_i32, %c0_i32_0 : i32, i32
  }
  func.func @transform_9(%arg0: i32) -> (i32, i32) {
    %c0_i32 = arith.constant 0 : i32
    %c0_i32_0 = arith.constant 0 : i32
    %c0_i32_1 = arith.constant 0 : i32
    return %c0_i32, %c0_i32_0 : i32, i32
  }
  func.func @transform_10(%arg0: i32) -> (i32, i32) {
    %c0_i32 = arith.constant 0 : i32
    %c0_i32_0 = arith.constant 0 : i32
    %c0_i32_1 = arith.constant 0 : i32
    return %c0_i32, %c0_i32_0 : i32, i32
  }
  func.func @transform_11(%arg0: i32) -> (i32, i32) {
    %c0_i32 = arith.constant 0 : i32
    %c0_i32_0 = arith.constant 0 : i32
    %c0_i32_1 = arith.constant 0 : i32
    return %c0_i32, %c0_i32_0 : i32, i32
  }
  func.func @transform_12(%arg0: i32) -> (i32, i32) {
    %c0_i32 = arith.constant 0 : i32
    %c0_i32_0 = arith.constant 0 : i32
    %c0_i32_1 = arith.constant 0 : i32
    return %c0_i32, %c0_i32_0 : i32, i32
  }
  func.func @transform_13(%arg0: i32) -> (i32, i32) {
    %c0_i32 = arith.constant 0 : i32
    %c0_i32_0 = arith.constant 0 : i32
    %c0_i32_1 = arith.constant 0 : i32
    return %c0_i32, %c0_i32_0 : i32, i32
  }
  func.func @transform_14(%arg0: i32) -> (i32, i32) {
    %c0_i32 = arith.constant 0 : i32
    %c0_i32_0 = arith.constant 0 : i32
    %c0_i32_1 = arith.constant 0 : i32
    return %c0_i32, %c0_i32_0 : i32, i32
  }
  func.func @transform_15(%arg0: i32) -> (i32, i32) {
    %c0_i32 = arith.constant 0 : i32
    %c0_i32_0 = arith.constant 0 : i32
    return %arg0, %c0_i32 : i32, i32
  }
  func.func @transform_16(%arg0: i32) -> (i32, i32, i32, i32) {
    %c0_i32 = arith.constant 0 : i32
    %c0_i32_0 = arith.constant 0 : i32
    %c0_i32_1 = arith.constant 0 : i32
    %c0_i32_2 = arith.constant 0 : i32
    return %arg0, %c0_i32, %c0_i32_0, %c0_i32_1 : i32, i32, i32, i32
  }
}

module attributes {stable_mosaic.version = 11 : i64} {
  func.func @_wikikg_kernel(%arg0: i32, %arg1: memref<8x32xf32, #tpu.memory_space<vmem>>, %arg2: memref<8x32xf32, #tpu.memory_space<vmem>>, %arg3: memref<8x32xf32, #tpu.memory_space<vmem>>, %arg4: memref<1x1x8xf32, #tpu.memory_space<vmem>>, %arg5: memref<8x48xf32, #tpu.memory_space<vmem>>, %arg6: memref<32x32xbf16, #tpu.memory_space<vmem>>, %arg7: memref<32x32xbf16, #tpu.memory_space<vmem>>, %arg8: memref<32x32xbf16, #tpu.memory_space<vmem>>, %arg9: memref<32x32xbf16, #tpu.memory_space<vmem>>, %arg10: memref<32x64xbf16, #tpu.memory_space<vmem>>, %arg11: memref<64x32xbf16, #tpu.memory_space<vmem>>, %arg12: memref<32x48xbf16, #tpu.memory_space<vmem>>, %arg13: memref<11x32xf32, #tpu.memory_space<vmem>>, %arg14: memref<1x64xf32, #tpu.memory_space<vmem>>, %arg15: memref<3x48xf32, #tpu.memory_space<vmem>>, %arg16: memref<8x48xf32, #tpu.memory_space<vmem>>, %arg17: memref<1x4x8x8xbf16, #tpu.memory_space<vmem>>, %arg18: memref<8x32xf32, #tpu.memory_space<vmem>>) attributes {dimension_semantics = [#tpu.dimension_semantics<parallel>], iteration_bounds = array<i64: 4>, scalar_prefetch = 0 : i64, scratch_operands = 1 : i64, tpu.core_type = #tpu.core_type<tc>, window_params = [{transform_indices = @transform_0, window_bounds = array<i64: 8, 32>}, {transform_indices = @transform_1, window_bounds = array<i64: 8, 32>}, {transform_indices = @transform_2, window_bounds = array<i64: 8, 32>}, {transform_indices = @transform_3, window_bounds = array<i64: 1, 1, 8>}, {transform_indices = @transform_4, window_bounds = array<i64: 8, 48>}, {pipeline_mode = #tpu.pipeline_mode<synchronous>, transform_indices = @transform_5, window_bounds = array<i64: 32, 32>}, {pipeline_mode = #tpu.pipeline_mode<synchronous>, transform_indices = @transform_6, window_bounds = array<i64: 32, 32>}, {pipeline_mode = #tpu.pipeline_mode<synchronous>, transform_indices = @transform_7, window_bounds = array<i64: 32, 32>}, {pipeline_mode = #tpu.pipeline_mode<synchronous>, transform_indices = @transform_8, window_bounds = array<i64: 32, 32>}, {pipeline_mode = #tpu.pipeline_mode<synchronous>, transform_indices = @transform_9, window_bounds = array<i64: 32, 64>}, {pipeline_mode = #tpu.pipeline_mode<synchronous>, transform_indices = @transform_10, window_bounds = array<i64: 64, 32>}, {pipeline_mode = #tpu.pipeline_mode<synchronous>, transform_indices = @transform_11, window_bounds = array<i64: 32, 48>}, {pipeline_mode = #tpu.pipeline_mode<synchronous>, transform_indices = @transform_12, window_bounds = array<i64: 11, 32>}, {pipeline_mode = #tpu.pipeline_mode<synchronous>, transform_indices = @transform_13, window_bounds = array<i64: 1, 64>}, {pipeline_mode = #tpu.pipeline_mode<synchronous>, transform_indices = @transform_14, window_bounds = array<i64: 3, 48>}, {transform_indices = @transform_15, window_bounds = array<i64: 8, 48>}, {transform_indices = @transform_16, window_bounds = array<i64: 1, 4, 8, 8>}]} {
    %c0 = arith.constant 0 : index
    %c0_0 = arith.constant 0 : index
    %0 = vector.load %arg13[%c0, %c0_0] : memref<11x32xf32, #tpu.memory_space<vmem>>, vector<11x32xf32>
    %c0_1 = arith.constant 0 : index
    %c0_2 = arith.constant 0 : index
    %1 = vector.load %arg15[%c0_1, %c0_2] : memref<3x48xf32, #tpu.memory_space<vmem>>, vector<3x48xf32>
    %c0_3 = arith.constant 0 : index
    %c0_4 = arith.constant 0 : index
    %2 = vector.load %arg14[%c0_3, %c0_4] : memref<1x64xf32, #tpu.memory_space<vmem>>, vector<1x64xf32>
    %c0_5 = arith.constant 0 : index
    %c0_6 = arith.constant 0 : index
    %3 = vector.load %arg1[%c0_5, %c0_6] : memref<8x32xf32, #tpu.memory_space<vmem>>, vector<8x32xf32>
    %c0_7 = arith.constant 0 : index
    %c0_8 = arith.constant 0 : index
    %4 = vector.load %arg2[%c0_7, %c0_8] : memref<8x32xf32, #tpu.memory_space<vmem>>, vector<8x32xf32>
    %5 = arith.addf %3, %4 : vector<8x32xf32>
    %6 = vector.extract_strided_slice %0 {offsets = [0, 0], sizes = [1, 32], strides = [1, 1]} : vector<11x32xf32> to vector<1x32xf32>
    %7 = vector.extract_strided_slice %0 {offsets = [1, 0], sizes = [1, 32], strides = [1, 1]} : vector<11x32xf32> to vector<1x32xf32>
    %cst = arith.constant dense<0.000000e+00> : vector<8xf32>
    %8 = vector.multi_reduction <add>, %5, %cst [1] : vector<8x32xf32> to vector<8xf32>
    %9 = vector.shape_cast %8 : vector<8xf32> to vector<8x1xf32>
    %cst_9 = arith.constant 3.200000e+01 : f32
    %10 = vector.broadcast %cst_9 : f32 to vector<8x1xf32>
    %11 = arith.divf %9, %10 : vector<8x1xf32>
    %12 = vector.broadcast %11 : vector<8x1xf32> to vector<8x32xf32>
    %13 = arith.subf %5, %12 : vector<8x32xf32>
    %14 = arith.mulf %13, %13 : vector<8x32xf32>
    %cst_10 = arith.constant dense<0.000000e+00> : vector<8xf32>
    %15 = vector.multi_reduction <add>, %14, %cst_10 [1] : vector<8x32xf32> to vector<8xf32>
    %16 = vector.shape_cast %15 : vector<8xf32> to vector<8x1xf32>
    %cst_11 = arith.constant 3.200000e+01 : f32
    %17 = vector.broadcast %cst_11 : f32 to vector<8x1xf32>
    %18 = arith.divf %16, %17 : vector<8x1xf32>
    %cst_12 = arith.constant 9.99999974E-6 : f32
    %19 = vector.broadcast %cst_12 : f32 to vector<8x1xf32>
    %20 = arith.addf %18, %19 : vector<8x1xf32>
    %21 = math.rsqrt %20 : vector<8x1xf32>
    %22 = vector.broadcast %21 : vector<8x1xf32> to vector<8x32xf32>
    %23 = arith.mulf %13, %22 : vector<8x32xf32>
    %24 = vector.broadcast %6 : vector<1x32xf32> to vector<8x32xf32>
    %25 = arith.mulf %23, %24 : vector<8x32xf32>
    %26 = vector.broadcast %7 : vector<1x32xf32> to vector<8x32xf32>
    %27 = arith.addf %25, %26 : vector<8x32xf32>
    %28 = arith.truncf %27 : vector<8x32xf32> to vector<8x32xbf16>
    %c0_13 = arith.constant 0 : index
    %c0_14 = arith.constant 0 : index
    %29 = vector.load %arg3[%c0_13, %c0_14] : memref<8x32xf32, #tpu.memory_space<vmem>>, vector<8x32xf32>
    %30 = arith.truncf %29 : vector<8x32xf32> to vector<8x32xbf16>
    %c0_15 = arith.constant 0 : index
    %c0_16 = arith.constant 0 : index
    %31 = vector.load %arg6[%c0_15, %c0_16] : memref<32x32xbf16, #tpu.memory_space<vmem>>, vector<32x32xbf16>
    %cst_17 = arith.constant dense<0.000000e+00> : vector<8x32xf32>
    %32 = tpu.matmul %30, %31, %cst_17 {dimension_numbers = #tpu.dot_dimension_numbers<[1], [0], [0], [1], [0, 0, 1, 1], [], []>} : vector<8x32xbf16>, vector<32x32xbf16>, vector<8x32xf32> -> vector<8x32xf32>
    %33 = vector.extract_strided_slice %0 {offsets = [2, 0], sizes = [1, 32], strides = [1, 1]} : vector<11x32xf32> to vector<1x32xf32>
    %34 = vector.broadcast %33 : vector<1x32xf32> to vector<8x32xf32>
    %35 = arith.addf %32, %34 : vector<8x32xf32>
    %c0_18 = arith.constant 0 : index
    %c0_19 = arith.constant 0 : index
    %36 = vector.load %arg7[%c0_18, %c0_19] : memref<32x32xbf16, #tpu.memory_space<vmem>>, vector<32x32xbf16>
    %cst_20 = arith.constant dense<0.000000e+00> : vector<8x32xf32>
    %37 = tpu.matmul %28, %36, %cst_20 {dimension_numbers = #tpu.dot_dimension_numbers<[1], [0], [0], [1], [0, 0, 1, 1], [], []>} : vector<8x32xbf16>, vector<32x32xbf16>, vector<8x32xf32> -> vector<8x32xf32>
    %38 = vector.extract_strided_slice %0 {offsets = [3, 0], sizes = [1, 32], strides = [1, 1]} : vector<11x32xf32> to vector<1x32xf32>
    %39 = vector.broadcast %38 : vector<1x32xf32> to vector<8x32xf32>
    %40 = arith.addf %37, %39 : vector<8x32xf32>
    %c0_21 = arith.constant 0 : index
    %c0_22 = arith.constant 0 : index
    %41 = vector.load %arg8[%c0_21, %c0_22] : memref<32x32xbf16, #tpu.memory_space<vmem>>, vector<32x32xbf16>
    %cst_23 = arith.constant dense<0.000000e+00> : vector<8x32xf32>
    %42 = tpu.matmul %28, %41, %cst_23 {dimension_numbers = #tpu.dot_dimension_numbers<[1], [0], [0], [1], [0, 0, 1, 1], [], []>} : vector<8x32xbf16>, vector<32x32xbf16>, vector<8x32xf32> -> vector<8x32xf32>
    %43 = vector.extract_strided_slice %0 {offsets = [4, 0], sizes = [1, 32], strides = [1, 1]} : vector<11x32xf32> to vector<1x32xf32>
    %44 = vector.broadcast %43 : vector<1x32xf32> to vector<8x32xf32>
    %45 = arith.addf %42, %44 : vector<8x32xf32>
    %46 = arith.truncf %35 : vector<8x32xf32> to vector<8x32xbf16>
    %47 = arith.truncf %40 : vector<8x32xf32> to vector<8x32xbf16>
    %48 = arith.truncf %45 : vector<8x32xf32> to vector<8x32xbf16>
    %49 = vector.extract_strided_slice %46 {offsets = [0, 0], sizes = [8, 8], strides = [1, 1]} : vector<8x32xbf16> to vector<8x8xbf16>
    %50 = vector.extract_strided_slice %46 {offsets = [0, 8], sizes = [8, 8], strides = [1, 1]} : vector<8x32xbf16> to vector<8x8xbf16>
    %51 = vector.extract_strided_slice %46 {offsets = [0, 16], sizes = [8, 8], strides = [1, 1]} : vector<8x32xbf16> to vector<8x8xbf16>
    %52 = vector.extract_strided_slice %46 {offsets = [0, 24], sizes = [8, 8], strides = [1, 1]} : vector<8x32xbf16> to vector<8x8xbf16>
    %53 = vector.extract_strided_slice %47 {offsets = [0, 0], sizes = [8, 8], strides = [1, 1]} : vector<8x32xbf16> to vector<8x8xbf16>
    %54 = vector.extract_strided_slice %47 {offsets = [0, 8], sizes = [8, 8], strides = [1, 1]} : vector<8x32xbf16> to vector<8x8xbf16>
    %55 = vector.extract_strided_slice %47 {offsets = [0, 16], sizes = [8, 8], strides = [1, 1]} : vector<8x32xbf16> to vector<8x8xbf16>
    %56 = vector.extract_strided_slice %47 {offsets = [0, 24], sizes = [8, 8], strides = [1, 1]} : vector<8x32xbf16> to vector<8x8xbf16>
    %57 = vector.extract_strided_slice %48 {offsets = [0, 0], sizes = [8, 8], strides = [1, 1]} : vector<8x32xbf16> to vector<8x8xbf16>
    %58 = vector.extract_strided_slice %48 {offsets = [0, 8], sizes = [8, 8], strides = [1, 1]} : vector<8x32xbf16> to vector<8x8xbf16>
    %59 = vector.extract_strided_slice %48 {offsets = [0, 16], sizes = [8, 8], strides = [1, 1]} : vector<8x32xbf16> to vector<8x8xbf16>
    %60 = vector.extract_strided_slice %48 {offsets = [0, 24], sizes = [8, 8], strides = [1, 1]} : vector<8x32xbf16> to vector<8x8xbf16>
    %c0_24 = arith.constant 0 : index
    %c0_25 = arith.constant 0 : index
    %c0_26 = arith.constant 0 : index
    %61 = vector.load %arg4[%c0_24, %c0_25, %c0_26] : memref<1x1x8xf32, #tpu.memory_space<vmem>>, vector<1x1x8xf32>
    %62 = vector.shape_cast %61 : vector<1x1x8xf32> to vector<1x8xf32>
    %cst_27 = arith.constant 1.000000e+00 : f32
    %63 = vector.broadcast %cst_27 : f32 to vector<1x8xf32>
    %64 = arith.subf %63, %62 : vector<1x8xf32>
    %cst_28 = arith.constant -1.000000e+04 : f32
    %65 = vector.broadcast %cst_28 : f32 to vector<1x8xf32>
    %66 = arith.mulf %64, %65 : vector<1x8xf32>
    %67 = vector.shape_cast %66 : vector<1x8xf32> to vector<1x8xf32>
    %68 = vector.broadcast %67 : vector<1x8xf32> to vector<8x8xf32>
    %cst_29 = arith.constant dense<0.000000e+00> : vector<8x8xf32>
    %69 = tpu.matmul %49, %53, %cst_29 {dimension_numbers = #tpu.dot_dimension_numbers<[1], [1], [0], [0], [0, 0, 1, 0], [], []>} : vector<8x8xbf16>, vector<8x8xbf16>, vector<8x8xf32> -> vector<8x8xf32>
    %70 = arith.addf %69, %68 : vector<8x8xf32>
    %cst_30 = arith.constant dense<0xFF800000> : vector<8xf32>
    %71 = vector.multi_reduction <maximumf>, %70, %cst_30 [1] : vector<8x8xf32> to vector<8xf32>
    %72 = vector.shape_cast %71 : vector<8xf32> to vector<8x1xf32>
    %73 = vector.broadcast %72 : vector<8x1xf32> to vector<8x8xf32>
    %74 = arith.subf %70, %73 : vector<8x8xf32>
    %75 = math.exp %74 : vector<8x8xf32>
    %cst_31 = arith.constant dense<0.000000e+00> : vector<8xf32>
    %76 = vector.multi_reduction <add>, %75, %cst_31 [1] : vector<8x8xf32> to vector<8xf32>
    %77 = vector.shape_cast %76 : vector<8xf32> to vector<8x1xf32>
    %78 = tpu.reciprocal %77 : vector<8x1xf32> -> vector<8x1xf32>
    %79 = vector.broadcast %78 : vector<8x1xf32> to vector<8x8xf32>
    %80 = arith.mulf %75, %79 : vector<8x8xf32>
    %81 = arith.truncf %80 : vector<8x8xf32> to vector<8x8xbf16>
    %cst_32 = arith.constant dense<0.000000e+00> : vector<8x8xf32>
    %82 = tpu.matmul %81, %57, %cst_32 {dimension_numbers = #tpu.dot_dimension_numbers<[1], [0], [0], [1], [0, 0, 1, 1], [], []>} : vector<8x8xbf16>, vector<8x8xbf16>, vector<8x8xf32> -> vector<8x8xf32>
    %c0_33 = arith.constant 0 : index
    %c0_34 = arith.constant 0 : index
    %83 = vector.load %arg18[%c0_33, %c0_34] : memref<8x32xf32, #tpu.memory_space<vmem>>, vector<8x8xf32>
    tpu.vector_store %arg18[%c0_33, %c0_34], %82 {strides = array<i32>} : memref<8x32xf32, #tpu.memory_space<vmem>>, vector<8x8xf32>,
    %cst_35 = arith.constant dense<0.000000e+00> : vector<8x8xf32>
    %84 = tpu.matmul %50, %54, %cst_35 {dimension_numbers = #tpu.dot_dimension_numbers<[1], [1], [0], [0], [0, 0, 1, 0], [], []>} : vector<8x8xbf16>, vector<8x8xbf16>, vector<8x8xf32> -> vector<8x8xf32>
    %85 = arith.addf %84, %68 : vector<8x8xf32>
    %cst_36 = arith.constant dense<0xFF800000> : vector<8xf32>
    %86 = vector.multi_reduction <maximumf>, %85, %cst_36 [1] : vector<8x8xf32> to vector<8xf32>
    %87 = vector.shape_cast %86 : vector<8xf32> to vector<8x1xf32>
    %88 = vector.broadcast %87 : vector<8x1xf32> to vector<8x8xf32>
    %89 = arith.subf %85, %88 : vector<8x8xf32>
    %90 = math.exp %89 : vector<8x8xf32>
    %cst_37 = arith.constant dense<0.000000e+00> : vector<8xf32>
    %91 = vector.multi_reduction <add>, %90, %cst_37 [1] : vector<8x8xf32> to vector<8xf32>
    %92 = vector.shape_cast %91 : vector<8xf32> to vector<8x1xf32>
    %93 = tpu.reciprocal %92 : vector<8x1xf32> -> vector<8x1xf32>
    %94 = vector.broadcast %93 : vector<8x1xf32> to vector<8x8xf32>
    %95 = arith.mulf %90, %94 : vector<8x8xf32>
    %96 = arith.truncf %95 : vector<8x8xf32> to vector<8x8xbf16>
    %cst_38 = arith.constant dense<0.000000e+00> : vector<8x8xf32>
    %97 = tpu.matmul %96, %58, %cst_38 {dimension_numbers = #tpu.dot_dimension_numbers<[1], [0], [0], [1], [0, 0, 1, 1], [], []>} : vector<8x8xbf16>, vector<8x8xbf16>, vector<8x8xf32> -> vector<8x8xf32>
    %c0_39 = arith.constant 0 : index
    %c8 = arith.constant 8 : index
    %98 = vector.load %arg18[%c0_39, %c8] : memref<8x32xf32, #tpu.memory_space<vmem>>, vector<8x8xf32>
    tpu.vector_store %arg18[%c0_39, %c8], %97 {strides = array<i32>} : memref<8x32xf32, #tpu.memory_space<vmem>>, vector<8x8xf32>,
    %cst_40 = arith.constant dense<0.000000e+00> : vector<8x8xf32>
    %99 = tpu.matmul %51, %55, %cst_40 {dimension_numbers = #tpu.dot_dimension_numbers<[1], [1], [0], [0], [0, 0, 1, 0], [], []>} : vector<8x8xbf16>, vector<8x8xbf16>, vector<8x8xf32> -> vector<8x8xf32>
    %100 = arith.addf %99, %68 : vector<8x8xf32>
    %cst_41 = arith.constant dense<0xFF800000> : vector<8xf32>
    %101 = vector.multi_reduction <maximumf>, %100, %cst_41 [1] : vector<8x8xf32> to vector<8xf32>
    %102 = vector.shape_cast %101 : vector<8xf32> to vector<8x1xf32>
    %103 = vector.broadcast %102 : vector<8x1xf32> to vector<8x8xf32>
    %104 = arith.subf %100, %103 : vector<8x8xf32>
    %105 = math.exp %104 : vector<8x8xf32>
    %cst_42 = arith.constant dense<0.000000e+00> : vector<8xf32>
    %106 = vector.multi_reduction <add>, %105, %cst_42 [1] : vector<8x8xf32> to vector<8xf32>
    %107 = vector.shape_cast %106 : vector<8xf32> to vector<8x1xf32>
    %108 = tpu.reciprocal %107 : vector<8x1xf32> -> vector<8x1xf32>
    %109 = vector.broadcast %108 : vector<8x1xf32> to vector<8x8xf32>
    %110 = arith.mulf %105, %109 : vector<8x8xf32>
    %111 = arith.truncf %110 : vector<8x8xf32> to vector<8x8xbf16>
    %cst_43 = arith.constant dense<0.000000e+00> : vector<8x8xf32>
    %112 = tpu.matmul %111, %59, %cst_43 {dimension_numbers = #tpu.dot_dimension_numbers<[1], [0], [0], [1], [0, 0, 1, 1], [], []>} : vector<8x8xbf16>, vector<8x8xbf16>, vector<8x8xf32> -> vector<8x8xf32>
    %c0_44 = arith.constant 0 : index
    %c16 = arith.constant 16 : index
    %113 = vector.load %arg18[%c0_44, %c16] : memref<8x32xf32, #tpu.memory_space<vmem>>, vector<8x8xf32>
    tpu.vector_store %arg18[%c0_44, %c16], %112 {strides = array<i32>} : memref<8x32xf32, #tpu.memory_space<vmem>>, vector<8x8xf32>,
    %cst_45 = arith.constant dense<0.000000e+00> : vector<8x8xf32>
    %114 = tpu.matmul %52, %56, %cst_45 {dimension_numbers = #tpu.dot_dimension_numbers<[1], [1], [0], [0], [0, 0, 1, 0], [], []>} : vector<8x8xbf16>, vector<8x8xbf16>, vector<8x8xf32> -> vector<8x8xf32>
    %115 = arith.addf %114, %68 : vector<8x8xf32>
    %cst_46 = arith.constant dense<0xFF800000> : vector<8xf32>
    %116 = vector.multi_reduction <maximumf>, %115, %cst_46 [1] : vector<8x8xf32> to vector<8xf32>
    %117 = vector.shape_cast %116 : vector<8xf32> to vector<8x1xf32>
    %118 = vector.broadcast %117 : vector<8x1xf32> to vector<8x8xf32>
    %119 = arith.subf %115, %118 : vector<8x8xf32>
    %120 = math.exp %119 : vector<8x8xf32>
    %cst_47 = arith.constant dense<0.000000e+00> : vector<8xf32>
    %121 = vector.multi_reduction <add>, %120, %cst_47 [1] : vector<8x8xf32> to vector<8xf32>
    %122 = vector.shape_cast %121 : vector<8xf32> to vector<8x1xf32>
    %123 = tpu.reciprocal %122 : vector<8x1xf32> -> vector<8x1xf32>
    %124 = vector.broadcast %123 : vector<8x1xf32> to vector<8x8xf32>
    %125 = arith.mulf %120, %124 : vector<8x8xf32>
    %126 = arith.truncf %125 : vector<8x8xf32> to vector<8x8xbf16>
    %cst_48 = arith.constant dense<0.000000e+00> : vector<8x8xf32>
    %127 = tpu.matmul %126, %60, %cst_48 {dimension_numbers = #tpu.dot_dimension_numbers<[1], [0], [0], [1], [0, 0, 1, 1], [], []>} : vector<8x8xbf16>, vector<8x8xbf16>, vector<8x8xf32> -> vector<8x8xf32>
    %c0_49 = arith.constant 0 : index
    %c24 = arith.constant 24 : index
    %128 = vector.load %arg18[%c0_49, %c24] : memref<8x32xf32, #tpu.memory_space<vmem>>, vector<8x8xf32>
    tpu.vector_store %arg18[%c0_49, %c24], %127 {strides = array<i32>} : memref<8x32xf32, #tpu.memory_space<vmem>>, vector<8x8xf32>,
    %129 = vector.shape_cast %80 : vector<8x8xf32> to vector<1x8x8xf32>
    %130 = vector.shape_cast %95 : vector<8x8xf32> to vector<1x8x8xf32>
    %131 = vector.shape_cast %110 : vector<8x8xf32> to vector<1x8x8xf32>
    %132 = vector.shape_cast %125 : vector<8x8xf32> to vector<1x8x8xf32>
    %133 = tpu.concatenate %129, %130, %131, %132 in 0 : vector<1x8x8xf32>, vector<1x8x8xf32>, vector<1x8x8xf32>, vector<1x8x8xf32> -> vector<4x8x8xf32>
    %134 = arith.truncf %133 : vector<4x8x8xf32> to vector<4x8x8xbf16>
    %c0_50 = arith.constant 0 : index
    %c0_51 = arith.constant 0 : index
    %c0_52 = arith.constant 0 : index
    %c0_53 = arith.constant 0 : index
    %135 = vector.load %arg17[%c0_50, %c0_51, %c0_52, %c0_53] : memref<1x4x8x8xbf16, #tpu.memory_space<vmem>>, vector<1x4x8x8xbf16>
    %136 = vector.shape_cast %135 : vector<1x4x8x8xbf16> to vector<4x8x8xbf16>
    %137 = vector.shape_cast %134 : vector<4x8x8xbf16> to vector<1x4x8x8xbf16>
    tpu.vector_store %arg17[%c0_50, %c0_51, %c0_52, %c0_53], %137 {strides = array<i32>} : memref<1x4x8x8xbf16, #tpu.memory_space<vmem>>, vector<1x4x8x8xbf16>,
    %c0_54 = arith.constant 0 : index
    %c0_55 = arith.constant 0 : index
    %138 = vector.load %arg18[%c0_54, %c0_55] : memref<8x32xf32, #tpu.memory_space<vmem>>, vector<8x32xf32>
    %139 = arith.truncf %138 : vector<8x32xf32> to vector<8x32xbf16>
    %c0_56 = arith.constant 0 : index
    %c0_57 = arith.constant 0 : index
    %140 = vector.load %arg9[%c0_56, %c0_57] : memref<32x32xbf16, #tpu.memory_space<vmem>>, vector<32x32xbf16>
    %cst_58 = arith.constant dense<0.000000e+00> : vector<8x32xf32>
    %141 = tpu.matmul %139, %140, %cst_58 {dimension_numbers = #tpu.dot_dimension_numbers<[1], [0], [0], [1], [0, 0, 1, 1], [], []>} : vector<8x32xbf16>, vector<32x32xbf16>, vector<8x32xf32> -> vector<8x32xf32>
    %142 = vector.extract_strided_slice %0 {offsets = [5, 0], sizes = [1, 32], strides = [1, 1]} : vector<11x32xf32> to vector<1x32xf32>
    %143 = vector.broadcast %142 : vector<1x32xf32> to vector<8x32xf32>
    %144 = arith.addf %141, %143 : vector<8x32xf32>
    %145 = arith.addf %144, %29 : vector<8x32xf32>
    %146 = vector.extract_strided_slice %0 {offsets = [6, 0], sizes = [1, 32], strides = [1, 1]} : vector<11x32xf32> to vector<1x32xf32>
    %147 = vector.extract_strided_slice %0 {offsets = [7, 0], sizes = [1, 32], strides = [1, 1]} : vector<11x32xf32> to vector<1x32xf32>
    %cst_59 = arith.constant dense<0.000000e+00> : vector<8xf32>
    %148 = vector.multi_reduction <add>, %145, %cst_59 [1] : vector<8x32xf32> to vector<8xf32>
    %149 = vector.shape_cast %148 : vector<8xf32> to vector<8x1xf32>
    %cst_60 = arith.constant 3.200000e+01 : f32
    %150 = vector.broadcast %cst_60 : f32 to vector<8x1xf32>
    %151 = arith.divf %149, %150 : vector<8x1xf32>
    %152 = vector.broadcast %151 : vector<8x1xf32> to vector<8x32xf32>
    %153 = arith.subf %145, %152 : vector<8x32xf32>
    %154 = arith.mulf %153, %153 : vector<8x32xf32>
    %cst_61 = arith.constant dense<0.000000e+00> : vector<8xf32>
    %155 = vector.multi_reduction <add>, %154, %cst_61 [1] : vector<8x32xf32> to vector<8xf32>
    %156 = vector.shape_cast %155 : vector<8xf32> to vector<8x1xf32>
    %cst_62 = arith.constant 3.200000e+01 : f32
    %157 = vector.broadcast %cst_62 : f32 to vector<8x1xf32>
    %158 = arith.divf %156, %157 : vector<8x1xf32>
    %cst_63 = arith.constant 9.99999996E-13 : f32
    %159 = vector.broadcast %cst_63 : f32 to vector<8x1xf32>
    %160 = arith.addf %158, %159 : vector<8x1xf32>
    %161 = math.rsqrt %160 : vector<8x1xf32>
    %162 = vector.broadcast %161 : vector<8x1xf32> to vector<8x32xf32>
    %163 = arith.mulf %153, %162 : vector<8x32xf32>
    %164 = vector.broadcast %146 : vector<1x32xf32> to vector<8x32xf32>
    %165 = arith.mulf %163, %164 : vector<8x32xf32>
    %166 = vector.broadcast %147 : vector<1x32xf32> to vector<8x32xf32>
    %167 = arith.addf %165, %166 : vector<8x32xf32>
    %168 = arith.truncf %167 : vector<8x32xf32> to vector<8x32xbf16>
    %c0_64 = arith.constant 0 : index
    %c0_65 = arith.constant 0 : index
    %169 = vector.load %arg10[%c0_64, %c0_65] : memref<32x64xbf16, #tpu.memory_space<vmem>>, vector<32x64xbf16>
    %cst_66 = arith.constant dense<0.000000e+00> : vector<8x64xf32>
    %170 = tpu.matmul %168, %169, %cst_66 {dimension_numbers = #tpu.dot_dimension_numbers<[1], [0], [0], [1], [0, 0, 1, 1], [], []>} : vector<8x32xbf16>, vector<32x64xbf16>, vector<8x64xf32> -> vector<8x64xf32>
    %171 = vector.broadcast %2 : vector<1x64xf32> to vector<8x64xf32>
    %172 = arith.addf %170, %171 : vector<8x64xf32>
    %cst_67 = arith.constant 5.000000e-01 : f32
    %173 = vector.broadcast %cst_67 : f32 to vector<8x64xf32>
    %174 = arith.mulf %173, %172 : vector<8x64xf32>
    %cst_68 = arith.constant 0.707106769 : f32
    %175 = vector.broadcast %cst_68 : f32 to vector<8x64xf32>
    %176 = arith.mulf %172, %175 : vector<8x64xf32>
    %177 = math.erf %176 : vector<8x64xf32>
    %cst_69 = arith.constant 1.000000e+00 : f32
    %178 = vector.broadcast %cst_69 : f32 to vector<8x64xf32>
    %179 = arith.addf %178, %177 : vector<8x64xf32>
    %180 = arith.mulf %174, %179 : vector<8x64xf32>
    %181 = arith.truncf %180 : vector<8x64xf32> to vector<8x64xbf16>
    %c0_70 = arith.constant 0 : index
    %c0_71 = arith.constant 0 : index
    %182 = vector.load %arg11[%c0_70, %c0_71] : memref<64x32xbf16, #tpu.memory_space<vmem>>, vector<64x32xbf16>
    %cst_72 = arith.constant dense<0.000000e+00> : vector<8x32xf32>
    %183 = tpu.matmul %181, %182, %cst_72 {dimension_numbers = #tpu.dot_dimension_numbers<[1], [0], [0], [1], [0, 0, 1, 1], [], []>} : vector<8x64xbf16>, vector<64x32xbf16>, vector<8x32xf32> -> vector<8x32xf32>
    %184 = vector.extract_strided_slice %0 {offsets = [8, 0], sizes = [1, 32], strides = [1, 1]} : vector<11x32xf32> to vector<1x32xf32>
    %185 = vector.broadcast %184 : vector<1x32xf32> to vector<8x32xf32>
    %186 = arith.addf %183, %185 : vector<8x32xf32>
    %187 = arith.addf %186, %167 : vector<8x32xf32>
    %188 = vector.extract_strided_slice %0 {offsets = [9, 0], sizes = [1, 32], strides = [1, 1]} : vector<11x32xf32> to vector<1x32xf32>
    %189 = vector.extract_strided_slice %0 {offsets = [10, 0], sizes = [1, 32], strides = [1, 1]} : vector<11x32xf32> to vector<1x32xf32>
    %cst_73 = arith.constant dense<0.000000e+00> : vector<8xf32>
    %190 = vector.multi_reduction <add>, %187, %cst_73 [1] : vector<8x32xf32> to vector<8xf32>
    %191 = vector.shape_cast %190 : vector<8xf32> to vector<8x1xf32>
    %cst_74 = arith.constant 3.200000e+01 : f32
    %192 = vector.broadcast %cst_74 : f32 to vector<8x1xf32>
    %193 = arith.divf %191, %192 : vector<8x1xf32>
    %194 = vector.broadcast %193 : vector<8x1xf32> to vector<8x32xf32>
    %195 = arith.subf %187, %194 : vector<8x32xf32>
    %196 = arith.mulf %195, %195 : vector<8x32xf32>
    %cst_75 = arith.constant dense<0.000000e+00> : vector<8xf32>
    %197 = vector.multi_reduction <add>, %196, %cst_75 [1] : vector<8x32xf32> to vector<8xf32>
    %198 = vector.shape_cast %197 : vector<8xf32> to vector<8x1xf32>
    %cst_76 = arith.constant 3.200000e+01 : f32
    %199 = vector.broadcast %cst_76 : f32 to vector<8x1xf32>
    %200 = arith.divf %198, %199 : vector<8x1xf32>
    %cst_77 = arith.constant 9.99999996E-13 : f32
    %201 = vector.broadcast %cst_77 : f32 to vector<8x1xf32>
    %202 = arith.addf %200, %201 : vector<8x1xf32>
    %203 = math.rsqrt %202 : vector<8x1xf32>
    %204 = vector.broadcast %203 : vector<8x1xf32> to vector<8x32xf32>
    %205 = arith.mulf %195, %204 : vector<8x32xf32>
    %206 = vector.broadcast %188 : vector<1x32xf32> to vector<8x32xf32>
    %207 = arith.mulf %205, %206 : vector<8x32xf32>
    %208 = vector.broadcast %189 : vector<1x32xf32> to vector<8x32xf32>
    %209 = arith.addf %207, %208 : vector<8x32xf32>
    %210 = arith.truncf %209 : vector<8x32xf32> to vector<8x32xbf16>
    %c0_78 = arith.constant 0 : index
    %c0_79 = arith.constant 0 : index
    %211 = vector.load %arg12[%c0_78, %c0_79] : memref<32x48xbf16, #tpu.memory_space<vmem>>, vector<32x48xbf16>
    %cst_80 = arith.constant dense<0.000000e+00> : vector<8x48xf32>
    %212 = tpu.matmul %210, %211, %cst_80 {dimension_numbers = #tpu.dot_dimension_numbers<[1], [0], [0], [1], [0, 0, 1, 1], [], []>} : vector<8x32xbf16>, vector<32x48xbf16>, vector<8x48xf32> -> vector<8x48xf32>
    %213 = vector.extract_strided_slice %1 {offsets = [0, 0], sizes = [1, 48], strides = [1, 1]} : vector<3x48xf32> to vector<1x48xf32>
    %214 = vector.broadcast %213 : vector<1x48xf32> to vector<8x48xf32>
    %215 = arith.addf %212, %214 : vector<8x48xf32>
    %c0_81 = arith.constant 0 : index
    %c0_82 = arith.constant 0 : index
    %216 = vector.load %arg5[%c0_81, %c0_82] : memref<8x48xf32, #tpu.memory_space<vmem>>, vector<8x48xf32>
    %217 = arith.addf %216, %215 : vector<8x48xf32>
    %218 = vector.extract_strided_slice %1 {offsets = [1, 0], sizes = [1, 48], strides = [1, 1]} : vector<3x48xf32> to vector<1x48xf32>
    %219 = vector.extract_strided_slice %1 {offsets = [2, 0], sizes = [1, 48], strides = [1, 1]} : vector<3x48xf32> to vector<1x48xf32>
    %cst_83 = arith.constant dense<0.000000e+00> : vector<8xf32>
    %220 = vector.multi_reduction <add>, %217, %cst_83 [1] : vector<8x48xf32> to vector<8xf32>
    %221 = vector.shape_cast %220 : vector<8xf32> to vector<8x1xf32>
    %cst_84 = arith.constant 4.800000e+01 : f32
    %222 = vector.broadcast %cst_84 : f32 to vector<8x1xf32>
    %223 = arith.divf %221, %222 : vector<8x1xf32>
    %224 = vector.broadcast %223 : vector<8x1xf32> to vector<8x48xf32>
    %225 = arith.subf %217, %224 : vector<8x48xf32>
    %226 = arith.mulf %225, %225 : vector<8x48xf32>
    %cst_85 = arith.constant dense<0.000000e+00> : vector<8xf32>
    %227 = vector.multi_reduction <add>, %226, %cst_85 [1] : vector<8x48xf32> to vector<8xf32>
    %228 = vector.shape_cast %227 : vector<8xf32> to vector<8x1xf32>
    %cst_86 = arith.constant 4.800000e+01 : f32
    %229 = vector.broadcast %cst_86 : f32 to vector<8x1xf32>
    %230 = arith.divf %228, %229 : vector<8x1xf32>
    %cst_87 = arith.constant 9.99999974E-6 : f32
    %231 = vector.broadcast %cst_87 : f32 to vector<8x1xf32>
    %232 = arith.addf %230, %231 : vector<8x1xf32>
    %233 = math.rsqrt %232 : vector<8x1xf32>
    %234 = vector.broadcast %233 : vector<8x1xf32> to vector<8x48xf32>
    %235 = arith.mulf %225, %234 : vector<8x48xf32>
    %236 = vector.broadcast %218 : vector<1x48xf32> to vector<8x48xf32>
    %237 = arith.mulf %235, %236 : vector<8x48xf32>
    %238 = vector.broadcast %219 : vector<1x48xf32> to vector<8x48xf32>
    %239 = arith.addf %237, %238 : vector<8x48xf32>
    %c0_88 = arith.constant 0 : index
    %c0_89 = arith.constant 0 : index
    %240 = vector.load %arg16[%c0_88, %c0_89] : memref<8x48xf32, #tpu.memory_space<vmem>>, vector<8x48xf32>
    tpu.vector_store %arg16[%c0_88, %c0_89], %239 {strides = array<i32>} : memref<8x48xf32, #tpu.memory_space<vmem>>, vector<8x48xf32>,
    return
  }
  func.func @transform_0(%arg0: i32) -> (i32, i32) {
    %c0_i32 = arith.constant 0 : i32
    %c0_i32_0 = arith.constant 0 : i32
    return %arg0, %c0_i32 : i32, i32
  }
  func.func @transform_1(%arg0: i32) -> (i32, i32) {
    %c0_i32 = arith.constant 0 : i32
    %c0_i32_0 = arith.constant 0 : i32
    return %arg0, %c0_i32 : i32, i32
  }
  func.func @transform_2(%arg0: i32) -> (i32, i32) {
    %c0_i32 = arith.constant 0 : i32
    %c0_i32_0 = arith.constant 0 : i32
    return %arg0, %c0_i32 : i32, i32
  }
  func.func @transform_3(%arg0: i32) -> (i32, i32, i32) {
    %c0_i32 = arith.constant 0 : i32
    %c0_i32_0 = arith.constant 0 : i32
    %c0_i32_1 = arith.constant 0 : i32
    return %arg0, %c0_i32, %c0_i32_0 : i32, i32, i32
  }
  func.func @transform_4(%arg0: i32) -> (i32, i32) {
    %c0_i32 = arith.constant 0 : i32
    %c0_i32_0 = arith.constant 0 : i32
    return %arg0, %c0_i32 : i32, i32
  }
  func.func @transform_5(%arg0: i32) -> (i32, i32) {
    %c0_i32 = arith.constant 0 : i32
    %c0_i32_0 = arith.constant 0 : i32
    %c0_i32_1 = arith.constant 0 : i32
    return %c0_i32, %c0_i32_0 : i32, i32
  }
  func.func @transform_6(%arg0: i32) -> (i32, i32) {
    %c0_i32 = arith.constant 0 : i32
    %c0_i32_0 = arith.constant 0 : i32
    %c0_i32_1 = arith.constant 0 : i32
    return %c0_i32, %c0_i32_0 : i32, i32
  }
  func.func @transform_7(%arg0: i32) -> (i32, i32) {
    %c0_i32 = arith.constant 0 : i32
    %c0_i32_0 = arith.constant 0 : i32
    %c0_i32_1 = arith.constant 0 : i32
    return %c0_i32, %c0_i32_0 : i32, i32
  }
  func.func @transform_8(%arg0: i32) -> (i32, i32) {
    %c0_i32 = arith.constant 0 : i32
    %c0_i32_0 = arith.constant 0 : i32
    %c0_i32_1 = arith.constant 0 : i32
    return %c0_i32, %c0_i32_0 : i32, i32
  }
  func.func @transform_9(%arg0: i32) -> (i32, i32) {
    %c0_i32 = arith.constant 0 : i32
    %c0_i32_0 = arith.constant 0 : i32
    %c0_i32_1 = arith.constant 0 : i32
    return %c0_i32, %c0_i32_0 : i32, i32
  }
  func.func @transform_10(%arg0: i32) -> (i32, i32) {
    %c0_i32 = arith.constant 0 : i32
    %c0_i32_0 = arith.constant 0 : i32
    %c0_i32_1 = arith.constant 0 : i32
    return %c0_i32, %c0_i32_0 : i32, i32
  }
  func.func @transform_11(%arg0: i32) -> (i32, i32) {
    %c0_i32 = arith.constant 0 : i32
    %c0_i32_0 = arith.constant 0 : i32
    %c0_i32_1 = arith.constant 0 : i32
    return %c0_i32, %c0_i32_0 : i32, i32
  }
  func.func @transform_12(%arg0: i32) -> (i32, i32) {
    %c0_i32 = arith.constant 0 : i32
    %c0_i32_0 = arith.constant 0 : i32
    %c0_i32_1 = arith.constant 0 : i32
    return %c0_i32, %c0_i32_0 : i32, i32
  }
  func.func @transform_13(%arg0: i32) -> (i32, i32) {
    %c0_i32 = arith.constant 0 : i32
    %c0_i32_0 = arith.constant 0 : i32
    %c0_i32_1 = arith.constant 0 : i32
    return %c0_i32, %c0_i32_0 : i32, i32
  }
  func.func @transform_14(%arg0: i32) -> (i32, i32) {
    %c0_i32 = arith.constant 0 : i32
    %c0_i32_0 = arith.constant 0 : i32
    %c0_i32_1 = arith.constant 0 : i32
    return %c0_i32, %c0_i32_0 : i32, i32
  }
  func.func @transform_15(%arg0: i32) -> (i32, i32) {
    %c0_i32 = arith.constant 0 : i32
    %c0_i32_0 = arith.constant 0 : i32
    return %arg0, %c0_i32 : i32, i32
  }
  func.func @transform_16(%arg0: i32) -> (i32, i32, i32, i32) {
    %c0_i32 = arith.constant 0 : i32
    %c0_i32_0 = arith.constant 0 : i32
    %c0_i32_1 = arith.constant 0 : i32
    %c0_i32_2 = arith.constant 0 : i32
    return %arg0, %c0_i32, %c0_i32_0, %c0_i32_1 : i32, i32, i32, i32
  }
}

</mosaic_0001>

<bundles_post_ra>
// kernel: tpu_custom_call.1
= control target key start
LH: loop header
LB: loop body
LE: loop exit
PB: predicated region body
PF: predicated region fallthrough
CT: control target
= control target key end

     0   :  { %s3587_s0 = inlined_call_operand.vmem [shape: f32[32,32], index: 0, kind: input, shape index: {}]   ;;  %s3588_s1 = inlined_call_operand.hbm [shape: f32[32,32], index: 1, kind: input, shape index: {}]   ;;  %s3589_s2 = inlined_call_operand.hbm [shape: f32[32,32], index: 2, kind: input, shape index: {}]   ;;  %s3590_s3 = inlined_call_operand.hbm [shape: f32[4,1,8], index: 3, kind: input, shape index: {}]   ;;  %s3591_s4 = inlined_call_operand.hbm [shape: f32[32,48], index: 4, kind: input, shape index: {}]   ;;  %s3592_s5 = inlined_call_operand.vmem [shape: bf16[32,32], index: 5, kind: input, shape index: {}]   ;;  %s3593_s6 = inlined_call_operand.hbm [shape: bf16[32,32], index: 6, kind: input, shape index: {}]   ;;  %s3594_s7 = inlined_call_operand.hbm [shape: bf16[32,32], index: 7, kind: input, shape index: {}]   ;;  %s3595_s8 = inlined_call_operand.hbm [shape: bf16[32,32], index: 8, kind: input, shape index: {}]   ;;  %s3596_s9 = inlined_call_operand.vmem [shape: bf16[32,64], index: 9, kind: input, shape index: {}]   ;;  %s3597_s10 = inlined_call_operand.vmem [shape: bf16[64,32], index: 10, kind: input, shape index: {}]   ;;  %s3598_s11 = inlined_call_operand.hbm [shape: bf16[32,48], index: 11, kind: input, shape index: {}]   ;;  %s3599_s12 = inlined_call_operand.hbm [shape: f32[11,32], index: 12, kind: input, shape index: {}]   ;;  %s3600_s13 = inlined_call_operand.vmem [shape: f32[1,64], index: 13, kind: input, shape index: {}]   ;;  %s3601_s14 = inlined_call_operand.vmem [shape: f32[3,48], index: 14, kind: input, shape index: {}]   ;;  %s3602_s15 = inlined_call_operand.hbm [shape: f32[32,48], index: 15, kind: output, shape index: {0}]   ;;  %s3603_s16 = inlined_call_operand.hbm [shape: bf16[4,4,8,8], index: 16, kind: output, shape index: {1}]  }
   0x1   :  { %3629 = sst [smem:[#allocation35_spill]] %s3587_s0 }
   0x2   :  { %3630 = sst [smem:[#allocation36_spill]] %s3589_s2 }
   0x3   :  { %3631 = sst [smem:[#allocation37_spill]] %s3592_s5 }
   0x4   :  { %3632 = sst [smem:[#allocation38_spill]] %s3593_s6 }
   0x5   :  { %3633 = sst [smem:[#allocation39_spill]] %s3594_s7 }
   0x6   :  { %3634 = sst [smem:[#allocation40_spill]] %s3596_s9 }
   0x7   :  { %3635 = sst [smem:[#allocation41_spill]] %s3597_s10 }
   0x8   :  { %3636 = sst [smem:[#allocation42_spill]] %s3598_s11 }
   0x9   :  { %3637 = sst [smem:[#allocation43_spill]] %s3600_s13 }
   0xa   :  { %3638 = sst [smem:[#allocation44_spill]] %s3601_s14 }
   0xb   :  { %3639 = sst [smem:[#allocation45_spill]] %s3602_s15 }
   0xc   :  { %3640 = sst [smem:[#allocation46_spill]] %s3603_s16 }
   0xd   :  { %22 = vsyncpa [#allocation4], 0 }
   0xe   :  { %24 = vsyncpa [#allocation4 + $0x1], 0 }
   0xf   :  { %25 = vsyncpa [#allocation7], 0 }
  0x10   :  { %27 = vsyncpa [#allocation7 + $0x1], 0 }
  0x11   :  { %28 = vsyncpa [#allocation10], 0 }
  0x12   :  { %30 = vsyncpa [#allocation10 + $0x1], 0 }
  0x13   :  { %31 = vsyncpa [#allocation13], 0 }
  0x14   :  { %32 = vsyncpa [#allocation16], 0 }
  0x15   :  { %33 = vsyncpa [#allocation5], 0 }
  0x16   :  { %35 = vsyncpa [#allocation5 + $0x1], 0 }
  0x17   :  { %36 = vsyncpa [#allocation20], 0 }
  0x18   :  { %38 = vsyncpa [#allocation20 + $0x1], 0  ;;  %s2932_s21 = smov 0   ;;  %s2934_s22 = smov 0  }
  0x19   :  { %s2936_s23 = smov 0   ;;  %s2938_s24 = smov 0  }
  0x1a LB: > { %3641 = sst [smem:[#allocation29_spill]] %s2808_s21  ;;  %s2822_s25 = smov [#allocation11]   ;;  %s2820_s24 = sphi %s2938_s24, %s3690_s24   ;;  %s2816_s23 = sphi %s2936_s23, %s3692_s23   ;;  %s2812_s22 = sphi %s2934_s22, %s3694_s22   ;;  %s2808_s21 = sphi %s2932_s21, %s3693_s21  }
  0x1b   : > { %3642 = sst [smem:[#allocation30_spill]] %s2816_s23  ;;  %s456_s26 = sshll.u32 %s2822_s25, 4  ;;  %s2958_s26 = int_to_ptr.vmem [resolvable:$true] %s456_s26 }
  0x1c   : > { %s2953_s27 = sadd.s32 4294967295, %s2820_s24   ;;  %p2056_p0 = scmp.ge.s32.totalorder %s2820_s24, 1 }
  0x1d   : > { %p3615_p1 = scmp.eq.s32.totalorder %s2953_s27, 0  ;;  %p441_p2 = scmp.lt.s32.totalorder %s2820_s24, 5 }
  0x1e   : > { %s2823_s29 = smov [#allocation12]   ;;  %s2824_s17 = smov [#allocation15]  }
  0x1f   : > { %p2960_p3 = pnand %p2056_p0, %p441_p2  ;;  %s469_s30 = sshll.u32 %s2823_s29, 4  ;;  %s2972_s30 = int_to_ptr.vmem [resolvable:$true] %s469_s30 }
  0x20   : > { %s501_s18 = sshll.u32 %s2824_s17, 4  ;;  %s3645_s6 = sld [smem:[#allocation38_spill]]  ;;  %s2974_s18 = int_to_ptr.vmem [resolvable:$true] %s501_s18 }
  0x21   : > { %s3643_s28 = scalar_select %p2960_p3, 1, 0 }
  0x22   : > { %p2301_p4 = pneg %p2960_p3 }
  0x24   : > { %p2968_p5 = pnand %p2301_p4, %p3615_p1 }
  0x26   : > { %s3644_s0 = scalar_select %p2968_p5, 1, 0 }
  0x27   : > { %s2442_s25 = scalar_lea.hbm %s3645_s6, 256  ;;  %p2984_p7 = pneg %p2968_p5 }
  0x28   : > { %p2443_p6 = scmp.ne.s32.totalorder %s3645_s6, %s2442_s25  ;;  %p2449_p10 = scmp.lt.u32.totalorder %s2442_s25, %s3645_s6 }
  0x29   : > { %s3646_s29 = scalar_select %p2984_p7, 1, 0 }
  0x2a   : > { %p2445_p8 = pnand %p2984_p7, %p2443_p6 }
  0x2c   : > { %p2446_p9 = pneg %p2445_p8 }
  0x2e   : > { %p2451_p11 = pnand %p2449_p10, %p2446_p9 }
  0x30   : > { %2454 = shalt.err (!%p2451_p11)
}
  0x31   : > { %s2455_s15 = scalar_lea.vmem %s2958_s26, 256  ;;  %p2463_p2 = scmp.lt.s32.totalorder %s2958_s26, %s2958_s26 }
  0x32   : > { %p2456_p12 = scmp.ne.s32.totalorder %s2958_s26, %s2455_s15  ;;  %p2464_p4 = scmp.lt.s32.totalorder %s2455_s15, %s2455_s15 }
  0x34   : > { %p2458_p13 = pnand %p2456_p12, %p2984_p7  ;;  %p2465_p6 = por %p2464_p4, %p2463_p2 }
  0x36   : > { %p2459_p0 = pneg %p2458_p13 }
  0x38   : > { %p2466_p8 = pnand %p2465_p6, %p2459_p0 }
  0x3a   : > { %2469 = shalt.err (!%p2466_p8)
}
  0x3b   : > { %s3610_s16 = smov 64   ;;  %s3611_s14 = smov 4  }
  0x3c   : > { %2304 = dma.hbm_to_vmem [thread:$0]  (!%p2968_p5), %s3645_s6, 256, %s2958_s26, [#allocation10], %s3610_s16, %s3610_s16, %s3611_s14  }
  0x3d   : > { %s3647_s7 = sld [smem:[#allocation39_spill]] }
  0x43   : > { %s2470_s15 = scalar_lea.hbm %s3647_s7, 256 }
  0x44   : > { %p2471_p9 = scmp.ne.s32.totalorder %s3647_s7, %s2470_s15  ;;  %p2477_p12 = scmp.lt.u32.totalorder %s2470_s15, %s3647_s7 }
  0x46   : > { %p2473_p10 = pnand %p2471_p9, %p2984_p7 }
  0x48   : > { %p2474_p11 = pneg %p2473_p10 }
  0x4a   : > { %p2479_p13 = pnand %p2477_p12, %p2474_p11 }
  0x4c   : > { %2482 = shalt.err (!%p2479_p13)
}
  0x4d   : > { %s2483_s26 = scalar_lea.vmem %s2972_s30, 256  ;;  %p2491_p6 = scmp.lt.s32.totalorder %s2972_s30, %s2972_s30 }
  0x4e   : > { %p2484_p0 = scmp.ne.s32.totalorder %s2972_s30, %s2483_s26  ;;  %p2492_p8 = scmp.lt.s32.totalorder %s2483_s26, %s2483_s26 }
  0x50   : > { %p2486_p2 = pnand %p2484_p0, %p2984_p7  ;;  %p2493_p9 = por %p2492_p8, %p2491_p6 }
  0x52   : > { %p2487_p4 = pneg %p2486_p2 }
  0x54   : > { %p2494_p10 = pnand %p2493_p9, %p2487_p4 }
  0x56   : > { %2497 = shalt.err (!%p2494_p10)
}
  0x57   : > { %2307 = dma.hbm_to_vmem [thread:$0]  (!%p2968_p5), %s3647_s7, 256, %s2972_s30, [#allocation13], %s3610_s16, %s3610_s16, %s3611_s14  }
  0x58   : > { %s3648_s11 = sld [smem:[#allocation42_spill]] }
  0x5e   : > { %s2498_s19 = scalar_lea.hbm %s3648_s11, 256 }
  0x5f   : > { %p2499_p11 = scmp.ne.s32.totalorder %s3648_s11, %s2498_s19  ;;  %p2505_p0 = scmp.lt.u32.totalorder %s2498_s19, %s3648_s11 }
  0x61   : > { %p2501_p12 = pnand %p2499_p11, %p2984_p7 }
  0x63   : > { %p2502_p13 = pneg %p2501_p12 }
  0x65   : > { %p2507_p2 = pnand %p2505_p0, %p2502_p13 }
  0x67   : > { %2510 = shalt.err (!%p2507_p2)
}
  0x68   : > { %s2511_s30 = scalar_lea.vmem %s2974_s18, 256  ;;  %p2519_p9 = scmp.lt.s32.totalorder %s2974_s18, %s2974_s18 }
  0x69   : > { %p2512_p4 = scmp.ne.s32.totalorder %s2974_s18, %s2511_s30  ;;  %p2520_p10 = scmp.lt.s32.totalorder %s2511_s30, %s2511_s30 }
  0x6b   : > { %p2514_p6 = pnand %p2512_p4, %p2984_p7  ;;  %p2521_p11 = por %p2520_p10, %p2519_p9 }
  0x6d   : > { %p2515_p8 = pneg %p2514_p6 }
  0x6f   : > { %p2522_p12 = pnand %p2521_p11, %p2515_p8 }
  0x71   : > { %2525 = shalt.err (!%p2522_p12)
}
  0x72   : > { %2313 = dma.hbm_to_vmem [thread:$0]  (!%p2968_p5), %s3648_s11, 256, %s2974_s18, [#allocation16], %s3610_s16, %s3610_s16, %s3611_s14  }
  0x73   : > { %s2055_s9 = sadd.s32 4294967294, %s2820_s24   ;;  %s3062_s10 = sadd.s32 1, %s2820_s24  }
  0x74   : > { %3649 = sst [smem:[#allocation31_spill]] %s3062_s10  ;;  %s77_s13 = sadd.s32 1, %s2816_s23 }
  0x75   : > { %s74_s19 = ssub.s32 %s2820_s24, %s3062_s10  ;;  %p84_p13 = scmp.ne.s32.totalorder %s2816_s23, %s2812_s22 }
  0x76   : > { %p75_p0 = scmp.eq.s32.totalorder %s74_s19, 0  ;;  %p85_p2 = scmp.eq.s32.totalorder %s2820_s24, 0 }
  0x77   : > { %p90_p4 = scmp.ne.s32.totalorder %s2812_s22, %s2808_s21  ;;  %p402_p6 = scmp.eq.s32.totalorder %s2953_s27, 3 }
  0x78   : > { %s3074_s20 = scalar_select %p75_p0, %s2816_s23, %s77_s13  }
  0x79   : > { %p86_p8 = por %p85_p2, %p84_p13  ;;  %p3078_p9 = por %p3615_p1, %p90_p4 }
  0x7a   : > { %3650 = sst [smem:[#allocation32_spill]] %s3074_s20  ;;  %p3082_p10 = por %p402_p6, %p84_p13 }
  0x7b   : > { %s3651_s18 = scalar_select %p3078_p9, 1, 0 }
  0x7c   : > { %s3652_s25 = scalar_select %p3082_p10, 1, 0 }
  0x7d   : > { %p408_p11 = scmp.eq.s32.totalorder %s2055_s9, 3  ;;  %p2342_p12 = scmp.lt.s32.totalorder %s2820_s24, 4 }
  0x7e   : > { %3653 = sst [smem:[#allocation33_spill]] %s3652_s25  ;;  %s3088_s17 = sand.u32 1, %s2816_s23  }
  0x7f   : > { %p3090_p3 = por %p408_p11, %p90_p4  ;;  %s3095_s30 = sshll.u32 %s3088_s17, 3 }
  0x80   : > { %s3098_s26 = sshll.u32 %s2820_s24, 7  ;;  %p3100_p0 = pnand %p2342_p12, %p86_p8 }
  0x81   : > { %s3654_s15 = scalar_select %p3090_p3, 1, 0 }
  0x82   : > { %s3656_s5 = scalar_select %p3100_p0, 1, 0 }
  0x83   : > { %3655 = sst [smem:[#allocation34_spill]] %s3654_s15  ;;  %s3617_s9 = sand.u32 1, %s2820_s24  }
  0x84   : > { %s3657_s2 = sld [smem:[#allocation36_spill]]  ;;  %s563_s14 = scalar_lea.vmem [#allocation6], %s3095_s30 }
  0x85   : > { %s570_s6 = sshll.u32 %s563_s14, 4  ;;  %s3116_s7 = scalar_lea.sflag [#allocation7], %s3617_s9  ;;  %s3112_s6 = int_to_ptr.vmem [resolvable:$true] %s570_s6 }
  0x86   : > { %p3122_p2 = pneg %p3100_p0 }
  0x8a   : > { %s3109_s16 = scalar_lea.hbm %s3657_s2, %s3098_s26  ;;  %s2531_s14 = scalar_lea.hbm %s3657_s2, 512 }
  0x8b   : > { %s2526_s11 = scalar_lea.hbm %s3109_s16, 128  ;;  %p2532_p8 = scmp.lt.u32.totalorder %s3109_s16, %s3657_s2 }
  0x8c   : > { %p2527_p13 = scmp.ne.s32.totalorder %s3109_s16, %s2526_s11  ;;  %p2533_p11 = scmp.lt.u32.totalorder %s2531_s14, %s2526_s11 }
  0x8d   : > { %p2535_p1 = scmp.lt.u32.totalorder %s2526_s11, %s3109_s16 }
  0x8e   : > { %p2529_p4 = pnand %p3122_p2, %p2527_p13  ;;  %p2534_p12 = por %p2533_p11, %p2532_p8 }
  0x90   : > { %p2530_p6 = pneg %p2529_p4  ;;  %p2536_p3 = por %p2535_p1, %p2534_p12 }
  0x92   : > { %p2537_p10 = pnand %p2536_p3, %p2530_p6 }
  0x94   : > { %2540 = shalt.err (!%p2537_p10)
}
  0x95   : > { %s2541_s9 = scalar_lea.vmem %s3112_s6, 128  ;;  %s2827_s13 = smov [#allocation6]  }
  0x96   : > { %p2542_p13 = scmp.ne.s32.totalorder %s3112_s6, %s2541_s9  ;;  %s2546_s19 = sshll.u32 %s2827_s13, 4  ;;  %s2547_s19 = int_to_ptr.vmem [resolvable:$false] %s2546_s19 }
  0x97   : > { %s2548_s23 = scalar_lea.vmem %s2547_s19, 256  ;;  %p2549_p5 = scmp.lt.s32.totalorder %s3112_s6, %s2547_s19 }
  0x98   : > { %p2544_p4 = pnand %p2542_p13, %p3122_p2  ;;  %p2550_p7 = scmp.lt.s32.totalorder %s2548_s23, %s2541_s9 }
  0x9a   : > { %p2545_p9 = pneg %p2544_p4  ;;  %p2551_p8 = por %p2550_p7, %p2549_p5 }
  0x9c   : > { %p2552_p11 = pnand %p2551_p8, %p2545_p9 }
  0x9e   : > { %2555 = shalt.err (!%p2552_p11)
}
  0x9f   : > { %2323 = dma.hbm_to_vmem [thread:$0]  (!%p3100_p0), %s3109_s16, 128, %s3112_s6, %s3116_s7  }
  0xa0   : > { %s2828_s11 = smov [#allocation14]   ;;  %s2829_s14 = smov [#allocation17]  }
  0xa1   : > { %s482_s10 = sshll.u32 %s2828_s11, 4  ;;  %s514_s2 = sshll.u32 %s2829_s14, 4  ;;  %s483_s10 = int_to_ptr.vmem [resolvable:$true] %s482_s10  ;;  %s3146_s2 = int_to_ptr.vmem [resolvable:$true] %s514_s2 }
  0xa2   : > { %s2556_s9 = scalar_lea.hbm %s3595_s8, 256  ;;  %p3659_p3 = scmp.ne.s32.totalorder %s3646_s29, 0 }
  0xa3   : > { %p2557_p1 = scmp.ne.s32.totalorder %s3595_s8, %s2556_s9  ;;  %p2563_p9 = scmp.lt.u32.totalorder %s2556_s9, %s3595_s8 }
  0xa5   : > { %p2559_p5 = pnand %p2557_p1, %p3659_p3 }
  0xa7   : > { %p2560_p7 = pneg %p2559_p5 }
  0xa9   : > { %p2565_p10 = pnand %p2563_p9, %p2560_p7 }
  0xab   : > { %2568 = shalt.err (!%p2565_p10)
}
  0xac   : > { %s2569_s16 = scalar_lea.vmem %s483_s10, 256  ;;  %p2577_p4 = scmp.lt.s32.totalorder %s483_s10, %s483_s10 }
  0xad   : > { %p2570_p6 = scmp.ne.s32.totalorder %s483_s10, %s2569_s16  ;;  %p2578_p8 = scmp.lt.s32.totalorder %s2569_s16, %s2569_s16 }
  0xaf   : > { %p2572_p12 = pnand %p2570_p6, %p3659_p3  ;;  %p2579_p11 = por %p2578_p8, %p2577_p4 }
  0xb1   : > { %p2573_p13 = pneg %p2572_p12 }
  0xb3   : > { %p2580_p0 = pnand %p2579_p11, %p2573_p13 }
  0xb5   : > { %2583 = shalt.err (!%p2580_p0)
}
  0xb6   : > { %p3660_p1 = scmp.ne.s32.totalorder %s3644_s0, 0  ;;  %s3661_s15 = smov 4  }
  0xb7   : > { %s3662_s11 = smov 64   ;;  %s2584_s9 = scalar_lea.hbm %s3599_s12, 256 }
  0xb8   : > { %2310 = dma.hbm_to_vmem [thread:$0]  (!%p3660_p1), %s3595_s8, 256, %s483_s10, [#allocation13], %s3662_s11, %s3662_s11, %s3661_s15  }
  0xb9   : > { %p2585_p5 = scmp.ne.s32.totalorder %s3599_s12, %s2584_s9  ;;  %p2591_p9 = scmp.lt.u32.totalorder %s2584_s9, %s3599_s12 }
  0xbb   : > { %p2587_p0 = pnand %p2585_p5, %p3659_p3 }
  0xbd   : > { %p2588_p7 = pneg %p2587_p0 }
  0xbf   : > { %p2593_p10 = pnand %p2591_p9, %p2588_p7 }
  0xc1   : > { %2596 = shalt.err (!%p2593_p10)
}
  0xc2   : > { %s2597_s10 = scalar_lea.vmem %s3146_s2, 256  ;;  %p2605_p4 = scmp.lt.s32.totalorder %s3146_s2, %s3146_s2 }
  0xc3   : > { %p2598_p6 = scmp.ne.s32.totalorder %s3146_s2, %s2597_s10  ;;  %p2606_p8 = scmp.lt.s32.totalorder %s2597_s10, %s2597_s10 }
  0xc5   : > { %p2600_p12 = pnand %p2598_p6, %p3659_p3  ;;  %p2607_p11 = por %p2606_p8, %p2605_p4 }
  0xc7   : > { %p2601_p13 = pneg %p2600_p12 }
  0xc9   : > { %p2608_p5 = pnand %p2607_p11, %p2601_p13 }
  0xcb   : > { %2611 = shalt.err (!%p2608_p5)
}
  0xcc   : > { %s2830_s15 = smov 128   ;;  %s2831_s25 = smov 8  }
  0xcd   : > { %2316 = dma.hbm_to_vmem [thread:$0]  (!%p3660_p1), %s3599_s12, 256, %s3146_s2, [#allocation16], %s2830_s15, %s2830_s15, %s2831_s25  }
  0xce   : > { %s3196_s13 = scalar_lea.hbm %s3588_s1, %s3098_s26  ;;  %s545_s19 = scalar_lea.vmem [#allocation3], %s3095_s30 }
  0xcf   : > { %s552_s9 = sshll.u32 %s545_s19, 4  ;;  %s542_s23 = scalar_lea.sflag [#allocation4], %s3088_s17  ;;  %s553_s9 = int_to_ptr.vmem [resolvable:$true] %s552_s9 }
  0xd0   : > { %s2612_s6 = scalar_lea.hbm %s3196_s13, 128  ;;  %s2617_s16 = scalar_lea.hbm %s3588_s1, 512 }
  0xd1   : > { %p2613_p3 = scmp.ne.s32.totalorder %s3196_s13, %s2612_s6  ;;  %p2618_p1 = scmp.lt.u32.totalorder %s3196_s13, %s3588_s1 }
  0xd2   : > { %p2619_p9 = scmp.lt.u32.totalorder %s2617_s16, %s2612_s6  ;;  %p2621_p6 = scmp.lt.u32.totalorder %s2612_s6, %s3196_s13 }
  0xd3   : > { %p2615_p0 = pnand %p2613_p3, %p3122_p2 }
  0xd4   : > { %p2620_p10 = por %p2619_p9, %p2618_p1 }
  0xd5   : > { %p2616_p7 = pneg %p2615_p0 }
  0xd6   : > { %p2622_p12 = por %p2621_p6, %p2620_p10 }
  0xd8   : > { %p2623_p13 = pnand %p2622_p12, %p2616_p7 }
  0xda   : > { %2626 = shalt.err (!%p2623_p13)
}
  0xdb   : > { %s2627_s25 = scalar_lea.vmem %s553_s9, 128  ;;  %s2832_s11 = smov [#allocation3]  }
  0xdc   : > { %p2628_p4 = scmp.ne.s32.totalorder %s553_s9, %s2627_s25  ;;  %s2632_s21 = sshll.u32 %s2832_s11, 4  ;;  %s2633_s21 = int_to_ptr.vmem [resolvable:$false] %s2632_s21 }
  0xdd   : > { %s2634_s29 = scalar_lea.vmem %s2633_s21, 256  ;;  %p2635_p5 = scmp.lt.s32.totalorder %s553_s9, %s2633_s21 }
  0xde   : > { %p2630_p8 = pnand %p2628_p4, %p3122_p2  ;;  %p2636_p3 = scmp.lt.s32.totalorder %s2634_s29, %s2627_s25 }
  0xe0   : > { %p2631_p11 = pneg %p2630_p8  ;;  %p2637_p0 = por %p2636_p3, %p2635_p5 }
  0xe2   : > { %p2638_p1 = pnand %p2637_p0, %p2631_p11 }
  0xe4   : > { %2641 = shalt.err (!%p2638_p1)
}
  0xe5   : > { %p3663_p9 = scmp.ne.s32.totalorder %s3656_s5, 0  ;;  %s2067_s14 = sshll.u32 %s2820_s24, 4 }
  0xe6   : > { %s580_s19 = scalar_lea.vmem [#allocation8], %s3088_s17  ;;  %s585_s16 = scalar_lea.hbm %s3590_s3, %s2067_s14 }
  0xe7   : > { %2320 = dma.hbm_to_vmem [thread:$0]  (!%p3663_p9), %s3196_s13, 128, %s553_s9, %s542_s23  }
  0xe8   : > { %s587_s6 = sshll.u32 %s580_s19, 4  ;;  %s2642_s10 = scalar_lea.hbm %s585_s16, 16  ;;  %s588_s6 = int_to_ptr.vmem [resolvable:$true] %s587_s6 }
  0xe9   : > { %p2643_p7 = scmp.ne.s32.totalorder %s585_s16, %s2642_s10  ;;  %s2647_s11 = scalar_lea.hbm %s3590_s3, 64 }
  0xea   : > { %p2648_p12 = scmp.lt.u32.totalorder %s585_s16, %s3590_s3  ;;  %p2649_p13 = scmp.lt.u32.totalorder %s2647_s11, %s2642_s10 }
  0xeb   : > { %p2645_p10 = pnand %p2643_p7, %p3122_p2  ;;  %p2651_p8 = scmp.lt.u32.totalorder %s2642_s10, %s585_s16 }
  0xec   : > { %p2650_p4 = por %p2649_p13, %p2648_p12 }
  0xed   : > { %p2646_p6 = pneg %p2645_p10 }
  0xee   : > { %p2652_p11 = por %p2651_p8, %p2650_p4 }
  0xf0   : > { %p2653_p5 = pnand %p2652_p11, %p2646_p6 }
  0xf2   : > { %2656 = shalt.err (!%p2653_p5)
}
  0xf3   : > { %s2657_s17 = scalar_lea.vmem %s588_s6, 16  ;;  %s2833_s13 = smov [#allocation8]  }
  0xf4   : > { %p2658_p3 = scmp.ne.s32.totalorder %s588_s6, %s2657_s17  ;;  %s2662_s9 = sshll.u32 %s2833_s13, 4  ;;  %s2663_s9 = int_to_ptr.vmem [resolvable:$false] %s2662_s9 }
  0xf5   : > { %s2664_s23 = scalar_lea.vmem %s2663_s9, 32  ;;  %p2665_p7 = scmp.lt.s32.totalorder %s588_s6, %s2663_s9 }
  0xf6   : > { %p2660_p0 = pnand %p2658_p3, %p3122_p2  ;;  %p2666_p10 = scmp.lt.s32.totalorder %s2664_s23, %s2657_s17 }
  0xf8   : > { %p2661_p1 = pneg %p2660_p0  ;;  %p2667_p9 = por %p2666_p10, %p2665_p7 }
  0xfa   : > { %p2668_p12 = pnand %p2667_p9, %p2661_p1 }
  0xfc   : > { %2671 = shalt.err (!%p2668_p12)
}
  0xfd   : > { %p3664_p13 = scmp.ne.s32.totalorder %s3656_s5, 0  ;;  %s3239_s0 = scalar_lea.hbm %s3591_s4, %s3098_s26 }
  0xfe   : > { %s598_s2 = scalar_lea.vmem [#allocation9], %s3095_s30  ;;  %s3665_s15 = sand.u32 1, %s2820_s24  }
  0xff   : > { %2326 = dma.hbm_to_vmem [thread:$0]  (!%p3664_p13), %s585_s16, 16, %s588_s6, %s3116_s7  }
 0x100   : > { %s605_s10 = sshll.u32 %s598_s2, 4  ;;  %s595_s25 = scalar_lea.sflag [#allocation10], %s3665_s15  ;;  %s606_s10 = int_to_ptr.vmem [resolvable:$true] %s605_s10 }
 0x101   : > { %s2672_s11 = scalar_lea.hbm %s3239_s0, 128  ;;  %s2677_s16 = scalar_lea.hbm %s3591_s4, 512 }
 0x102   : > { %p2673_p9 = scmp.ne.s32.totalorder %s3239_s0, %s2672_s11  ;;  %p2678_p8 = scmp.lt.u32.totalorder %s3239_s0, %s3591_s4 }
 0x103   : > { %p2679_p11 = scmp.lt.u32.totalorder %s2677_s16, %s2672_s11  ;;  %p2681_p3 = scmp.lt.u32.totalorder %s2672_s11, %s3239_s0 }
 0x104   : > { %p2675_p6 = pnand %p2673_p9, %p3122_p2 }
 0x105   : > { %p2680_p5 = por %p2679_p11, %p2678_p8 }
 0x106   : > { %p2676_p4 = pneg %p2675_p6 }
 0x107   : > { %p2682_p0 = por %p2681_p3, %p2680_p5 }
 0x109   : > { %p2683_p1 = pnand %p2682_p0, %p2676_p4 }
 0x10b   : > { %2686 = shalt.err (!%p2683_p1)
}
 0x10c   : > { %s2687_s30 = scalar_lea.vmem %s606_s10, 128  ;;  %s2834_s29 = smov [#allocation9]  }
 0x10d   : > { %p2688_p7 = scmp.ne.s32.totalorder %s606_s10, %s2687_s30  ;;  %s2692_s17 = sshll.u32 %s2834_s29, 4  ;;  %s2693_s17 = int_to_ptr.vmem [resolvable:$false] %s2692_s17 }
 0x10e   : > { %s2694_s13 = scalar_lea.vmem %s2693_s17, 256  ;;  %p2695_p9 = scmp.lt.s32.totalorder %s606_s10, %s2693_s17 }
 0x10f   : > { %p2690_p10 = pnand %p2688_p7, %p3122_p2  ;;  %p2696_p6 = scmp.lt.s32.totalorder %s2694_s13, %s2687_s30 }
 0x111   : > { %p2691_p12 = pneg %p2690_p10  ;;  %p2697_p13 = por %p2696_p6, %p2695_p9 }
 0x113   : > { %p2698_p8 = pnand %p2697_p13, %p2691_p12 }
 0x115   : > { %2701 = shalt.err (!%p2698_p8)
}
 0x116   : > { %p3666_p11 = scmp.ne.s32.totalorder %s3656_s5, 0  ;;  %p3667_p4 = scmp.ne.s32.totalorder %s3643_s28, 0 }
 0x117   : > { %s3264_s20 = sand.u32 (!%p3667_p4), 1, %s2812_s22   ;;  %p3668_p2 = scmp.ne.s32.totalorder (!%p3667_p4), %s3651_s18, 0 }
 0x118   : > { %2329 = dma.hbm_to_vmem [thread:$0]  (!%p3666_p11), %s3239_s0, 128, %s606_s10, %s595_s25  }
 0x119   : > { %614 = sbr.rel (%p3667_p4) target bundleno = 3728 (0xe90), region = 80  ;;  %s3267_s9 = sshll.u32 (!%p3667_p4), %s3264_s20, 3 }
 0x11a   : > { %s617_s23 = scalar_lea.sflag (!%p3667_p4), [#allocation4], %s3264_s20  ;;  %s620_s14 = scalar_lea.vmem (!%p3667_p4), [#allocation3], %s3267_s9 }
 0x120   : > { %2775 = dma.done.wait (%p3668_p2), %s617_s23, 128  }
 0x121   : > { %2777 = vsyncadd (%p3668_p2), %s617_s23, 4294967168  ;;  %s625_s28 = sand.u32 1, %s2953_s27   ;;  %s629_s19 = scalar_lea.vmem [#allocation6], %s3267_s9 }
 0x122   : > { %s626_s5 = scalar_lea.sflag [#allocation7], %s625_s28 }
 0x123   : > { %2779 = dma.done.wait (%p3668_p2), %s626_s5, 144  }
 0x124   : > { %2781 = vsyncadd (%p3668_p2), %s626_s5, 4294967152  ;;  %s637_s0 = scalar_lea.vmem [#allocation8], %s3264_s20  ;;  %s643_s2 = scalar_lea.sflag [#allocation10], %s625_s28 }
 0x125   : > { %s646_s10 = scalar_lea.vmem [#allocation9], %s3267_s9 }
 0x126   : > { %2783 = dma.done.wait (%p3668_p2), %s643_s2, 128  }
 0x127   : > { %2785 = vsyncadd (%p3668_p2), %s643_s2, 4294967168  ;;  %p3669_p13 = scmp.eq.s32.totalorder %s2953_s27, 0 }
 0x129   : > { %2787 = dma.done.wait (%p3669_p13), [#allocation10], 256   ;;  %p3670_p5 = pmov %p3669_p13 }
 0x12b   : > { %2789 = vsyncadd (%p3670_p5), [#allocation10], 4294967040  ;;  %p3671_p3 = pmov %p3670_p5 }
 0x12d   : > { %2791 = dma.done.wait (%p3671_p3), [#allocation13], 512   ;;  %p3672_p0 = pmov %p3671_p3 }
 0x12f   : > { %2793 = vsyncadd (%p3672_p0), [#allocation13], 4294966784  ;;  %p3673_p1 = pmov %p3672_p0 }
 0x130   : > { %p3674_p7 = pmov %p3672_p0 }
 0x131   : > { %2795 = dma.done.wait (%p3673_p1), [#allocation16], 512  }
 0x132   : > { %2797 = vsyncadd (%p3674_p7), [#allocation16], 4294966784  ;;  %p738_p10 = scmp.lt.s32.totalorder %s2953_s27, 3  ;;  %s3675_s7 = sld [smem:[#allocation35_spill]]  ;;  %v748_v1 = vld [vmem:[%s620_s14] sm:$0xff]  ;;  %vm750_vm0 = vcmask 261120   ;;  %v765_v20 = vlaneseq }
 0x133   : > { %s3676_s21 = sld [smem:[#allocation37_spill]]  ;;  %v2835_v10 = vmov 0.0   ;;  %vm2836_vm1 = vmmov 0   ;;  %v2402_v11 = vld [vmem:[#allocation11] sm:$0xff]   ;;  %v2404_v14 = vld [vmem:[#allocation11 + $0x8] sm:$0xff]   ;;  %v2403_v16 = vld [vmem:[#allocation12] sm:$0xff]  }
 0x134   : > { %s739_s18 = scalar_select %p738_p10, %s2953_s27, 3  ;;  %2161 = vmatprep.subr.bf16.mxu0 %v2835_v10  ;;  %2165 = vmatprep.mubr.msk.bf16.mxu0 %vm2836_vm1, %v2835_v10  ;;  %v3317_v13 = vld [vmem:[%s629_s19] sm:$0xff]  ;;  %v3333_v22 = vshrl.u32 %v765_v20, 7  ;;  %vm976_vm2 = vcmask 64512   ;;  %vm1038_vm3 = vcmask 1043456   ;;  %vm1434_vm4 = vcmask 60416  }
 0x135   : > { %2169 = vmatprep.subr.bf16.mxu1 %v2835_v10  ;;  %2173 = vmatprep.mubr.msk.bf16.mxu1 %vm2836_vm1, %v2835_v10  ;;  %v777_v15 = vpack.c.bf16 %v3317_v13, %v3317_v13  ;;  %v2405_v17 = vld [vmem:[#allocation12 + $0x8] sm:$0xff]   ;;  %v3338_v24 = vld [vmem:[#allocation17] sm:$0xff]  ;;  %s2837_s13 = smov 112   ;;  %s2838_s23 = smov 120   ;;  %vm1200_vm5 = vcmask 130112   ;;  %vm1316_vm6 = vcmask 195712  }
 0x136   : > { %s2081_s15 = sshll.u32 %s739_s18, 3  ;;  %2170 = vmatpush3.bf16.msra.mxu1 %v2402_v11  ;;  %v3336_v23 = vsub.s32 0, %v3333_v22  ;;  %v3341_v25 = vsub.s32 1, %v3333_v22  ;;  %v3354_v37 = vsub.s32 2, %v3333_v22  ;;  %v847_v38 = vsub.s32 3, %v3333_v22  ;;  %s2839_s14 = smov 104  }
 0x137   : > { %2171 = vmatprep.subr.bf16.mxu1 %v2835_v10  ;;  %v910_v39 = vsub.s32 4, %v3333_v22  ;;  %s2080_s28 = sshll.u32 %s3264_s20, 4  ;;  %s2840_s19 = smov 8   ;;  %vm1432_vm7 = vcmask 261312   ;;  %vm1636_vm8 = vcmask 523264   ;;  %vm1770_vm9 = vcmask 392192  }
 0x138   : > { %s741_s6 = scalar_lea.vmem %s3675_s7, %s2081_s15  ;;  %v768_v26 = vrot.slane %v3338_v24, %v3336_v23  ;;  %v773_v29 = vrot.slane %v3338_v24, %v3341_v25  ;;  %v785_v40 = vrot.slane %v3338_v24, %v3354_v37  ;;  %v848_v41 = vrot.slane %v3338_v24, %v847_v38  ;;  %s3409_s5 = scalar_lea.vmem [#allocation19], %s2080_s28 }
 0x139   : > { %v747_v0 = vld [vmem:[%s741_s6] sm:$0xff]  ;;  %s3677_s30 = smov %s3676_s21  ;;  %v911_v42 = vrot.slane %v3338_v24, %v910_v39  ;;  %s2842_s2 = smov 24  }
 0x13a   : > { %v749_v2 = vadd.f32 %v748_v1, %v747_v0  ;;  %v2400_v9 = vld [vmem:[%s3676_s21] sm:$0xff]   ;;  %v2401_v12 = vld [vmem:[%s3677_s30 + $0x8] sm:$0xff]   ;;  %2172 = vmatpush3.bf16.msra.mxu1 %v2404_v14  ;;  %s3678_s25 = sld [smem:[#allocation40_spill]]  ;;  %s3679_s26 = sld [smem:[#allocation41_spill]] }
 0x13b   : > { %2162 = vmatpush3.bf16.msra.mxu0 %v2400_v9  ;;  %2185 = vmatprep.subr.bf16.mxu1 %v2835_v10  ;;  %s3681_s15 = sld [smem:[#allocation44_spill]]  ;;  %s3682_s11 = sld [smem:[#allocation33_spill]] }
 0x13c   : > { %v751_v3 = vsel %vm750_vm0, %v749_v2, 0.0  ;;  %2163 = vmatprep.subr.bf16.mxu0 %v2835_v10  ;;  %s1828_s7 = sshll.u32 %s3409_s5, 4  ;;  %s3683_s21 = sld [smem:[#allocation46_spill]]  ;;  %s3508_s7 = int_to_ptr.vmem [resolvable:$true] %s1828_s7 }
 0x13d   : > { %752 = vadd.xlane.f32.xlu0 %v751_v3 }
 0x13f   : > { %2164 = vmatpush3.bf16.msra.mxu0 %v2401_v12 }
 0x140   : > { %2177 = vmatprep.subr.bf16.mxu0 %v2835_v10 }
 0x141   : > { %p3685_p9 = scmp.ne.s32.totalorder %s3682_s11, 0 }
 0x142   : > { %2166 = vmatmul.mubr.msk.bf16.vlgmr.msra.gmra.mrb[0].mxu0 %vm750_vm0, %v777_v15  ;;  %s3684_s29 = smov %s3683_s21 }
 0x143   : > { %2178 = vmatpush3.bf16.msra.mxu0 %v2403_v16  ;;  %2181 = vmatprep.mubr.msk.bf16.mxu0 %vm2836_vm1, %v2835_v10 }
 0x144   : > { %2179 = vmatprep.subr.bf16.mxu0 %v2835_v10 }
 0x147   : > { %2180 = vmatpush3.bf16.msra.mxu0 %v2405_v17 }
 0x148   : > { %2191 = vmatprep.subr.bf16.mxu0 %v2835_v10 }
 0x1ca   : > { %v753_v4 = vpop.xlane.xlu0 %752 }
 0x1cb   : > { %v755_v5 = vmul.f32 0.03125, %v753_v4  ;;  %v967_v4 = vld [vmem:[%s637_s0] sm:$0x1]  ;;  %s2841_s0 = smov 16  }
 0x1cd   : > { %v756_v6 = vsub.f32 %v749_v2, %v755_v5  ;;  %v968_v5 = vsub.f32 1.0, %v967_v4 }
 0x1cf   : > { %v757_v7 = vmul.f32 %v756_v6, %v756_v6 }
 0x1d1   : > { %v758_v8 = vsel %vm750_vm0, %v757_v7, 0.0 }
 0x1d2   : > { %759 = vadd.xlane.f32.xlu0 %v758_v8 }
 0x215   : > { %v835_v33 = vpop.f32.mrb[0].mxu0 }
 0x216   : > { %v2167_v34 = vpop.f32.mrb[1].mxu0  ;;  %v836_v45 = vadd.f32 %v835_v33, %v785_v40 }
 0x217   : > { %v838_v35 = vpop.f32.mrb[2].mxu0 }
 0x218   : > { %v2168_v36 = vpop.f32.mrb[3].mxu0  ;;  %v964_v56 = vpack.c.bf16 %v836_v45, %v836_v45 }
 0x25f   : > { %v760_v18 = vpop.xlane.xlu0 %759 }
 0x260   : > { %v761_v19 = vmul.f32 0.03125, %v760_v18 }
 0x262   : > { %v762_v21 = vadd.f32 1e-05, %v761_v19 }
 0x264   : > { %2416 = vrsqrt.f32 %v762_v21 }
 0x26e   : > { %v2417_v27 = vpop.eup %2416 }
 0x26f   : > { %v764_v28 = vmul.f32 %v2417_v27, %v756_v6  ;;  %v969_v6 = vmul.f32 -10000.0, %v968_v5 }
 0x271   : > { %v769_v30 = vmul.f32 %v768_v26, %v764_v28  ;;  %v974_v7 = vrot.slane %v969_v6, %v3336_v23 }
 0x273   : > { %v774_v31 = vadd.f32 %v773_v29, %v769_v30 }
 0x275   : > { %v775_v32 = vpack.c.bf16 %v774_v31, %v774_v31 }
 0x277   : > { %2174 = vmatmul.mubr.msk.bf16.vlgmr.msra.gmra.mrb[0].mxu1 %vm750_vm0, %v775_v32  ;;  %2182 = vmatmul.mubr.msk.bf16.vlgmr.msra.gmra.mrb[4].mxu0 %vm750_vm0, %v775_v32 }
 0x278   : > { %2187 = vmatprep.mubr.msk.bf16.mxu1 %vm2836_vm1, %v2835_v10  ;;  %2193 = vmatprep.mubr.msk.bf16.mxu0 %vm2836_vm1, %v2835_v10 }
 0x34a   : > { %v898_v43 = vpop.f32.mrb[0].mxu1  ;;  %v958_v44 = vpop.f32.mrb[4].mxu0 }
 0x34b   : > { %v899_v46 = vadd.f32 %v898_v43, %v848_v41  ;;  %v959_v47 = vadd.f32 %v958_v44, %v911_v42  ;;  %v2175_v48 = vpop.f32.mrb[1].mxu1  ;;  %v2183_v49 = vpop.f32.mrb[5].mxu0 }
 0x34c   : > { %v901_v50 = vpop.f32.mrb[2].mxu1  ;;  %v961_v51 = vpop.f32.mrb[6].mxu0 }
 0x34d   : > { %v965_v52 = vpack.c.bf16 %v899_v46, %v899_v46  ;;  %v3362_v53 = vpack.c.bf16 %v959_v47, %v959_v47  ;;  %v2176_v54 = vpop.f32.mrb[3].mxu1  ;;  %v2184_v55 = vpop.f32.mrb[7].mxu0 }
 0x34f   : > { %1204 = vrot.lane.b32.xlu0 %v965_v52, %s2837_s13  ;;  %1087 = vrot.lane.b32.xlu1 %v965_v52, %s2838_s23  ;;  %v981_v57 = vsel %vm976_vm2, %v965_v52, 0  ;;  %v1040_v58 = vsel %vm1038_vm3, %v3362_v53, 0 }
 0x350   : > { %2186 = vmatpush3.bf16.xpose.msra.mxu1 %v981_v57  ;;  %2192 = vmatpush3.bf16.msra.mxu0 %v1040_v58 }
 0x351   : > { %2197 = vmatprep.subr.bf16.mxu1 %v2835_v10  ;;  %2203 = vmatprep.subr.bf16.mxu0 %v2835_v10 }
 0x353   : > { %1084 = vrot.lane.b32.xlu1 %v964_v56, %s2838_s23 }
 0x357   : > { %1202 = vrot.lane.b32.xlu1 %v964_v56, %s2837_s13  ;;  %2188 = vmatmul.mubr.msk.bf16.vlgmr.msra.gmra.mrb[4].mxu1 %vm976_vm2, %v964_v56 }
 0x358   : > { %2199 = vmatprep.mubr.msk.bf16.mxu1 %vm2836_vm1, %v2835_v10 }
 0x35b   : > { %1320 = vrot.lane.b32.xlu1 %v965_v52, %s2839_s14 }
 0x35f   : > { %1318 = vrot.lane.b32.xlu1 %v964_v56, %s2839_s14 }
 0x3c1   : > { %v1088_v59 = vpop.permute.xlu1 %1087  ;;  %v1205_v62 = vpop.permute.xlu0 %1204 }
 0x3c2   : > { %v1093_v60 = vsel %vm976_vm2, %v1088_v59, 0  ;;  %v1210_v0 = vsel %vm976_vm2, %v1205_v62, 0 }
 0x3c3   : > { %2198 = vmatpush3.bf16.xpose.msra.mxu1 %v1093_v60 }
 0x3c4   : > { %2209 = vmatprep.subr.bf16.mxu1 %v2835_v10 }
 0x3c5   : > { %v1085_v61 = vpop.permute.xlu1 %1084 }
 0x3c9   : > { %v1203_v63 = vpop.permute.xlu1 %1202 }
 0x3ca   : > { %2200 = vmatmul.mubr.msk.bf16.vlgmr.msra.gmra.mrb[8].mxu1 %vm976_vm2, %v1085_v61 }
 0x3cb   : > { %2210 = vmatpush3.bf16.xpose.msra.mxu1 %v1210_v0  ;;  %2211 = vmatprep.mubr.msk.bf16.mxu1 %vm2836_vm1, %v2835_v10 }
 0x3cc   : > { %2221 = vmatprep.subr.bf16.mxu1 %v2835_v10 }
 0x3cd   : > { %v1321_v1 = vpop.permute.xlu1 %1320 }
 0x3ce   : > { %v1326_v2 = vsel %vm976_vm2, %v1321_v1, 0 }
 0x3d1   : > { %v1319_v3 = vpop.permute.xlu1 %1318 }
 0x3d2   : > { %2212 = vmatmul.mubr.msk.bf16.vlgmr.msra.gmra.mrb[12].mxu1 %vm976_vm2, %v1203_v63 }
 0x3d3   : > { %2222 = vmatpush3.bf16.xpose.msra.mxu1 %v1326_v2  ;;  %2223 = vmatprep.mubr.msk.bf16.mxu1 %vm2836_vm1, %v2835_v10 }
 0x3d4   : > { %2233 = vmatprep.subr.bf16.mxu1 %v2835_v10 }
 0x3da   : > { %2224 = vmatmul.mubr.msk.bf16.vlgmr.msra.gmra.mrb[16].mxu1 %vm976_vm2, %v1319_v3 }
 0x3db   : > { %2237 = vmatprep.mubr.msk.bf16.mxu1 %vm2836_vm1, %v2835_v10 }
 0x42a   : > { %v1017_v8 = vpop.f32.mrb[4].mxu1 }
 0x42b   : > { %v1018_v9 = vadd.f32 %v1017_v8, %v974_v7  ;;  %v2189_v11 = vpop.f32.mrb[5].mxu1 }
 0x42c   : > { %v1020_v12 = vpop.f32.mrb[6].mxu1 }
 0x42d   : > { %v2190_v14 = vpop.f32.mrb[7].mxu1  ;;  %v1023_v15 = vsel %vm976_vm2, %v1018_v9, -inf }
 0x42e   : > { %1024 = vmax.xlane.f32.xlu1 %v1023_v15 }
 0x49d   : > { %v1129_v16 = vpop.f32.mrb[8].mxu1 }
 0x49e   : > { %v1130_v17 = vadd.f32 %v1129_v16, %v974_v7  ;;  %v2201_v18 = vpop.f32.mrb[9].mxu1 }
 0x49f   : > { %v1132_v19 = vpop.f32.mrb[10].mxu1 }
 0x4a0   : > { %v2202_v20 = vpop.f32.mrb[11].mxu1  ;;  %v1135_v21 = vsel %vm976_vm2, %v1130_v17, -inf }
 0x4a1   : > { %1136 = vmax.xlane.f32.xlu0 %v1135_v21 }
 0x4a5   : > { %v1246_v26 = vpop.f32.mrb[12].mxu1 }
 0x4a6   : > { %v1247_v27 = vadd.f32 %v1246_v26, %v974_v7  ;;  %v2213_v28 = vpop.f32.mrb[13].mxu1 }
 0x4a7   : > { %v1249_v29 = vpop.f32.mrb[14].mxu1 }
 0x4a8   : > { %v2214_v30 = vpop.f32.mrb[15].mxu1  ;;  %v1252_v31 = vsel %vm976_vm2, %v1247_v27, -inf }
 0x4a9   : > { %1253 = vmax.xlane.f32.xlu1 %v1252_v31 }
 0x4ad   : > { %v1362_v32 = vpop.f32.mrb[16].mxu1 }
 0x4ae   : > { %v1363_v33 = vadd.f32 %v1362_v32, %v974_v7  ;;  %v2225_v34 = vpop.f32.mrb[17].mxu1 }
 0x4af   : > { %v1365_v35 = vpop.f32.mrb[18].mxu1 }
 0x4b0   : > { %v2226_v36 = vpop.f32.mrb[19].mxu1  ;;  %v1368_v38 = vsel %vm976_vm2, %v1363_v33, -inf  ;;  %v2406_v35 = vld [vmem:[#allocation14] sm:$0xff]  }
 0x4b1   : > { %1369 = vmax.xlane.f32.xlu1 %v1368_v38  ;;  %2234 = vmatpush3.bf16.msra.mxu1 %v2406_v35  ;;  %v2407_v36 = vld [vmem:[#allocation14 + $0x8] sm:$0xff]  }
 0x4b2   : > { %2235 = vmatprep.subr.bf16.mxu1 %v2835_v10 }
 0x4b5   : > { %2236 = vmatpush3.bf16.msra.mxu1 %v2407_v36 }
 0x4b6   : > { %2249 = vmatprep.subr.bf16.mxu1 %v2835_v10 }
 0x4bb   : > { %v1025_v39 = vpop.xlane.xlu1 %1024 }
 0x4bc   : > { %v1026_v40 = vsub.f32 %v1018_v9, %v1025_v39 }
 0x4be   : > { %v1027_v41 = vmul.f32 1.442695, %v1026_v40 }
 0x4c0   : > { %2418 = vpow2.f32 %v1027_v41 }
 0x4ca   : > { %v2419_v42 = vpop.eup %2418 }
 0x4cb   : > { %v1029_v43 = vsel %vm976_vm2, %v2419_v42, 0.0 }
 0x4cc   : > { %1030 = vadd.xlane.f32.xlu0 %v1029_v43 }
 0x52e   : > { %v1137_v44 = vpop.xlane.xlu0 %1136 }
 0x52f   : > { %v1138_v45 = vsub.f32 %v1130_v17, %v1137_v44 }
 0x531   : > { %v1139_v46 = vmul.f32 1.442695, %v1138_v45 }
 0x533   : > { %2420 = vpow2.f32 %v1139_v46 }
 0x536   : > { %v1254_v47 = vpop.xlane.xlu1 %1253 }
 0x537   : > { %v1255_v48 = vsub.f32 %v1247_v27, %v1254_v47  ;;  %v1447_v47 = vsub.s32 5, %v3333_v22 }
 0x539   : > { %v1256_v49 = vmul.f32 1.442695, %v1255_v48  ;;  %v1448_v48 = vrot.slane %v3338_v24, %v1447_v47 }
 0x53b   : > { %2422 = vpow2.f32 %v1256_v49 }
 0x53d   : > { %v2421_v50 = vpop.eup %2420 }
 0x53e   : > { %v1141_v51 = vsel %vm976_vm2, %v2421_v50, 0.0  ;;  %v1370_v56 = vpop.xlane.xlu1 %1369 }
 0x53f   : > { %1142 = vadd.xlane.f32.xlu1 %v1141_v51  ;;  %v1371_v57 = vsub.f32 %v1363_v33, %v1370_v56 }
 0x541   : > { %v1372_v58 = vmul.f32 1.442695, %v1371_v57 }
 0x545   : > { %v2423_v52 = vpop.eup %2422 }
 0x546   : > { %v1258_v54 = vsel %vm976_vm2, %v2423_v52, 0.0 }
 0x547   : > { %1259 = vadd.xlane.f32.xlu0 %v1258_v54 }
 0x550   : > { %1264 = vrot.lane.b32.xlu1 %v3362_v53, %s2837_s13  ;;  %s1802_s13 = scalar_lea.sflag [#allocation20], %s3264_s20 }
 0x559   : > { %v1031_v55 = vpop.xlane.xlu0 %1030 }
 0x55a   : > { %2424 = vrcp.f32 %v1031_v55 }
 0x55b   : > { %2426 = vpow2.f32 %v1372_v58 }
 0x55d   : > { %1148 = vrot.lane.b32.xlu0 %v3362_v53, %s2838_s23  ;;  %s2702_s23 = scalar_lea.vmem %s3508_s7, 256 }
 0x55e   : > { %p2703_p12 = scmp.ne.s32.totalorder %s3508_s7, %s2702_s23 }
 0x560   : > { %p2704_p6 = pnand %p2703_p12, %p3685_p9 }
 0x562   : > { %p2705_p8 = pneg %p2704_p6 }
 0x564   : > { %v2425_v59 = vpop.eup %2424 }
 0x565   : > { %v1033_v60 = vmul.f32 %v2425_v59, %v2419_v42  ;;  %v2427_v62 = vpop.eup %2426 }
 0x566   : > { %v1374_v63 = vsel %vm976_vm2, %v2427_v62, 0.0 }
 0x567   : > { %v1034_v61 = vpack.c.bf16 %v1033_v60, %v1033_v60 }
 0x569   : > { %2194 = vmatmul.mubr.msk.bf16.vlgmr.msra.gmra.mrb[8].mxu0 %vm976_vm2, %v1034_v61  ;;  %1435 = vst.msk [vmem:[%s3409_s5] sm:$0xf] %vm1434_vm4, %v1034_v61 }
 0x56a   : > { %2205 = vmatprep.mubr.msk.bf16.mxu0 %vm2836_vm1, %v2835_v10 }
 0x574   : > { %1375 = vadd.xlane.f32.xlu1 %v1374_v63 }
 0x585   : > { %1380 = vrot.lane.b32.xlu1 %v3362_v53, %s2839_s14  ;;  %s2843_s14 = smov [#allocation19]  }
 0x586   : > { %s2706_s28 = sshll.u32 %s2843_s14, 4  ;;  %s2707_s28 = int_to_ptr.vmem [resolvable:$false] %s2706_s28 }
 0x587   : > { %p2709_p11 = scmp.lt.s32.totalorder %s3508_s7, %s2707_s28 }
 0x5cc   : > { %v1143_v0 = vpop.xlane.xlu1 %1142 }
 0x5cd   : > { %2428 = vrcp.f32 %v1143_v0 }
 0x5d0   : > { %v1265_v6 = vpop.permute.xlu1 %1264 }
 0x5d1   : > { %v1270_v8 = vsel %vm1038_vm3, %v1265_v6, 0 }
 0x5d4   : > { %v1260_v1 = vpop.xlane.xlu0 %1259 }
 0x5d5   : > { %2430 = vrcp.f32 %v1260_v1 }
 0x5d7   : > { %v2429_v2 = vpop.eup %2428 }
 0x5d8   : > { %v1145_v3 = vmul.f32 %v2429_v2, %v2421_v50  ;;  %v1149_v4 = vpop.permute.xlu0 %1148  ;;  %v1520_v2 = vsub.s32 6, %v3333_v22 }
 0x5d9   : > { %v1154_v5 = vsel %vm1038_vm3, %v1149_v4, 0 }
 0x5da   : > { %2204 = vmatpush3.bf16.msra.mxu0 %v1154_v5  ;;  %v1146_v7 = vpack.c.bf16 %v1145_v3, %v1145_v3  ;;  %v1525_v3 = vsub.s32 7, %v3333_v22  ;;  %v1521_v4 = vrot.slane %v3338_v24, %v1520_v2  ;;  %v2411_v22 = vld [vmem:[%s3679_s26 + $0x8] sm:$0xff]  }
 0x5db   : > { %2215 = vmatprep.subr.bf16.mxu0 %v2835_v10 }
 0x5dc   : > { %1436 = vst.msk [vmem:[%s3409_s5 + $0x4] sm:$0xf] %vm1434_vm4, %v1146_v7 }
 0x5dd   : > { %2206 = vmatmul.mubr.msk.bf16.vlgmr.msra.gmra.mrb[12].mxu0 %vm976_vm2, %v1146_v7  ;;  %v1526_v7 = vrot.slane %v3338_v24, %v1525_v3  ;;  %v2412_v24 = vld [vmem:[%s3679_s26 + $0x10] sm:$0xff]  }
 0x5de   : > { %2216 = vmatpush3.bf16.msra.mxu0 %v1270_v8  ;;  %2217 = vmatprep.mubr.msk.bf16.mxu0 %vm2836_vm1, %v2835_v10 }
 0x5df   : > { %v2431_v53 = vpop.eup %2430  ;;  %2227 = vmatprep.subr.bf16.mxu0 %v2835_v10 }
 0x5e0   : > { %v1262_v9 = vmul.f32 %v2431_v53, %v2423_v52 }
 0x5e2   : > { %v1263_v11 = vpack.c.bf16 %v1262_v9, %v1262_v9 }
 0x5e4   : > { %1437 = vst.msk [vmem:[%s3409_s5 + $0x8] sm:$0xf] %vm1434_vm4, %v1263_v11 }
 0x5e5   : > { %2218 = vmatmul.mubr.msk.bf16.vlgmr.msra.gmra.mrb[16].mxu0 %vm976_vm2, %v1263_v11  ;;  %v2410_v11 = vld [vmem:[%s3679_s26] sm:$0xff]  }
 0x5e6   : > { %2229 = vmatprep.mubr.msk.bf16.mxu0 %vm2836_vm1, %v2835_v10 }
 0x601   : > { %v1376_v12 = vpop.xlane.xlu1 %1375 }
 0x602   : > { %2432 = vrcp.f32 %v1376_v12  ;;  %v2413_v12 = vld [vmem:[%s3679_s26 + $0x18] sm:$0xff]  }
 0x605   : > { %v1381_v14 = vpop.permute.xlu1 %1380 }
 0x606   : > { %v1386_v15 = vsel %vm1038_vm3, %v1381_v14, 0 }
 0x607   : > { %2228 = vmatpush3.bf16.msra.mxu0 %v1386_v15 }
 0x608   : > { %2241 = vmatprep.subr.bf16.mxu0 %v2835_v10 }
 0x60c   : > { %v2433_v16 = vpop.eup %2432 }
 0x60d   : > { %v1378_v17 = vmul.f32 %v2433_v16, %v2427_v62  ;;  %v2408_v62 = vld [vmem:[%s3678_s25] sm:$0xff]  }
 0x60f   : > { %v1379_v18 = vpack.c.bf16 %v1378_v17, %v1378_v17 }
 0x611   : > { %2230 = vmatmul.mubr.msk.bf16.vlgmr.msra.gmra.mrb[20].mxu0 %vm976_vm2, %v1379_v18  ;;  %1438 = vst.msk [vmem:[%s3409_s5 + $0xc] sm:$0xf] %vm1434_vm4, %v1379_v18  ;;  %s2708_s5 = scalar_lea.vmem %s2707_s28, 512 }
 0x612   : > { %2245 = vmatprep.mubr.msk.bf16.mxu0 %vm2836_vm1, %v2835_v10  ;;  %2242 = vmatpush3.bf16.msra.mxu0 %v2408_v62  ;;  %p2710_p4 = scmp.lt.s32.totalorder %s2708_s5, %s2702_s23 }
 0x613   : > { %2243 = vmatprep.subr.bf16.mxu0 %v2835_v10 }
 0x614   : > { %p2711_p2 = por %p2710_p4, %p2709_p11 }
 0x616   : > { %p2712_p13 = pnand %p2711_p2, %p2705_p8 }
 0x63c   : > { %v1076_v19 = vpop.f32.mrb[8].mxu0 }
 0x63d   : > { %1082 = vst.msk [vmem:[#allocation2] sm:$0xff] %vm976_vm2, %v1076_v19  ;;  %v2195_v20 = vpop.f32.mrb[9].mxu0 }
 0x63e   : > { %v1079_v21 = vpop.f32.mrb[10].mxu0 }
 0x63f   : > { %v2196_v26 = vpop.f32.mrb[11].mxu0 }
 0x6b0   : > { %v1190_v27 = vpop.f32.mrb[12].mxu0 }
 0x6b1   : > { %1197 = vrot.lane.b32.xlu0 %v1190_v27, %s2840_s19  ;;  %v2207_v28 = vpop.f32.mrb[13].mxu0 }
 0x6b2   : > { %v1193_v29 = vpop.f32.mrb[14].mxu0 }
 0x6b3   : > { %v2208_v30 = vpop.f32.mrb[15].mxu0 }
 0x6b4   : > { %v744_v30 = vld [vmem:[#allocation17 + $0x8] sm:$0x7] }
 0x6b8   : > { %v1306_v31 = vpop.f32.mrb[16].mxu0 }
 0x6b9   : > { %1313 = vrot.lane.b32.xlu1 %v1306_v31, %s2841_s0  ;;  %v2219_v32 = vpop.f32.mrb[17].mxu0  ;;  %s3680_s0 = sld [smem:[#allocation43_spill]]  ;;  %v1611_v31 = vrot.slane %v744_v30, %v3336_v23 }
 0x6ba   : > { %v1309_v33 = vpop.f32.mrb[18].mxu0 }
 0x6bb   : > { %v2220_v34 = vpop.f32.mrb[19].mxu0 }
 0x6bf   : > { %v2102_v14 = vld [vmem:[%s3680_s0] ss:$0 sm:$0xff] }
 0x6e4   : > { %v1422_v38 = vpop.f32.mrb[20].mxu0 }
 0x6e5   : > { %1429 = vrot.lane.b32.xlu0 %v1422_v38, %s2842_s2  ;;  %v2231_v39 = vpop.f32.mrb[21].mxu0 }
 0x6e6   : > { %v1425_v40 = vpop.f32.mrb[22].mxu0 }
 0x6e7   : > { %v2232_v41 = vpop.f32.mrb[23].mxu0 }
 0x723   : > { %v1198_v42 = vpop.permute.xlu0 %1197 }
 0x724   : > { %1201 = vst.msk [vmem:[#allocation2] sm:$0xff] %vm1200_vm5, %v1198_v42 }
 0x72b   : > { %v1314_v43 = vpop.permute.xlu1 %1313 }
 0x72c   : > { %1317 = vst.msk [vmem:[#allocation2] sm:$0xff] %vm1316_vm6, %v1314_v43 }
 0x757   : > { %v1430_v44 = vpop.permute.xlu0 %1429 }
 0x758   : > { %1433 = vst.msk [vmem:[#allocation2] sm:$0xff] %vm1432_vm7, %v1430_v44 }
 0x75f   : > { %v1439_v45 = vld [vmem:[#allocation2] sm:$0xff] }
 0x760   : > { %v1440_v46 = vpack.c.bf16 %v1439_v45, %v1439_v45  ;;  %v2414_v45 = vld [vmem:[#allocation15] sm:$0xff]  }
 0x762   : > { %2238 = vmatmul.mubr.msk.bf16.vlgmr.msra.gmra.mrb[20].mxu1 %vm750_vm0, %v1440_v46  ;;  %v2415_v46 = vld [vmem:[#allocation15 + $0x8] sm:$0xff]  }
 0x763   : > { %2257 = vmatprep.mubr.msk.bf16.mxu1 %vm2836_vm1, %v2835_v10  ;;  %2250 = vmatpush3.bf16.msra.mxu1 %v2410_v11 }
 0x764   : > { %2251 = vmatprep.subr.bf16.mxu1 %v2835_v10 }
 0x767   : > { %2252 = vmatpush3.bf16.msra.mxu1 %v2411_v22 }
 0x768   : > { %2253 = vmatprep.subr.bf16.mxu1 %v2835_v10 }
 0x76b   : > { %2254 = vmatpush3.bf16.msra.mxu1 %v2412_v24 }
 0x76c   : > { %2255 = vmatprep.subr.bf16.mxu1 %v2835_v10 }
 0x76f   : > { %2256 = vmatpush3.bf16.msra.mxu1 %v2413_v12 }
 0x835   : > { %v1498_v49 = vpop.f32.mrb[20].mxu1 }
 0x836   : > { %v1499_v50 = vadd.f32 %v1498_v49, %v1448_v48  ;;  %v2239_v51 = vpop.f32.mrb[21].mxu1 }
 0x837   : > { %v1501_v52 = vpop.f32.mrb[22].mxu1 }
 0x838   : > { %v2240_v54 = vpop.f32.mrb[23].mxu1  ;;  %v1504_v55 = vadd.f32 %v1499_v50, %v3317_v13  ;;  %v2409_v13 = vld [vmem:[%s3678_s25 + $0x8] sm:$0xff]   ;;  %v1697_v50 = vrot.slane %v744_v30, %v3341_v25  ;;  %v1702_v52 = vrot.slane %v744_v30, %v3354_v37 }
 0x839   : > { %2244 = vmatpush3.bf16.msra.mxu0 %v2409_v13 }
 0x83a   : > { %v1505_v56 = vsel %vm750_vm0, %v1504_v55, 0.0  ;;  %2261 = vmatprep.subr.bf16.mxu0 %v2835_v10 }
 0x83b   : > { %1506 = vadd.xlane.f32.xlu1 %v1505_v56 }
 0x8c8   : > { %v1507_v57 = vpop.xlane.xlu1 %1506 }
 0x8c9   : > { %v1508_v58 = vmul.f32 0.03125, %v1507_v57 }
 0x8cb   : > { %v1509_v59 = vsub.f32 %v1504_v55, %v1508_v58 }
 0x8cd   : > { %v1510_v60 = vmul.f32 %v1509_v59, %v1509_v59 }
 0x8cf   : > { %v1511_v61 = vsel %vm750_vm0, %v1510_v60, 0.0  ;;  %v1768_v60 = vld [vmem:[%s646_s10] sm:$0xff]  ;;  %s2121_s10 = sshll.u32 %s2953_s27, 8 }
 0x8d0   : > { %1512 = vadd.xlane.f32.xlu0 %v1511_v61  ;;  %s3506_s17 = scalar_lea.hbm %s3683_s21, %s2121_s10 }
 0x95d   : > { %v1513_v63 = vpop.xlane.xlu0 %1512 }
 0x95e   : > { %v1514_v0 = vmul.f32 0.03125, %v1513_v63 }
 0x960   : > { %v1515_v1 = vadd.f32 1e-12, %v1514_v0 }
 0x962   : > { %2434 = vrsqrt.f32 %v1515_v1 }
 0x96c   : > { %v2435_v5 = vpop.eup %2434 }
 0x96d   : > { %v1517_v6 = vmul.f32 %v2435_v5, %v1509_v59 }
 0x96f   : > { %v1522_v8 = vmul.f32 %v1521_v4, %v1517_v6 }
 0x971   : > { %v1527_v53 = vadd.f32 %v1526_v7, %v1522_v8 }
 0x973   : > { %v1528_v9 = vpack.c.bf16 %v1527_v53, %v1527_v53 }
 0x975   : > { %2246 = vmatmul.mubr.msk.bf16.vlgmr.msra.gmra.mrb[24].mxu0 %vm750_vm0, %v1528_v9 }
 0x976   : > { %2265 = vmatprep.mubr.msk.bf16.mxu0 %vm2836_vm1, %v2835_v10  ;;  %2262 = vmatpush3.bf16.msra.mxu0 %v2414_v45 }
 0x977   : > { %2263 = vmatprep.subr.bf16.mxu0 %v2835_v10  ;;  %v3493_v10 = vld [vmem:[%s3681_s15] sm:$0x7] }
 0x978   : > { %v1712_v58 = vrot.slane %v3493_v10, %v3336_v23 }
 0x97a   : > { %2264 = vmatpush3.bf16.msra.mxu0 %v2415_v46 }
 0xa48   : > { %v1588_v15 = vpop.f32.mrb[24].mxu0 }
 0xa49   : > { %v1589_v16 = vadd.f32 %v2102_v14, %v1588_v15  ;;  %v2247_v17 = vpop.f32.mrb[25].mxu0 }
 0xa4a   : > { %v1591_v18 = vpop.f32.mrb[26].mxu0 }
 0xa4b   : > { %v1595_v19 = vmul.f32 0.70710677, %v1589_v16  ;;  %v2248_v20 = vpop.f32.mrb[27].mxu0  ;;  %v1594_v26 = vmul.f32 0.5, %v1589_v16 }
 0xa4d   : > { %2436 = verf.f32 %v1595_v19 }
 0xa57   : > { %v2437_v21 = vpop.eup %2436 }
 0xa58   : > { %v1597_v27 = vadd.f32 1.0, %v2437_v21 }
 0xa5a   : > { %v1598_v28 = vmul.f32 %v1597_v27, %v1594_v26 }
 0xa5c   : > { %v1599_v29 = vpack.c.bf16 %v1598_v28, %v1598_v28 }
 0xa5e   : > { %2258 = vmatmul.mubr.msk.bf16.vlgmr.msra.gmra.mrb[24].mxu1 %vm1636_vm8, %v1599_v29 }
 0xb31   : > { %v1674_v32 = vpop.f32.mrb[24].mxu1 }
 0xb32   : > { %v1675_v33 = vadd.f32 %v1674_v32, %v1611_v31  ;;  %v2259_v34 = vpop.f32.mrb[25].mxu1 }
 0xb33   : > { %v1677_v35 = vpop.f32.mrb[26].mxu1 }
 0xb34   : > { %v2260_v36 = vpop.f32.mrb[27].mxu1  ;;  %v1680_v38 = vadd.f32 %v1675_v33, %v1527_v53 }
 0xb36   : > { %v1681_v39 = vsel %vm750_vm0, %v1680_v38, 0.0 }
 0xb37   : > { %1682 = vadd.xlane.f32.xlu0 %v1681_v39 }
 0xbc4   : > { %v1683_v40 = vpop.xlane.xlu0 %1682 }
 0xbc5   : > { %v1684_v41 = vmul.f32 0.03125, %v1683_v40 }
 0xbc7   : > { %v1685_v42 = vsub.f32 %v1680_v38, %v1684_v41 }
 0xbc9   : > { %v1686_v43 = vmul.f32 %v1685_v42, %v1685_v42 }
 0xbcb   : > { %v1687_v44 = vsel %vm750_vm0, %v1686_v43, 0.0 }
 0xbcc   : > { %1688 = vadd.xlane.f32.xlu1 %v1687_v44 }
 0xc59   : > { %v1689_v47 = vpop.xlane.xlu1 %1688 }
 0xc5a   : > { %v1690_v48 = vmul.f32 0.03125, %v1689_v47 }
 0xc5c   : > { %v1691_v49 = vadd.f32 1e-12, %v1690_v48 }
 0xc5e   : > { %2438 = vrsqrt.f32 %v1691_v49 }
 0xc68   : > { %v2439_v51 = vpop.eup %2438 }
 0xc69   : > { %v1693_v54 = vmul.f32 %v2439_v51, %v1685_v42 }
 0xc6b   : > { %v1698_v55 = vmul.f32 %v1697_v50, %v1693_v54 }
 0xc6d   : > { %v1703_v56 = vadd.f32 %v1702_v52, %v1698_v55 }
 0xc6f   : > { %v1704_v57 = vpack.c.bf16 %v1703_v56, %v1703_v56 }
 0xc71   : > { %2266 = vmatmul.mubr.msk.bf16.vlgmr.msra.gmra.mrb[28].mxu0 %vm750_vm0, %v1704_v57 }
 0xd44   : > { %v1762_v59 = vpop.f32.mrb[28].mxu0 }
 0xd45   : > { %v1763_v61 = vadd.f32 %v1762_v59, %v1712_v58  ;;  %v2267_v62 = vpop.f32.mrb[29].mxu0 }
 0xd46   : > { %v1765_v13 = vpop.f32.mrb[30].mxu0 }
 0xd47   : > { %v2268_v63 = vpop.f32.mrb[31].mxu0  ;;  %v1769_v0 = vadd.f32 %v1768_v60, %v1763_v61 }
 0xd49   : > { %v1771_v1 = vsel %vm1770_vm9, %v1769_v0, 0.0 }
 0xd4a   : > { %1772 = vadd.xlane.f32.xlu0 %v1771_v1 }
 0xdd7   : > { %v1773_v2 = vpop.xlane.xlu0 %1772 }
 0xdd8   : > { %v1775_v3 = vmul.f32 0.020833334, %v1773_v2 }
 0xdda   : > { %v1776_v4 = vsub.f32 %v1769_v0, %v1775_v3 }
 0xddc   : > { %v1777_v23 = vmul.f32 %v1776_v4, %v1776_v4 }
 0xdde   : > { %v1778_v5 = vsel %vm1770_vm9, %v1777_v23, 0.0 }
 0xddf   : > { %1779 = vadd.xlane.f32.xlu1 %v1778_v5 }
 0xde0   : > { %2715 = shalt.err (!%p2712_p13)
}
 0xde1   : > { %s2716_s19 = scalar_lea.hbm %s3506_s17, 256  ;;  %s2720_s18 = scalar_lea.hbm %s3684_s29, 1024 }
 0xde2   : > { %p2717_p5 = scmp.ne.s32.totalorder %s3506_s17, %s2716_s19  ;;  %p2721_p1 = scmp.lt.u32.totalorder %s3506_s17, %s3684_s29 }
 0xde3   : > { %p2722_p7 = scmp.lt.u32.totalorder %s2720_s18, %s2716_s19  ;;  %p2724_p12 = scmp.lt.u32.totalorder %s2716_s19, %s3506_s17 }
 0xde4   : > { %p2718_p3 = pnand %p2717_p5, %p3685_p9 }
 0xde5   : > { %p2723_p10 = por %p2722_p7, %p2721_p1 }
 0xde6   : > { %p2719_p0 = pneg %p2718_p3 }
 0xde7   : > { %p2725_p6 = por %p2724_p12, %p2723_p10 }
 0xde9   : > { %p2726_p8 = pnand %p2725_p6, %p2719_p0 }
 0xdeb   : > { %2729 = shalt.err (!%p2726_p8)
}
 0xdec   : > { %s2844_s6 = smov 64   ;;  %s2845_s16 = smov 4   ;;  %v1788_v53 = vrot.slane %v3493_v10, %v3341_v25  ;;  %v1793_v11 = vrot.slane %v3493_v10, %v3354_v37 }
 0xded   : > { %2298 = dma.vmem_to_hbm [thread:$0]  (%p3685_p9), %s3508_s7, 256, %s3506_s17, %s1802_s13, %s2844_s6, %s2844_s6, %s2845_s16  }
 0xdee   : > { %s2116_s21 = sshll.u32 %s2953_s27, 7  ;;  %s730_s23 = scalar_lea.vmem [#allocation18], %s3267_s9 }
 0xdef   : > { %s1815_s14 = sshll.u32 %s730_s23, 4  ;;  %s3686_s13 = sld [smem:[#allocation45_spill]]  ;;  %s3545_s14 = int_to_ptr.vmem [resolvable:$true] %s1815_s14 }
 0xdf0   : > { %s1797_s5 = scalar_lea.sflag [#allocation5], %s3264_s20  ;;  %s2730_s19 = scalar_lea.vmem %s3545_s14, 128 }
 0xdf1   : > { %p2731_p11 = scmp.ne.s32.totalorder %s3545_s14, %s2730_s19  ;;  %s2846_s27 = smov [#allocation18]  }
 0xdf2   : > { %s2734_s9 = sshll.u32 %s2846_s27, 4  ;;  %s2735_s9 = int_to_ptr.vmem [resolvable:$false] %s2734_s9 }
 0xdf3   : > { %p2732_p4 = pnand %p2731_p11, %p3685_p9  ;;  %s2736_s0 = scalar_lea.vmem %s2735_s9, 256 }
 0xdf4   : > { %p2737_p13 = scmp.lt.s32.totalorder %s3545_s14, %s2735_s9  ;;  %p2738_p5 = scmp.lt.s32.totalorder %s2736_s0, %s2730_s19 }
 0xdf5   : > { %s3543_s28 = scalar_lea.hbm %s3686_s13, %s2116_s21  ;;  %p2733_p2 = pneg %p2732_p4 }
 0xdf6   : > { %p2739_p3 = por %p2738_p5, %p2737_p13 }
 0xdf8   : > { %p2740_p0 = pnand %p2739_p3, %p2733_p2 }
 0xe6c   : > { %v1780_v6 = vpop.xlane.xlu1 %1779 }
 0xe6d   : > { %v1781_v7 = vmul.f32 0.020833334, %v1780_v6 }
 0xe6f   : > { %v1782_v8 = vadd.f32 1e-05, %v1781_v7 }
 0xe71   : > { %2440 = vrsqrt.f32 %v1782_v8 }
 0xe7b   : > { %v2441_v9 = vpop.eup %2440 }
 0xe7c   : > { %v1784_v22 = vmul.f32 %v2441_v9, %v1776_v4 }
 0xe7e   : > { %v1789_v24 = vmul.f32 %v1788_v53, %v1784_v22 }
 0xe80   : > { %v1794_v12 = vadd.f32 %v1793_v11, %v1789_v24 }
 0xe82   : > { %1795 = vst.msk [vmem:[%s730_s23] sm:$0xff] %vm1770_vm9, %v1794_v12 }
 0xe83   : > { %2743 = shalt.err (!%p2740_p0)
}
 0xe84   : > { %s2744_s20 = scalar_lea.hbm %s3543_s28, 128  ;;  %s2748_s15 = scalar_lea.hbm %s3686_s13, 512 }
 0xe85   : > { %p2745_p1 = scmp.ne.s32.totalorder %s3543_s28, %s2744_s20  ;;  %p2749_p12 = scmp.lt.u32.totalorder %s3543_s28, %s3686_s13 }
 0xe86   : > { %p2750_p6 = scmp.lt.u32.totalorder %s2748_s15, %s2744_s20  ;;  %p2752_p11 = scmp.lt.u32.totalorder %s2744_s20, %s3543_s28 }
 0xe87   : > { %p2746_p7 = pnand %p2745_p1, %p3685_p9 }
 0xe88   : > { %p2751_p8 = por %p2750_p6, %p2749_p12 }
 0xe89   : > { %p2747_p10 = pneg %p2746_p7 }
 0xe8a   : > { %p2753_p4 = por %p2752_p11, %p2751_p8 }
 0xe8c   : > { %p2754_p2 = pnand %p2753_p4, %p2747_p10 }
 0xe8e   : > { %2757 = shalt.err (!%p2754_p2)
}
 0xe8f   : > { %2297 = dma.vmem_to_hbm [thread:$0]  (%p3685_p9), %s3545_s14, 128, %s3543_s28, %s1797_s5  }
 0xe90 PF: > { %s3687_s16 = sld [smem:[#allocation29_spill]]  ;;  %s3688_s21 = sld [smem:[#allocation34_spill]] }
 0xe91   : > { %p2348_p13 = scmp.ge.s32.totalorder %s2820_s24, 2 }
 0xe96   : > { %s1843_s23 = sand.u32 1, %s3687_s16   ;;  %p3689_p5 = scmp.ne.s32.totalorder %s3688_s21, 0 }
 0xe97   : > { %s1844_s7 = scalar_lea.sflag [#allocation5], %s1843_s23 }
 0xe98   : > { %p2331_p3 = pnand %p2348_p13, %p3689_p5 }
 0xe9a   : > { %2799 = dma.done.wait (!%p2331_p3), %s1844_s7, 128  }
 0xe9b   : > { %2801 = vsyncadd (!%p2331_p3), %s1844_s7, 4294967168  ;;  %s1853_s17 = scalar_lea.sflag [#allocation20], %s1843_s23 }
 0xe9c   : > { %2803 = dma.done.wait (!%p2331_p3), %s1853_s17, 256  }
 0xe9d   : > { %2805 = vsyncadd (!%p2331_p3), %s1853_s17, 4294967040  ;;  %s3690_s24 = sld [smem:[#allocation31_spill]]  ;;  %s3691_s11 = sld [smem:[#allocation30_spill]] }
 0xe9e   : > { %s3692_s23 = sld [smem:[#allocation32_spill]]  ;;  %s3693_s21 = smov %s2812_s22 }
 0xea3   : > { %p41_p9 = scmp.ge.s32.totalorder %s3690_s24, 6   ;;  %s3694_s22 = smov %s3691_s11 }
 0xea5   :  { %43 = sbr.rel (!%p41_p9) target bundleno = 26 (0x1a), region = 202 }
 0xeac   :  { %1858 = vsyncpa [#allocation4], 1 }
 0xead   :  { %1860 = vsyncpa [#allocation4 + $0x1], 1 }
 0xeae   :  { %1861 = vsyncpa [#allocation7], 1 }
 0xeaf   :  { %1863 = vsyncpa [#allocation7 + $0x1], 1 }
 0xeb0   :  { %1864 = vsyncpa [#allocation10], 1 }
 0xeb1   :  { %1866 = vsyncpa [#allocation10 + $0x1], 1 }
 0xeb2   :  { %1867 = vsyncpa [#allocation13], 1 }
 0xeb3   :  { %1868 = vsyncpa [#allocation16], 1 }
 0xeb4   :  { %1869 = vsyncpa [#allocation5], 1 }
 0xeb5   :  { %1871 = vsyncpa [#allocation5 + $0x1], 1 }
 0xeb6   :  { %1872 = vsyncpa [#allocation20], 1 }
 0xeb7   :  { %1874 = vsyncpa [#allocation20 + $0x1], 1 }

// kernel: tpu_custom_call.1
= control target key start
LH: loop header
LB: loop body
LE: loop exit
PB: predicated region body
PF: predicated region fallthrough
CT: control target
= control target key end

     0   :  { %s3587_s0 = inlined_call_operand.vmem [shape: f32[32,32], index: 0, kind: input, shape index: {}]   ;;  %s3588_s1 = inlined_call_operand.hbm [shape: f32[32,32], index: 1, kind: input, shape index: {}]   ;;  %s3589_s2 = inlined_call_operand.hbm [shape: f32[32,32], index: 2, kind: input, shape index: {}]   ;;  %s3590_s3 = inlined_call_operand.hbm [shape: f32[4,1,8], index: 3, kind: input, shape index: {}]   ;;  %s3591_s4 = inlined_call_operand.hbm [shape: f32[32,48], index: 4, kind: input, shape index: {}]   ;;  %s3592_s5 = inlined_call_operand.vmem [shape: bf16[32,32], index: 5, kind: input, shape index: {}]   ;;  %s3593_s6 = inlined_call_operand.hbm [shape: bf16[32,32], index: 6, kind: input, shape index: {}]   ;;  %s3594_s7 = inlined_call_operand.hbm [shape: bf16[32,32], index: 7, kind: input, shape index: {}]   ;;  %s3595_s8 = inlined_call_operand.hbm [shape: bf16[32,32], index: 8, kind: input, shape index: {}]   ;;  %s3596_s9 = inlined_call_operand.vmem [shape: bf16[32,64], index: 9, kind: input, shape index: {}]   ;;  %s3597_s10 = inlined_call_operand.vmem [shape: bf16[64,32], index: 10, kind: input, shape index: {}]   ;;  %s3598_s11 = inlined_call_operand.hbm [shape: bf16[32,48], index: 11, kind: input, shape index: {}]   ;;  %s3599_s12 = inlined_call_operand.hbm [shape: f32[11,32], index: 12, kind: input, shape index: {}]   ;;  %s3600_s13 = inlined_call_operand.vmem [shape: f32[1,64], index: 13, kind: input, shape index: {}]   ;;  %s3601_s14 = inlined_call_operand.vmem [shape: f32[3,48], index: 14, kind: input, shape index: {}]   ;;  %s3602_s15 = inlined_call_operand.hbm [shape: f32[32,48], index: 15, kind: output, shape index: {0}]   ;;  %s3603_s16 = inlined_call_operand.hbm [shape: bf16[4,4,8,8], index: 16, kind: output, shape index: {1}]  }
   0x1   :  { %3629 = sst [smem:[#allocation35_spill]] %s3587_s0 }
   0x2   :  { %3630 = sst [smem:[#allocation36_spill]] %s3589_s2 }
   0x3   :  { %3631 = sst [smem:[#allocation37_spill]] %s3592_s5 }
   0x4   :  { %3632 = sst [smem:[#allocation38_spill]] %s3593_s6 }
   0x5   :  { %3633 = sst [smem:[#allocation39_spill]] %s3594_s7 }
   0x6   :  { %3634 = sst [smem:[#allocation40_spill]] %s3596_s9 }
   0x7   :  { %3635 = sst [smem:[#allocation41_spill]] %s3597_s10 }
   0x8   :  { %3636 = sst [smem:[#allocation42_spill]] %s3598_s11 }
   0x9   :  { %3637 = sst [smem:[#allocation43_spill]] %s3600_s13 }
   0xa   :  { %3638 = sst [smem:[#allocation44_spill]] %s3601_s14 }
   0xb   :  { %3639 = sst [smem:[#allocation45_spill]] %s3602_s15 }
   0xc   :  { %3640 = sst [smem:[#allocation46_spill]] %s3603_s16 }
   0xd   :  { %22 = vsyncpa [#allocation4], 0 }
   0xe   :  { %24 = vsyncpa [#allocation4 + $0x1], 0 }
   0xf   :  { %25 = vsyncpa [#allocation7], 0 }
  0x10   :  { %27 = vsyncpa [#allocation7 + $0x1], 0 }
  0x11   :  { %28 = vsyncpa [#allocation10], 0 }
  0x12   :  { %30 = vsyncpa [#allocation10 + $0x1], 0 }
  0x13   :  { %31 = vsyncpa [#allocation13], 0 }
  0x14   :  { %32 = vsyncpa [#allocation16], 0 }
  0x15   :  { %33 = vsyncpa [#allocation5], 0 }
  0x16   :  { %35 = vsyncpa [#allocation5 + $0x1], 0 }
  0x17   :  { %36 = vsyncpa [#allocation20], 0 }
  0x18   :  { %38 = vsyncpa [#allocation20 + $0x1], 0  ;;  %s2932_s21 = smov 0   ;;  %s2934_s22 = smov 0  }
  0x19   :  { %s2936_s23 = smov 0   ;;  %s2938_s24 = smov 0  }
  0x1a LB: > { %3641 = sst [smem:[#allocation29_spill]] %s2808_s21  ;;  %s2822_s25 = smov [#allocation11]   ;;  %s2820_s24 = sphi %s2938_s24, %s3690_s24   ;;  %s2816_s23 = sphi %s2936_s23, %s3692_s23   ;;  %s2812_s22 = sphi %s2934_s22, %s3694_s22   ;;  %s2808_s21 = sphi %s2932_s21, %s3693_s21  }
  0x1b   : > { %3642 = sst [smem:[#allocation30_spill]] %s2816_s23  ;;  %s456_s26 = sshll.u32 %s2822_s25, 4  ;;  %s2958_s26 = int_to_ptr.vmem [resolvable:$true] %s456_s26 }
  0x1c   : > { %s2953_s27 = sadd.s32 4294967295, %s2820_s24   ;;  %p2056_p0 = scmp.ge.s32.totalorder %s2820_s24, 1 }
  0x1d   : > { %p3615_p1 = scmp.eq.s32.totalorder %s2953_s27, 0  ;;  %p441_p2 = scmp.lt.s32.totalorder %s2820_s24, 5 }
  0x1e   : > { %s2823_s29 = smov [#allocation12]   ;;  %s2824_s17 = smov [#allocation15]  }
  0x1f   : > { %p2960_p3 = pnand %p2056_p0, %p441_p2  ;;  %s469_s30 = sshll.u32 %s2823_s29, 4  ;;  %s2972_s30 = int_to_ptr.vmem [resolvable:$true] %s469_s30 }
  0x20   : > { %s501_s18 = sshll.u32 %s2824_s17, 4  ;;  %s3645_s6 = sld [smem:[#allocation38_spill]]  ;;  %s2974_s18 = int_to_ptr.vmem [resolvable:$true] %s501_s18 }
  0x21   : > { %s3643_s28 = scalar_select %p2960_p3, 1, 0 }
  0x22   : > { %p2301_p4 = pneg %p2960_p3 }
  0x24   : > { %p2968_p5 = pnand %p2301_p4, %p3615_p1 }
  0x26   : > { %s3644_s0 = scalar_select %p2968_p5, 1, 0 }
  0x27   : > { %s2442_s25 = scalar_lea.hbm %s3645_s6, 256  ;;  %p2984_p7 = pneg %p2968_p5 }
  0x28   : > { %p2443_p6 = scmp.ne.s32.totalorder %s3645_s6, %s2442_s25  ;;  %p2449_p10 = scmp.lt.u32.totalorder %s2442_s25, %s3645_s6 }
  0x29   : > { %s3646_s29 = scalar_select %p2984_p7, 1, 0 }
  0x2a   : > { %p2445_p8 = pnand %p2984_p7, %p2443_p6 }
  0x2c   : > { %p2446_p9 = pneg %p2445_p8 }
  0x2e   : > { %p2451_p11 = pnand %p2449_p10, %p2446_p9 }
  0x30   : > { %2454 = shalt.err (!%p2451_p11)
}
  0x31   : > { %s2455_s15 = scalar_lea.vmem %s2958_s26, 256  ;;  %p2463_p2 = scmp.lt.s32.totalorder %s2958_s26, %s2958_s26 }
  0x32   : > { %p2456_p12 = scmp.ne.s32.totalorder %s2958_s26, %s2455_s15  ;;  %p2464_p4 = scmp.lt.s32.totalorder %s2455_s15, %s2455_s15 }
  0x34   : > { %p2458_p13 = pnand %p2456_p12, %p2984_p7  ;;  %p2465_p6 = por %p2464_p4, %p2463_p2 }
  0x36   : > { %p2459_p0 = pneg %p2458_p13 }
  0x38   : > { %p2466_p8 = pnand %p2465_p6, %p2459_p0 }
  0x3a   : > { %2469 = shalt.err (!%p2466_p8)
}
  0x3b   : > { %s3610_s16 = smov 64   ;;  %s3611_s14 = smov 4  }
  0x3c   : > { %2304 = dma.hbm_to_vmem [thread:$0]  (!%p2968_p5), %s3645_s6, 256, %s2958_s26, [#allocation10], %s3610_s16, %s3610_s16, %s3611_s14  }
  0x3d   : > { %s3647_s7 = sld [smem:[#allocation39_spill]] }
  0x43   : > { %s2470_s15 = scalar_lea.hbm %s3647_s7, 256 }
  0x44   : > { %p2471_p9 = scmp.ne.s32.totalorder %s3647_s7, %s2470_s15  ;;  %p2477_p12 = scmp.lt.u32.totalorder %s2470_s15, %s3647_s7 }
  0x46   : > { %p2473_p10 = pnand %p2471_p9, %p2984_p7 }
  0x48   : > { %p2474_p11 = pneg %p2473_p10 }
  0x4a   : > { %p2479_p13 = pnand %p2477_p12, %p2474_p11 }
  0x4c   : > { %2482 = shalt.err (!%p2479_p13)
}
  0x4d   : > { %s2483_s26 = scalar_lea.vmem %s2972_s30, 256  ;;  %p2491_p6 = scmp.lt.s32.totalorder %s2972_s30, %s2972_s30 }
  0x4e   : > { %p2484_p0 = scmp.ne.s32.totalorder %s2972_s30, %s2483_s26  ;;  %p2492_p8 = scmp.lt.s32.totalorder %s2483_s26, %s2483_s26 }
  0x50   : > { %p2486_p2 = pnand %p2484_p0, %p2984_p7  ;;  %p2493_p9 = por %p2492_p8, %p2491_p6 }
  0x52   : > { %p2487_p4 = pneg %p2486_p2 }
  0x54   : > { %p2494_p10 = pnand %p2493_p9, %p2487_p4 }
  0x56   : > { %2497 = shalt.err (!%p2494_p10)
}
  0x57   : > { %2307 = dma.hbm_to_vmem [thread:$0]  (!%p2968_p5), %s3647_s7, 256, %s2972_s30, [#allocation13], %s3610_s16, %s3610_s16, %s3611_s14  }
  0x58   : > { %s3648_s11 = sld [smem:[#allocation42_spill]] }
  0x5e   : > { %s2498_s19 = scalar_lea.hbm %s3648_s11, 256 }
  0x5f   : > { %p2499_p11 = scmp.ne.s32.totalorder %s3648_s11, %s2498_s19  ;;  %p2505_p0 = scmp.lt.u32.totalorder %s2498_s19, %s3648_s11 }
  0x61   : > { %p2501_p12 = pnand %p2499_p11, %p2984_p7 }
  0x63   : > { %p2502_p13 = pneg %p2501_p12 }
  0x65   : > { %p2507_p2 = pnand %p2505_p0, %p2502_p13 }
  0x67   : > { %2510 = shalt.err (!%p2507_p2)
}
  0x68   : > { %s2511_s30 = scalar_lea.vmem %s2974_s18, 256  ;;  %p2519_p9 = scmp.lt.s32.totalorder %s2974_s18, %s2974_s18 }
  0x69   : > { %p2512_p4 = scmp.ne.s32.totalorder %s2974_s18, %s2511_s30  ;;  %p2520_p10 = scmp.lt.s32.totalorder %s2511_s30, %s2511_s30 }
  0x6b   : > { %p2514_p6 = pnand %p2512_p4, %p2984_p7  ;;  %p2521_p11 = por %p2520_p10, %p2519_p9 }
  0x6d   : > { %p2515_p8 = pneg %p2514_p6 }
  0x6f   : > { %p2522_p12 = pnand %p2521_p11, %p2515_p8 }
  0x71   : > { %2525 = shalt.err (!%p2522_p12)
}
  0x72   : > { %2313 = dma.hbm_to_vmem [thread:$0]  (!%p2968_p5), %s3648_s11, 256, %s2974_s18, [#allocation16], %s3610_s16, %s3610_s16, %s3611_s14  }
  0x73   : > { %s2055_s9 = sadd.s32 4294967294, %s2820_s24   ;;  %s3062_s10 = sadd.s32 1, %s2820_s24  }
  0x74   : > { %3649 = sst [smem:[#allocation31_spill]] %s3062_s10  ;;  %s77_s13 = sadd.s32 1, %s2816_s23 }
  0x75   : > { %s74_s19 = ssub.s32 %s2820_s24, %s3062_s10  ;;  %p84_p13 = scmp.ne.s32.totalorder %s2816_s23, %s2812_s22 }
  0x76   : > { %p75_p0 = scmp.eq.s32.totalorder %s74_s19, 0  ;;  %p85_p2 = scmp.eq.s32.totalorder %s2820_s24, 0 }
  0x77   : > { %p90_p4 = scmp.ne.s32.totalorder %s2812_s22, %s2808_s21  ;;  %p402_p6 = scmp.eq.s32.totalorder %s2953_s27, 3 }
  0x78   : > { %s3074_s20 = scalar_select %p75_p0, %s2816_s23, %s77_s13  }
  0x79   : > { %p86_p8 = por %p85_p2, %p84_p13  ;;  %p3078_p9 = por %p3615_p1, %p90_p4 }
  0x7a   : > { %3650 = sst [smem:[#allocation32_spill]] %s3074_s20  ;;  %p3082_p10 = por %p402_p6, %p84_p13 }
  0x7b   : > { %s3651_s18 = scalar_select %p3078_p9, 1, 0 }
  0x7c   : > { %s3652_s25 = scalar_select %p3082_p10, 1, 0 }
  0x7d   : > { %p408_p11 = scmp.eq.s32.totalorder %s2055_s9, 3  ;;  %p2342_p12 = scmp.lt.s32.totalorder %s2820_s24, 4 }
  0x7e   : > { %3653 = sst [smem:[#allocation33_spill]] %s3652_s25  ;;  %s3088_s17 = sand.u32 1, %s2816_s23  }
  0x7f   : > { %p3090_p3 = por %p408_p11, %p90_p4  ;;  %s3095_s30 = sshll.u32 %s3088_s17, 3 }
  0x80   : > { %s3098_s26 = sshll.u32 %s2820_s24, 7  ;;  %p3100_p0 = pnand %p2342_p12, %p86_p8 }
  0x81   : > { %s3654_s15 = scalar_select %p3090_p3, 1, 0 }
  0x82   : > { %s3656_s5 = scalar_select %p3100_p0, 1, 0 }
  0x83   : > { %3655 = sst [smem:[#allocation34_spill]] %s3654_s15  ;;  %s3617_s9 = sand.u32 1, %s2820_s24  }
  0x84   : > { %s3657_s2 = sld [smem:[#allocation36_spill]]  ;;  %s563_s14 = scalar_lea.vmem [#allocation6], %s3095_s30 }
  0x85   : > { %s570_s6 = sshll.u32 %s563_s14, 4  ;;  %s3116_s7 = scalar_lea.sflag [#allocation7], %s3617_s9  ;;  %s3112_s6 = int_to_ptr.vmem [resolvable:$true] %s570_s6 }
  0x86   : > { %p3122_p2 = pneg %p3100_p0 }
  0x8a   : > { %s3109_s16 = scalar_lea.hbm %s3657_s2, %s3098_s26  ;;  %s2531_s14 = scalar_lea.hbm %s3657_s2, 512 }
  0x8b   : > { %s2526_s11 = scalar_lea.hbm %s3109_s16, 128  ;;  %p2532_p8 = scmp.lt.u32.totalorder %s3109_s16, %s3657_s2 }
  0x8c   : > { %p2527_p13 = scmp.ne.s32.totalorder %s3109_s16, %s2526_s11  ;;  %p2533_p11 = scmp.lt.u32.totalorder %s2531_s14, %s2526_s11 }
  0x8d   : > { %p2535_p1 = scmp.lt.u32.totalorder %s2526_s11, %s3109_s16 }
  0x8e   : > { %p2529_p4 = pnand %p3122_p2, %p2527_p13  ;;  %p2534_p12 = por %p2533_p11, %p2532_p8 }
  0x90   : > { %p2530_p6 = pneg %p2529_p4  ;;  %p2536_p3 = por %p2535_p1, %p2534_p12 }
  0x92   : > { %p2537_p10 = pnand %p2536_p3, %p2530_p6 }
  0x94   : > { %2540 = shalt.err (!%p2537_p10)
}
  0x95   : > { %s2541_s9 = scalar_lea.vmem %s3112_s6, 128  ;;  %s2827_s13 = smov [#allocation6]  }
  0x96   : > { %p2542_p13 = scmp.ne.s32.totalorder %s3112_s6, %s2541_s9  ;;  %s2546_s19 = sshll.u32 %s2827_s13, 4  ;;  %s2547_s19 = int_to_ptr.vmem [resolvable:$false] %s2546_s19 }
  0x97   : > { %s2548_s23 = scalar_lea.vmem %s2547_s19, 256  ;;  %p2549_p5 = scmp.lt.s32.totalorder %s3112_s6, %s2547_s19 }
  0x98   : > { %p2544_p4 = pnand %p2542_p13, %p3122_p2  ;;  %p2550_p7 = scmp.lt.s32.totalorder %s2548_s23, %s2541_s9 }
  0x9a   : > { %p2545_p9 = pneg %p2544_p4  ;;  %p2551_p8 = por %p2550_p7, %p2549_p5 }
  0x9c   : > { %p2552_p11 = pnand %p2551_p8, %p2545_p9 }
  0x9e   : > { %2555 = shalt.err (!%p2552_p11)
}
  0x9f   : > { %2323 = dma.hbm_to_vmem [thread:$0]  (!%p3100_p0), %s3109_s16, 128, %s3112_s6, %s3116_s7  }
  0xa0   : > { %s2828_s11 = smov [#allocation14]   ;;  %s2829_s14 = smov [#allocation17]  }
  0xa1   : > { %s482_s10 = sshll.u32 %s2828_s11, 4  ;;  %s514_s2 = sshll.u32 %s2829_s14, 4  ;;  %s483_s10 = int_to_ptr.vmem [resolvable:$true] %s482_s10  ;;  %s3146_s2 = int_to_ptr.vmem [resolvable:$true] %s514_s2 }
  0xa2   : > { %s2556_s9 = scalar_lea.hbm %s3595_s8, 256  ;;  %p3659_p3 = scmp.ne.s32.totalorder %s3646_s29, 0 }
  0xa3   : > { %p2557_p1 = scmp.ne.s32.totalorder %s3595_s8, %s2556_s9  ;;  %p2563_p9 = scmp.lt.u32.totalorder %s2556_s9, %s3595_s8 }
  0xa5   : > { %p2559_p5 = pnand %p2557_p1, %p3659_p3 }
  0xa7   : > { %p2560_p7 = pneg %p2559_p5 }
  0xa9   : > { %p2565_p10 = pnand %p2563_p9, %p2560_p7 }
  0xab   : > { %2568 = shalt.err (!%p2565_p10)
}
  0xac   : > { %s2569_s16 = scalar_lea.vmem %s483_s10, 256  ;;  %p2577_p4 = scmp.lt.s32.totalorder %s483_s10, %s483_s10 }
  0xad   : > { %p2570_p6 = scmp.ne.s32.totalorder %s483_s10, %s2569_s16  ;;  %p2578_p8 = scmp.lt.s32.totalorder %s2569_s16, %s2569_s16 }
  0xaf   : > { %p2572_p12 = pnand %p2570_p6, %p3659_p3  ;;  %p2579_p11 = por %p2578_p8, %p2577_p4 }
  0xb1   : > { %p2573_p13 = pneg %p2572_p12 }
  0xb3   : > { %p2580_p0 = pnand %p2579_p11, %p2573_p13 }
  0xb5   : > { %2583 = shalt.err (!%p2580_p0)
}
  0xb6   : > { %p3660_p1 = scmp.ne.s32.totalorder %s3644_s0, 0  ;;  %s3661_s15 = smov 4  }
  0xb7   : > { %s3662_s11 = smov 64   ;;  %s2584_s9 = scalar_lea.hbm %s3599_s12, 256 }
  0xb8   : > { %2310 = dma.hbm_to_vmem [thread:$0]  (!%p3660_p1), %s3595_s8, 256, %s483_s10, [#allocation13], %s3662_s11, %s3662_s11, %s3661_s15  }
  0xb9   : > { %p2585_p5 = scmp.ne.s32.totalorder %s3599_s12, %s2584_s9  ;;  %p2591_p9 = scmp.lt.u32.totalorder %s2584_s9, %s3599_s12 }
  0xbb   : > { %p2587_p0 = pnand %p2585_p5, %p3659_p3 }
  0xbd   : > { %p2588_p7 = pneg %p2587_p0 }
  0xbf   : > { %p2593_p10 = pnand %p2591_p9, %p2588_p7 }
  0xc1   : > { %2596 = shalt.err (!%p2593_p10)
}
  0xc2   : > { %s2597_s10 = scalar_lea.vmem %s3146_s2, 256  ;;  %p2605_p4 = scmp.lt.s32.totalorder %s3146_s2, %s3146_s2 }
  0xc3   : > { %p2598_p6 = scmp.ne.s32.totalorder %s3146_s2, %s2597_s10  ;;  %p2606_p8 = scmp.lt.s32.totalorder %s2597_s10, %s2597_s10 }
  0xc5   : > { %p2600_p12 = pnand %p2598_p6, %p3659_p3  ;;  %p2607_p11 = por %p2606_p8, %p2605_p4 }
  0xc7   : > { %p2601_p13 = pneg %p2600_p12 }
  0xc9   : > { %p2608_p5 = pnand %p2607_p11, %p2601_p13 }
  0xcb   : > { %2611 = shalt.err (!%p2608_p5)
}
  0xcc   : > { %s2830_s15 = smov 128   ;;  %s2831_s25 = smov 8  }
  0xcd   : > { %2316 = dma.hbm_to_vmem [thread:$0]  (!%p3660_p1), %s3599_s12, 256, %s3146_s2, [#allocation16], %s2830_s15, %s2830_s15, %s2831_s25  }
  0xce   : > { %s3196_s13 = scalar_lea.hbm %s3588_s1, %s3098_s26  ;;  %s545_s19 = scalar_lea.vmem [#allocation3], %s3095_s30 }
  0xcf   : > { %s552_s9 = sshll.u32 %s545_s19, 4  ;;  %s542_s23 = scalar_lea.sflag [#allocation4], %s3088_s17  ;;  %s553_s9 = int_to_ptr.vmem [resolvable:$true] %s552_s9 }
  0xd0   : > { %s2612_s6 = scalar_lea.hbm %s3196_s13, 128  ;;  %s2617_s16 = scalar_lea.hbm %s3588_s1, 512 }
  0xd1   : > { %p2613_p3 = scmp.ne.s32.totalorder %s3196_s13, %s2612_s6  ;;  %p2618_p1 = scmp.lt.u32.totalorder %s3196_s13, %s3588_s1 }
  0xd2   : > { %p2619_p9 = scmp.lt.u32.totalorder %s2617_s16, %s2612_s6  ;;  %p2621_p6 = scmp.lt.u32.totalorder %s2612_s6, %s3196_s13 }
  0xd3   : > { %p2615_p0 = pnand %p2613_p3, %p3122_p2 }
  0xd4   : > { %p2620_p10 = por %p2619_p9, %p2618_p1 }
  0xd5   : > { %p2616_p7 = pneg %p2615_p0 }
  0xd6   : > { %p2622_p12 = por %p2621_p6, %p2620_p10 }
  0xd8   : > { %p2623_p13 = pnand %p2622_p12, %p2616_p7 }
  0xda   : > { %2626 = shalt.err (!%p2623_p13)
}
  0xdb   : > { %s2627_s25 = scalar_lea.vmem %s553_s9, 128  ;;  %s2832_s11 = smov [#allocation3]  }
  0xdc   : > { %p2628_p4 = scmp.ne.s32.totalorder %s553_s9, %s2627_s25  ;;  %s2632_s21 = sshll.u32 %s2832_s11, 4  ;;  %s2633_s21 = int_to_ptr.vmem [resolvable:$false] %s2632_s21 }
  0xdd   : > { %s2634_s29 = scalar_lea.vmem %s2633_s21, 256  ;;  %p2635_p5 = scmp.lt.s32.totalorder %s553_s9, %s2633_s21 }
  0xde   : > { %p2630_p8 = pnand %p2628_p4, %p3122_p2  ;;  %p2636_p3 = scmp.lt.s32.totalorder %s2634_s29, %s2627_s25 }
  0xe0   : > { %p2631_p11 = pneg %p2630_p8  ;;  %p2637_p0 = por %p2636_p3, %p2635_p5 }
  0xe2   : > { %p2638_p1 = pnand %p2637_p0, %p2631_p11 }
  0xe4   : > { %2641 = shalt.err (!%p2638_p1)
}
  0xe5   : > { %p3663_p9 = scmp.ne.s32.totalorder %s3656_s5, 0  ;;  %s2067_s14 = sshll.u32 %s2820_s24, 4 }
  0xe6   : > { %s580_s19 = scalar_lea.vmem [#allocation8], %s3088_s17  ;;  %s585_s16 = scalar_lea.hbm %s3590_s3, %s2067_s14 }
  0xe7   : > { %2320 = dma.hbm_to_vmem [thread:$0]  (!%p3663_p9), %s3196_s13, 128, %s553_s9, %s542_s23  }
  0xe8   : > { %s587_s6 = sshll.u32 %s580_s19, 4  ;;  %s2642_s10 = scalar_lea.hbm %s585_s16, 16  ;;  %s588_s6 = int_to_ptr.vmem [resolvable:$true] %s587_s6 }
  0xe9   : > { %p2643_p7 = scmp.ne.s32.totalorder %s585_s16, %s2642_s10  ;;  %s2647_s11 = scalar_lea.hbm %s3590_s3, 64 }
  0xea   : > { %p2648_p12 = scmp.lt.u32.totalorder %s585_s16, %s3590_s3  ;;  %p2649_p13 = scmp.lt.u32.totalorder %s2647_s11, %s2642_s10 }
  0xeb   : > { %p2645_p10 = pnand %p2643_p7, %p3122_p2  ;;  %p2651_p8 = scmp.lt.u32.totalorder %s2642_s10, %s585_s16 }
  0xec   : > { %p2650_p4 = por %p2649_p13, %p2648_p12 }
  0xed   : > { %p2646_p6 = pneg %p2645_p10 }
  0xee   : > { %p2652_p11 = por %p2651_p8, %p2650_p4 }
  0xf0   : > { %p2653_p5 = pnand %p2652_p11, %p2646_p6 }
  0xf2   : > { %2656 = shalt.err (!%p2653_p5)
}
  0xf3   : > { %s2657_s17 = scalar_lea.vmem %s588_s6, 16  ;;  %s2833_s13 = smov [#allocation8]  }
  0xf4   : > { %p2658_p3 = scmp.ne.s32.totalorder %s588_s6, %s2657_s17  ;;  %s2662_s9 = sshll.u32 %s2833_s13, 4  ;;  %s2663_s9 = int_to_ptr.vmem [resolvable:$false] %s2662_s9 }
  0xf5   : > { %s2664_s23 = scalar_lea.vmem %s2663_s9, 32  ;;  %p2665_p7 = scmp.lt.s32.totalorder %s588_s6, %s2663_s9 }
  0xf6   : > { %p2660_p0 = pnand %p2658_p3, %p3122_p2  ;;  %p2666_p10 = scmp.lt.s32.totalorder %s2664_s23, %s2657_s17 }
  0xf8   : > { %p2661_p1 = pneg %p2660_p0  ;;  %p2667_p9 = por %p2666_p10, %p2665_p7 }
  0xfa   : > { %p2668_p12 = pnand %p2667_p9, %p2661_p1 }
  0xfc   : > { %2671 = shalt.err (!%p2668_p12)
}
  0xfd   : > { %p3664_p13 = scmp.ne.s32.totalorder %s3656_s5, 0  ;;  %s3239_s0 = scalar_lea.hbm %s3591_s4, %s3098_s26 }
  0xfe   : > { %s598_s2 = scalar_lea.vmem [#allocation9], %s3095_s30  ;;  %s3665_s15 = sand.u32 1, %s2820_s24  }
  0xff   : > { %2326 = dma.hbm_to_vmem [thread:$0]  (!%p3664_p13), %s585_s16, 16, %s588_s6, %s3116_s7  }
 0x100   : > { %s605_s10 = sshll.u32 %s598_s2, 4  ;;  %s595_s25 = scalar_lea.sflag [#allocation10], %s3665_s15  ;;  %s606_s10 = int_to_ptr.vmem [resolvable:$true] %s605_s10 }
 0x101   : > { %s2672_s11 = scalar_lea.hbm %s3239_s0, 128  ;;  %s2677_s16 = scalar_lea.hbm %s3591_s4, 512 }
 0x102   : > { %p2673_p9 = scmp.ne.s32.totalorder %s3239_s0, %s2672_s11  ;;  %p2678_p8 = scmp.lt.u32.totalorder %s3239_s0, %s3591_s4 }
 0x103   : > { %p2679_p11 = scmp.lt.u32.totalorder %s2677_s16, %s2672_s11  ;;  %p2681_p3 = scmp.lt.u32.totalorder %s2672_s11, %s3239_s0 }
 0x104   : > { %p2675_p6 = pnand %p2673_p9, %p3122_p2 }
 0x105   : > { %p2680_p5 = por %p2679_p11, %p2678_p8 }
 0x106   : > { %p2676_p4 = pneg %p2675_p6 }
 0x107   : > { %p2682_p0 = por %p2681_p3, %p2680_p5 }
 0x109   : > { %p2683_p1 = pnand %p2682_p0, %p2676_p4 }
 0x10b   : > { %2686 = shalt.err (!%p2683_p1)
}
 0x10c   : > { %s2687_s30 = scalar_lea.vmem %s606_s10, 128  ;;  %s2834_s29 = smov [#allocation9]  }
 0x10d   : > { %p2688_p7 = scmp.ne.s32.totalorder %s606_s10, %s2687_s30  ;;  %s2692_s17 = sshll.u32 %s2834_s29, 4  ;;  %s2693_s17 = int_to_ptr.vmem [resolvable:$false] %s2692_s17 }
 0x10e   : > { %s2694_s13 = scalar_lea.vmem %s2693_s17, 256  ;;  %p2695_p9 = scmp.lt.s32.totalorder %s606_s10, %s2693_s17 }
 0x10f   : > { %p2690_p10 = pnand %p2688_p7, %p3122_p2  ;;  %p2696_p6 = scmp.lt.s32.totalorder %s2694_s13, %s2687_s30 }
 0x111   : > { %p2691_p12 = pneg %p2690_p10  ;;  %p2697_p13 = por %p2696_p6, %p2695_p9 }
 0x113   : > { %p2698_p8 = pnand %p2697_p13, %p2691_p12 }
 0x115   : > { %2701 = shalt.err (!%p2698_p8)
}
 0x116   : > { %p3666_p11 = scmp.ne.s32.totalorder %s3656_s5, 0  ;;  %p3667_p4 = scmp.ne.s32.totalorder %s3643_s28, 0 }
 0x117   : > { %s3264_s20 = sand.u32 (!%p3667_p4), 1, %s2812_s22   ;;  %p3668_p2 = scmp.ne.s32.totalorder (!%p3667_p4), %s3651_s18, 0 }
 0x118   : > { %2329 = dma.hbm_to_vmem [thread:$0]  (!%p3666_p11), %s3239_s0, 128, %s606_s10, %s595_s25  }
 0x119   : > { %614 = sbr.rel (%p3667_p4) target bundleno = 3728 (0xe90), region = 80  ;;  %s3267_s9 = sshll.u32 (!%p3667_p4), %s3264_s20, 3 }
 0x11a   : > { %s617_s23 = scalar_lea.sflag (!%p3667_p4), [#allocation4], %s3264_s20  ;;  %s620_s14 = scalar_lea.vmem (!%p3667_p4), [#allocation3], %s3267_s9 }
 0x120   : > { %2775 = dma.done.wait (%p3668_p2), %s617_s23, 128  }
 0x121   : > { %2777 = vsyncadd (%p3668_p2), %s617_s23, 4294967168  ;;  %s625_s28 = sand.u32 1, %s2953_s27   ;;  %s629_s19 = scalar_lea.vmem [#allocation6], %s3267_s9 }
 0x122   : > { %s626_s5 = scalar_lea.sflag [#allocation7], %s625_s28 }
 0x123   : > { %2779 = dma.done.wait (%p3668_p2), %s626_s5, 144  }
 0x124   : > { %2781 = vsyncadd (%p3668_p2), %s626_s5, 4294967152  ;;  %s637_s0 = scalar_lea.vmem [#allocation8], %s3264_s20  ;;  %s643_s2 = scalar_lea.sflag [#allocation10], %s625_s28 }
 0x125   : > { %s646_s10 = scalar_lea.vmem [#allocation9], %s3267_s9 }
 0x126   : > { %2783 = dma.done.wait (%p3668_p2), %s643_s2, 128  }
 0x127   : > { %2785 = vsyncadd (%p3668_p2), %s643_s2, 4294967168  ;;  %p3669_p13 = scmp.eq.s32.totalorder %s2953_s27, 0 }
 0x129   : > { %2787 = dma.done.wait (%p3669_p13), [#allocation10], 256   ;;  %p3670_p5 = pmov %p3669_p13 }
 0x12b   : > { %2789 = vsyncadd (%p3670_p5), [#allocation10], 4294967040  ;;  %p3671_p3 = pmov %p3670_p5 }
 0x12d   : > { %2791 = dma.done.wait (%p3671_p3), [#allocation13], 512   ;;  %p3672_p0 = pmov %p3671_p3 }
 0x12f   : > { %2793 = vsyncadd (%p3672_p0), [#allocation13], 4294966784  ;;  %p3673_p1 = pmov %p3672_p0 }
 0x130   : > { %p3674_p7 = pmov %p3672_p0 }
 0x131   : > { %2795 = dma.done.wait (%p3673_p1), [#allocation16], 512  }
 0x132   : > { %2797 = vsyncadd (%p3674_p7), [#allocation16], 4294966784  ;;  %p738_p10 = scmp.lt.s32.totalorder %s2953_s27, 3  ;;  %s3675_s7 = sld [smem:[#allocation35_spill]]  ;;  %v748_v1 = vld [vmem:[%s620_s14] sm:$0xff]  ;;  %vm750_vm0 = vcmask 261120   ;;  %v765_v20 = vlaneseq }
 0x133   : > { %s3676_s21 = sld [smem:[#allocation37_spill]]  ;;  %v2835_v10 = vmov 0.0   ;;  %vm2836_vm1 = vmmov 0   ;;  %v2402_v11 = vld [vmem:[#allocation11] sm:$0xff]   ;;  %v2404_v14 = vld [vmem:[#allocation11 + $0x8] sm:$0xff]   ;;  %v2403_v16 = vld [vmem:[#allocation12] sm:$0xff]  }
 0x134   : > { %s739_s18 = scalar_select %p738_p10, %s2953_s27, 3  ;;  %2161 = vmatprep.subr.bf16.mxu0 %v2835_v10  ;;  %2165 = vmatprep.mubr.msk.bf16.mxu0 %vm2836_vm1, %v2835_v10  ;;  %v3317_v13 = vld [vmem:[%s629_s19] sm:$0xff]  ;;  %v3333_v22 = vshrl.u32 %v765_v20, 7  ;;  %vm976_vm2 = vcmask 64512   ;;  %vm1038_vm3 = vcmask 1043456   ;;  %vm1434_vm4 = vcmask 60416  }
 0x135   : > { %2169 = vmatprep.subr.bf16.mxu1 %v2835_v10  ;;  %2173 = vmatprep.mubr.msk.bf16.mxu1 %vm2836_vm1, %v2835_v10  ;;  %v777_v15 = vpack.c.bf16 %v3317_v13, %v3317_v13  ;;  %v2405_v17 = vld [vmem:[#allocation12 + $0x8] sm:$0xff]   ;;  %v3338_v24 = vld [vmem:[#allocation17] sm:$0xff]  ;;  %s2837_s13 = smov 112   ;;  %s2838_s23 = smov 120   ;;  %vm1200_vm5 = vcmask 130112   ;;  %vm1316_vm6 = vcmask 195712  }
 0x136   : > { %s2081_s15 = sshll.u32 %s739_s18, 3  ;;  %2170 = vmatpush3.bf16.msra.mxu1 %v2402_v11  ;;  %v3336_v23 = vsub.s32 0, %v3333_v22  ;;  %v3341_v25 = vsub.s32 1, %v3333_v22  ;;  %v3354_v37 = vsub.s32 2, %v3333_v22  ;;  %v847_v38 = vsub.s32 3, %v3333_v22  ;;  %s2839_s14 = smov 104  }
 0x137   : > { %2171 = vmatprep.subr.bf16.mxu1 %v2835_v10  ;;  %v910_v39 = vsub.s32 4, %v3333_v22  ;;  %s2080_s28 = sshll.u32 %s3264_s20, 4  ;;  %s2840_s19 = smov 8   ;;  %vm1432_vm7 = vcmask 261312   ;;  %vm1636_vm8 = vcmask 523264   ;;  %vm1770_vm9 = vcmask 392192  }
 0x138   : > { %s741_s6 = scalar_lea.vmem %s3675_s7, %s2081_s15  ;;  %v768_v26 = vrot.slane %v3338_v24, %v3336_v23  ;;  %v773_v29 = vrot.slane %v3338_v24, %v3341_v25  ;;  %v785_v40 = vrot.slane %v3338_v24, %v3354_v37  ;;  %v848_v41 = vrot.slane %v3338_v24, %v847_v38  ;;  %s3409_s5 = scalar_lea.vmem [#allocation19], %s2080_s28 }
 0x139   : > { %v747_v0 = vld [vmem:[%s741_s6] sm:$0xff]  ;;  %s3677_s30 = smov %s3676_s21  ;;  %v911_v42 = vrot.slane %v3338_v24, %v910_v39  ;;  %s2842_s2 = smov 24  }
 0x13a   : > { %v749_v2 = vadd.f32 %v748_v1, %v747_v0  ;;  %v2400_v9 = vld [vmem:[%s3676_s21] sm:$0xff]   ;;  %v2401_v12 = vld [vmem:[%s3677_s30 + $0x8] sm:$0xff]   ;;  %2172 = vmatpush3.bf16.msra.mxu1 %v2404_v14  ;;  %s3678_s25 = sld [smem:[#allocation40_spill]]  ;;  %s3679_s26 = sld [smem:[#allocation41_spill]] }
 0x13b   : > { %2162 = vmatpush3.bf16.msra.mxu0 %v2400_v9  ;;  %2185 = vmatprep.subr.bf16.mxu1 %v2835_v10  ;;  %s3681_s15 = sld [smem:[#allocation44_spill]]  ;;  %s3682_s11 = sld [smem:[#allocation33_spill]] }
 0x13c   : > { %v751_v3 = vsel %vm750_vm0, %v749_v2, 0.0  ;;  %2163 = vmatprep.subr.bf16.mxu0 %v2835_v10  ;;  %s1828_s7 = sshll.u32 %s3409_s5, 4  ;;  %s3683_s21 = sld [smem:[#allocation46_spill]]  ;;  %s3508_s7 = int_to_ptr.vmem [resolvable:$true] %s1828_s7 }
 0x13d   : > { %752 = vadd.xlane.f32.xlu0 %v751_v3 }
 0x13f   : > { %2164 = vmatpush3.bf16.msra.mxu0 %v2401_v12 }
 0x140   : > { %2177 = vmatprep.subr.bf16.mxu0 %v2835_v10 }
 0x141   : > { %p3685_p9 = scmp.ne.s32.totalorder %s3682_s11, 0 }
 0x142   : > { %2166 = vmatmul.mubr.msk.bf16.vlgmr.msra.gmra.mrb[0].mxu0 %vm750_vm0, %v777_v15  ;;  %s3684_s29 = smov %s3683_s21 }
 0x143   : > { %2178 = vmatpush3.bf16.msra.mxu0 %v2403_v16  ;;  %2181 = vmatprep.mubr.msk.bf16.mxu0 %vm2836_vm1, %v2835_v10 }
 0x144   : > { %2179 = vmatprep.subr.bf16.mxu0 %v2835_v10 }
 0x147   : > { %2180 = vmatpush3.bf16.msra.mxu0 %v2405_v17 }
 0x148   : > { %2191 = vmatprep.subr.bf16.mxu0 %v2835_v10 }
 0x1ca   : > { %v753_v4 = vpop.xlane.xlu0 %752 }
 0x1cb   : > { %v755_v5 = vmul.f32 0.03125, %v753_v4  ;;  %v967_v4 = vld [vmem:[%s637_s0] sm:$0x1]  ;;  %s2841_s0 = smov 16  }
 0x1cd   : > { %v756_v6 = vsub.f32 %v749_v2, %v755_v5  ;;  %v968_v5 = vsub.f32 1.0, %v967_v4 }
 0x1cf   : > { %v757_v7 = vmul.f32 %v756_v6, %v756_v6 }
 0x1d1   : > { %v758_v8 = vsel %vm750_vm0, %v757_v7, 0.0 }
 0x1d2   : > { %759 = vadd.xlane.f32.xlu0 %v758_v8 }
 0x215   : > { %v835_v33 = vpop.f32.mrb[0].mxu0 }
 0x216   : > { %v2167_v34 = vpop.f32.mrb[1].mxu0  ;;  %v836_v45 = vadd.f32 %v835_v33, %v785_v40 }
 0x217   : > { %v838_v35 = vpop.f32.mrb[2].mxu0 }
 0x218   : > { %v2168_v36 = vpop.f32.mrb[3].mxu0  ;;  %v964_v56 = vpack.c.bf16 %v836_v45, %v836_v45 }
 0x25f   : > { %v760_v18 = vpop.xlane.xlu0 %759 }
 0x260   : > { %v761_v19 = vmul.f32 0.03125, %v760_v18 }
 0x262   : > { %v762_v21 = vadd.f32 1e-05, %v761_v19 }
 0x264   : > { %2416 = vrsqrt.f32 %v762_v21 }
 0x26e   : > { %v2417_v27 = vpop.eup %2416 }
 0x26f   : > { %v764_v28 = vmul.f32 %v2417_v27, %v756_v6  ;;  %v969_v6 = vmul.f32 -10000.0, %v968_v5 }
 0x271   : > { %v769_v30 = vmul.f32 %v768_v26, %v764_v28  ;;  %v974_v7 = vrot.slane %v969_v6, %v3336_v23 }
 0x273   : > { %v774_v31 = vadd.f32 %v773_v29, %v769_v30 }
 0x275   : > { %v775_v32 = vpack.c.bf16 %v774_v31, %v774_v31 }
 0x277   : > { %2174 = vmatmul.mubr.msk.bf16.vlgmr.msra.gmra.mrb[0].mxu1 %vm750_vm0, %v775_v32  ;;  %2182 = vmatmul.mubr.msk.bf16.vlgmr.msra.gmra.mrb[4].mxu0 %vm750_vm0, %v775_v32 }
 0x278   : > { %2187 = vmatprep.mubr.msk.bf16.mxu1 %vm2836_vm1, %v2835_v10  ;;  %2193 = vmatprep.mubr.msk.bf16.mxu0 %vm2836_vm1, %v2835_v10 }
 0x34a   : > { %v898_v43 = vpop.f32.mrb[0].mxu1  ;;  %v958_v44 = vpop.f32.mrb[4].mxu0 }
 0x34b   : > { %v899_v46 = vadd.f32 %v898_v43, %v848_v41  ;;  %v959_v47 = vadd.f32 %v958_v44, %v911_v42  ;;  %v2175_v48 = vpop.f32.mrb[1].mxu1  ;;  %v2183_v49 = vpop.f32.mrb[5].mxu0 }
 0x34c   : > { %v901_v50 = vpop.f32.mrb[2].mxu1  ;;  %v961_v51 = vpop.f32.mrb[6].mxu0 }
 0x34d   : > { %v965_v52 = vpack.c.bf16 %v899_v46, %v899_v46  ;;  %v3362_v53 = vpack.c.bf16 %v959_v47, %v959_v47  ;;  %v2176_v54 = vpop.f32.mrb[3].mxu1  ;;  %v2184_v55 = vpop.f32.mrb[7].mxu0 }
 0x34f   : > { %1204 = vrot.lane.b32.xlu0 %v965_v52, %s2837_s13  ;;  %1087 = vrot.lane.b32.xlu1 %v965_v52, %s2838_s23  ;;  %v981_v57 = vsel %vm976_vm2, %v965_v52, 0  ;;  %v1040_v58 = vsel %vm1038_vm3, %v3362_v53, 0 }
 0x350   : > { %2186 = vmatpush3.bf16.xpose.msra.mxu1 %v981_v57  ;;  %2192 = vmatpush3.bf16.msra.mxu0 %v1040_v58 }
 0x351   : > { %2197 = vmatprep.subr.bf16.mxu1 %v2835_v10  ;;  %2203 = vmatprep.subr.bf16.mxu0 %v2835_v10 }
 0x353   : > { %1084 = vrot.lane.b32.xlu1 %v964_v56, %s2838_s23 }
 0x357   : > { %1202 = vrot.lane.b32.xlu1 %v964_v56, %s2837_s13  ;;  %2188 = vmatmul.mubr.msk.bf16.vlgmr.msra.gmra.mrb[4].mxu1 %vm976_vm2, %v964_v56 }
 0x358   : > { %2199 = vmatprep.mubr.msk.bf16.mxu1 %vm2836_vm1, %v2835_v10 }
 0x35b   : > { %1320 = vrot.lane.b32.xlu1 %v965_v52, %s2839_s14 }
 0x35f   : > { %1318 = vrot.lane.b32.xlu1 %v964_v56, %s2839_s14 }
 0x3c1   : > { %v1088_v59 = vpop.permute.xlu1 %1087  ;;  %v1205_v62 = vpop.permute.xlu0 %1204 }
 0x3c2   : > { %v1093_v60 = vsel %vm976_vm2, %v1088_v59, 0  ;;  %v1210_v0 = vsel %vm976_vm2, %v1205_v62, 0 }
 0x3c3   : > { %2198 = vmatpush3.bf16.xpose.msra.mxu1 %v1093_v60 }
 0x3c4   : > { %2209 = vmatprep.subr.bf16.mxu1 %v2835_v10 }
 0x3c5   : > { %v1085_v61 = vpop.permute.xlu1 %1084 }
 0x3c9   : > { %v1203_v63 = vpop.permute.xlu1 %1202 }
 0x3ca   : > { %2200 = vmatmul.mubr.msk.bf16.vlgmr.msra.gmra.mrb[8].mxu1 %vm976_vm2, %v1085_v61 }
 0x3cb   : > { %2210 = vmatpush3.bf16.xpose.msra.mxu1 %v1210_v0  ;;  %2211 = vmatprep.mubr.msk.bf16.mxu1 %vm2836_vm1, %v2835_v10 }
 0x3cc   : > { %2221 = vmatprep.subr.bf16.mxu1 %v2835_v10 }
 0x3cd   : > { %v1321_v1 = vpop.permute.xlu1 %1320 }
 0x3ce   : > { %v1326_v2 = vsel %vm976_vm2, %v1321_v1, 0 }
 0x3d1   : > { %v1319_v3 = vpop.permute.xlu1 %1318 }
 0x3d2   : > { %2212 = vmatmul.mubr.msk.bf16.vlgmr.msra.gmra.mrb[12].mxu1 %vm976_vm2, %v1203_v63 }
 0x3d3   : > { %2222 = vmatpush3.bf16.xpose.msra.mxu1 %v1326_v2  ;;  %2223 = vmatprep.mubr.msk.bf16.mxu1 %vm2836_vm1, %v2835_v10 }
 0x3d4   : > { %2233 = vmatprep.subr.bf16.mxu1 %v2835_v10 }
 0x3da   : > { %2224 = vmatmul.mubr.msk.bf16.vlgmr.msra.gmra.mrb[16].mxu1 %vm976_vm2, %v1319_v3 }
 0x3db   : > { %2237 = vmatprep.mubr.msk.bf16.mxu1 %vm2836_vm1, %v2835_v10 }
 0x42a   : > { %v1017_v8 = vpop.f32.mrb[4].mxu1 }
 0x42b   : > { %v1018_v9 = vadd.f32 %v1017_v8, %v974_v7  ;;  %v2189_v11 = vpop.f32.mrb[5].mxu1 }
 0x42c   : > { %v1020_v12 = vpop.f32.mrb[6].mxu1 }
 0x42d   : > { %v2190_v14 = vpop.f32.mrb[7].mxu1  ;;  %v1023_v15 = vsel %vm976_vm2, %v1018_v9, -inf }
 0x42e   : > { %1024 = vmax.xlane.f32.xlu1 %v1023_v15 }
 0x49d   : > { %v1129_v16 = vpop.f32.mrb[8].mxu1 }
 0x49e   : > { %v1130_v17 = vadd.f32 %v1129_v16, %v974_v7  ;;  %v2201_v18 = vpop.f32.mrb[9].mxu1 }
 0x49f   : > { %v1132_v19 = vpop.f32.mrb[10].mxu1 }
 0x4a0   : > { %v2202_v20 = vpop.f32.mrb[11].mxu1  ;;  %v1135_v21 = vsel %vm976_vm2, %v1130_v17, -inf }
 0x4a1   : > { %1136 = vmax.xlane.f32.xlu0 %v1135_v21 }
 0x4a5   : > { %v1246_v26 = vpop.f32.mrb[12].mxu1 }
 0x4a6   : > { %v1247_v27 = vadd.f32 %v1246_v26, %v974_v7  ;;  %v2213_v28 = vpop.f32.mrb[13].mxu1 }
 0x4a7   : > { %v1249_v29 = vpop.f32.mrb[14].mxu1 }
 0x4a8   : > { %v2214_v30 = vpop.f32.mrb[15].mxu1  ;;  %v1252_v31 = vsel %vm976_vm2, %v1247_v27, -inf }
 0x4a9   : > { %1253 = vmax.xlane.f32.xlu1 %v1252_v31 }
 0x4ad   : > { %v1362_v32 = vpop.f32.mrb[16].mxu1 }
 0x4ae   : > { %v1363_v33 = vadd.f32 %v1362_v32, %v974_v7  ;;  %v2225_v34 = vpop.f32.mrb[17].mxu1 }
 0x4af   : > { %v1365_v35 = vpop.f32.mrb[18].mxu1 }
 0x4b0   : > { %v2226_v36 = vpop.f32.mrb[19].mxu1  ;;  %v1368_v38 = vsel %vm976_vm2, %v1363_v33, -inf  ;;  %v2406_v35 = vld [vmem:[#allocation14] sm:$0xff]  }
 0x4b1   : > { %1369 = vmax.xlane.f32.xlu1 %v1368_v38  ;;  %2234 = vmatpush3.bf16.msra.mxu1 %v2406_v35  ;;  %v2407_v36 = vld [vmem:[#allocation14 + $0x8] sm:$0xff]  }
 0x4b2   : > { %2235 = vmatprep.subr.bf16.mxu1 %v2835_v10 }
 0x4b5   : > { %2236 = vmatpush3.bf16.msra.mxu1 %v2407_v36 }
 0x4b6   : > { %2249 = vmatprep.subr.bf16.mxu1 %v2835_v10 }
 0x4bb   : > { %v1025_v39 = vpop.xlane.xlu1 %1024 }
 0x4bc   : > { %v1026_v40 = vsub.f32 %v1018_v9, %v1025_v39 }
 0x4be   : > { %v1027_v41 = vmul.f32 1.442695, %v1026_v40 }
 0x4c0   : > { %2418 = vpow2.f32 %v1027_v41 }
 0x4ca   : > { %v2419_v42 = vpop.eup %2418 }
 0x4cb   : > { %v1029_v43 = vsel %vm976_vm2, %v2419_v42, 0.0 }
 0x4cc   : > { %1030 = vadd.xlane.f32.xlu0 %v1029_v43 }
 0x52e   : > { %v1137_v44 = vpop.xlane.xlu0 %1136 }
 0x52f   : > { %v1138_v45 = vsub.f32 %v1130_v17, %v1137_v44 }
 0x531   : > { %v1139_v46 = vmul.f32 1.442695, %v1138_v45 }
 0x533   : > { %2420 = vpow2.f32 %v1139_v46 }
 0x536   : > { %v1254_v47 = vpop.xlane.xlu1 %1253 }
 0x537   : > { %v1255_v48 = vsub.f32 %v1247_v27, %v1254_v47  ;;  %v1447_v47 = vsub.s32 5, %v3333_v22 }
 0x539   : > { %v1256_v49 = vmul.f32 1.442695, %v1255_v48  ;;  %v1448_v48 = vrot.slane %v3338_v24, %v1447_v47 }
 0x53b   : > { %2422 = vpow2.f32 %v1256_v49 }
 0x53d   : > { %v2421_v50 = vpop.eup %2420 }
 0x53e   : > { %v1141_v51 = vsel %vm976_vm2, %v2421_v50, 0.0  ;;  %v1370_v56 = vpop.xlane.xlu1 %1369 }
 0x53f   : > { %1142 = vadd.xlane.f32.xlu1 %v1141_v51  ;;  %v1371_v57 = vsub.f32 %v1363_v33, %v1370_v56 }
 0x541   : > { %v1372_v58 = vmul.f32 1.442695, %v1371_v57 }
 0x545   : > { %v2423_v52 = vpop.eup %2422 }
 0x546   : > { %v1258_v54 = vsel %vm976_vm2, %v2423_v52, 0.0 }
 0x547   : > { %1259 = vadd.xlane.f32.xlu0 %v1258_v54 }
 0x550   : > { %1264 = vrot.lane.b32.xlu1 %v3362_v53, %s2837_s13  ;;  %s1802_s13 = scalar_lea.sflag [#allocation20], %s3264_s20 }
 0x559   : > { %v1031_v55 = vpop.xlane.xlu0 %1030 }
 0x55a   : > { %2424 = vrcp.f32 %v1031_v55 }
 0x55b   : > { %2426 = vpow2.f32 %v1372_v58 }
 0x55d   : > { %1148 = vrot.lane.b32.xlu0 %v3362_v53, %s2838_s23  ;;  %s2702_s23 = scalar_lea.vmem %s3508_s7, 256 }
 0x55e   : > { %p2703_p12 = scmp.ne.s32.totalorder %s3508_s7, %s2702_s23 }
 0x560   : > { %p2704_p6 = pnand %p2703_p12, %p3685_p9 }
 0x562   : > { %p2705_p8 = pneg %p2704_p6 }
 0x564   : > { %v2425_v59 = vpop.eup %2424 }
 0x565   : > { %v1033_v60 = vmul.f32 %v2425_v59, %v2419_v42  ;;  %v2427_v62 = vpop.eup %2426 }
 0x566   : > { %v1374_v63 = vsel %vm976_vm2, %v2427_v62, 0.0 }
 0x567   : > { %v1034_v61 = vpack.c.bf16 %v1033_v60, %v1033_v60 }
 0x569   : > { %2194 = vmatmul.mubr.msk.bf16.vlgmr.msra.gmra.mrb[8].mxu0 %vm976_vm2, %v1034_v61  ;;  %1435 = vst.msk [vmem:[%s3409_s5] sm:$0xf] %vm1434_vm4, %v1034_v61 }
 0x56a   : > { %2205 = vmatprep.mubr.msk.bf16.mxu0 %vm2836_vm1, %v2835_v10 }
 0x574   : > { %1375 = vadd.xlane.f32.xlu1 %v1374_v63 }
 0x585   : > { %1380 = vrot.lane.b32.xlu1 %v3362_v53, %s2839_s14  ;;  %s2843_s14 = smov [#allocation19]  }
 0x586   : > { %s2706_s28 = sshll.u32 %s2843_s14, 4  ;;  %s2707_s28 = int_to_ptr.vmem [resolvable:$false] %s2706_s28 }
 0x587   : > { %p2709_p11 = scmp.lt.s32.totalorder %s3508_s7, %s2707_s28 }
 0x5cc   : > { %v1143_v0 = vpop.xlane.xlu1 %1142 }
 0x5cd   : > { %2428 = vrcp.f32 %v1143_v0 }
 0x5d0   : > { %v1265_v6 = vpop.permute.xlu1 %1264 }
 0x5d1   : > { %v1270_v8 = vsel %vm1038_vm3, %v1265_v6, 0 }
 0x5d4   : > { %v1260_v1 = vpop.xlane.xlu0 %1259 }
 0x5d5   : > { %2430 = vrcp.f32 %v1260_v1 }
 0x5d7   : > { %v2429_v2 = vpop.eup %2428 }
 0x5d8   : > { %v1145_v3 = vmul.f32 %v2429_v2, %v2421_v50  ;;  %v1149_v4 = vpop.permute.xlu0 %1148  ;;  %v1520_v2 = vsub.s32 6, %v3333_v22 }
 0x5d9   : > { %v1154_v5 = vsel %vm1038_vm3, %v1149_v4, 0 }
 0x5da   : > { %2204 = vmatpush3.bf16.msra.mxu0 %v1154_v5  ;;  %v1146_v7 = vpack.c.bf16 %v1145_v3, %v1145_v3  ;;  %v1525_v3 = vsub.s32 7, %v3333_v22  ;;  %v1521_v4 = vrot.slane %v3338_v24, %v1520_v2  ;;  %v2411_v22 = vld [vmem:[%s3679_s26 + $0x8] sm:$0xff]  }
 0x5db   : > { %2215 = vmatprep.subr.bf16.mxu0 %v2835_v10 }
 0x5dc   : > { %1436 = vst.msk [vmem:[%s3409_s5 + $0x4] sm:$0xf] %vm1434_vm4, %v1146_v7 }
 0x5dd   : > { %2206 = vmatmul.mubr.msk.bf16.vlgmr.msra.gmra.mrb[12].mxu0 %vm976_vm2, %v1146_v7  ;;  %v1526_v7 = vrot.slane %v3338_v24, %v1525_v3  ;;  %v2412_v24 = vld [vmem:[%s3679_s26 + $0x10] sm:$0xff]  }
 0x5de   : > { %2216 = vmatpush3.bf16.msra.mxu0 %v1270_v8  ;;  %2217 = vmatprep.mubr.msk.bf16.mxu0 %vm2836_vm1, %v2835_v10 }
 0x5df   : > { %v2431_v53 = vpop.eup %2430  ;;  %2227 = vmatprep.subr.bf16.mxu0 %v2835_v10 }
 0x5e0   : > { %v1262_v9 = vmul.f32 %v2431_v53, %v2423_v52 }
 0x5e2   : > { %v1263_v11 = vpack.c.bf16 %v1262_v9, %v1262_v9 }
 0x5e4   : > { %1437 = vst.msk [vmem:[%s3409_s5 + $0x8] sm:$0xf] %vm1434_vm4, %v1263_v11 }
 0x5e5   : > { %2218 = vmatmul.mubr.msk.bf16.vlgmr.msra.gmra.mrb[16].mxu0 %vm976_vm2, %v1263_v11  ;;  %v2410_v11 = vld [vmem:[%s3679_s26] sm:$0xff]  }
 0x5e6   : > { %2229 = vmatprep.mubr.msk.bf16.mxu0 %vm2836_vm1, %v2835_v10 }
 0x601   : > { %v1376_v12 = vpop.xlane.xlu1 %1375 }
 0x602   : > { %2432 = vrcp.f32 %v1376_v12  ;;  %v2413_v12 = vld [vmem:[%s3679_s26 + $0x18] sm:$0xff]  }
 0x605   : > { %v1381_v14 = vpop.permute.xlu1 %1380 }
 0x606   : > { %v1386_v15 = vsel %vm1038_vm3, %v1381_v14, 0 }
 0x607   : > { %2228 = vmatpush3.bf16.msra.mxu0 %v1386_v15 }
 0x608   : > { %2241 = vmatprep.subr.bf16.mxu0 %v2835_v10 }
 0x60c   : > { %v2433_v16 = vpop.eup %2432 }
 0x60d   : > { %v1378_v17 = vmul.f32 %v2433_v16, %v2427_v62  ;;  %v2408_v62 = vld [vmem:[%s3678_s25] sm:$0xff]  }
 0x60f   : > { %v1379_v18 = vpack.c.bf16 %v1378_v17, %v1378_v17 }
 0x611   : > { %2230 = vmatmul.mubr.msk.bf16.vlgmr.msra.gmra.mrb[20].mxu0 %vm976_vm2, %v1379_v18  ;;  %1438 = vst.msk [vmem:[%s3409_s5 + $0xc] sm:$0xf] %vm1434_vm4, %v1379_v18  ;;  %s2708_s5 = scalar_lea.vmem %s2707_s28, 512 }
 0x612   : > { %2245 = vmatprep.mubr.msk.bf16.mxu0 %vm2836_vm1, %v2835_v10  ;;  %2242 = vmatpush3.bf16.msra.mxu0 %v2408_v62  ;;  %p2710_p4 = scmp.lt.s32.totalorder %s2708_s5, %s2702_s23 }
 0x613   : > { %2243 = vmatprep.subr.bf16.mxu0 %v2835_v10 }
 0x614   : > { %p2711_p2 = por %p2710_p4, %p2709_p11 }
 0x616   : > { %p2712_p13 = pnand %p2711_p2, %p2705_p8 }
 0x63c   : > { %v1076_v19 = vpop.f32.mrb[8].mxu0 }
 0x63d   : > { %1082 = vst.msk [vmem:[#allocation2] sm:$0xff] %vm976_vm2, %v1076_v19  ;;  %v2195_v20 = vpop.f32.mrb[9].mxu0 }
 0x63e   : > { %v1079_v21 = vpop.f32.mrb[10].mxu0 }
 0x63f   : > { %v2196_v26 = vpop.f32.mrb[11].mxu0 }
 0x6b0   : > { %v1190_v27 = vpop.f32.mrb[12].mxu0 }
 0x6b1   : > { %1197 = vrot.lane.b32.xlu0 %v1190_v27, %s2840_s19  ;;  %v2207_v28 = vpop.f32.mrb[13].mxu0 }
 0x6b2   : > { %v1193_v29 = vpop.f32.mrb[14].mxu0 }
 0x6b3   : > { %v2208_v30 = vpop.f32.mrb[15].mxu0 }
 0x6b4   : > { %v744_v30 = vld [vmem:[#allocation17 + $0x8] sm:$0x7] }
 0x6b8   : > { %v1306_v31 = vpop.f32.mrb[16].mxu0 }
 0x6b9   : > { %1313 = vrot.lane.b32.xlu1 %v1306_v31, %s2841_s0  ;;  %v2219_v32 = vpop.f32.mrb[17].mxu0  ;;  %s3680_s0 = sld [smem:[#allocation43_spill]]  ;;  %v1611_v31 = vrot.slane %v744_v30, %v3336_v23 }
 0x6ba   : > { %v1309_v33 = vpop.f32.mrb[18].mxu0 }
 0x6bb   : > { %v2220_v34 = vpop.f32.mrb[19].mxu0 }
 0x6bf   : > { %v2102_v14 = vld [vmem:[%s3680_s0] ss:$0 sm:$0xff] }
 0x6e4   : > { %v1422_v38 = vpop.f32.mrb[20].mxu0 }
 0x6e5   : > { %1429 = vrot.lane.b32.xlu0 %v1422_v38, %s2842_s2  ;;  %v2231_v39 = vpop.f32.mrb[21].mxu0 }
 0x6e6   : > { %v1425_v40 = vpop.f32.mrb[22].mxu0 }
 0x6e7   : > { %v2232_v41 = vpop.f32.mrb[23].mxu0 }
 0x723   : > { %v1198_v42 = vpop.permute.xlu0 %1197 }
 0x724   : > { %1201 = vst.msk [vmem:[#allocation2] sm:$0xff] %vm1200_vm5, %v1198_v42 }
 0x72b   : > { %v1314_v43 = vpop.permute.xlu1 %1313 }
 0x72c   : > { %1317 = vst.msk [vmem:[#allocation2] sm:$0xff] %vm1316_vm6, %v1314_v43 }
 0x757   : > { %v1430_v44 = vpop.permute.xlu0 %1429 }
 0x758   : > { %1433 = vst.msk [vmem:[#allocation2] sm:$0xff] %vm1432_vm7, %v1430_v44 }
 0x75f   : > { %v1439_v45 = vld [vmem:[#allocation2] sm:$0xff] }
 0x760   : > { %v1440_v46 = vpack.c.bf16 %v1439_v45, %v1439_v45  ;;  %v2414_v45 = vld [vmem:[#allocation15] sm:$0xff]  }
 0x762   : > { %2238 = vmatmul.mubr.msk.bf16.vlgmr.msra.gmra.mrb[20].mxu1 %vm750_vm0, %v1440_v46  ;;  %v2415_v46 = vld [vmem:[#allocation15 + $0x8] sm:$0xff]  }
 0x763   : > { %2257 = vmatprep.mubr.msk.bf16.mxu1 %vm2836_vm1, %v2835_v10  ;;  %2250 = vmatpush3.bf16.msra.mxu1 %v2410_v11 }
 0x764   : > { %2251 = vmatprep.subr.bf16.mxu1 %v2835_v10 }
 0x767   : > { %2252 = vmatpush3.bf16.msra.mxu1 %v2411_v22 }
 0x768   : > { %2253 = vmatprep.subr.bf16.mxu1 %v2835_v10 }
 0x76b   : > { %2254 = vmatpush3.bf16.msra.mxu1 %v2412_v24 }
 0x76c   : > { %2255 = vmatprep.subr.bf16.mxu1 %v2835_v10 }
 0x76f   : > { %2256 = vmatpush3.bf16.msra.mxu1 %v2413_v12 }
 0x835   : > { %v1498_v49 = vpop.f32.mrb[20].mxu1 }
 0x836   : > { %v1499_v50 = vadd.f32 %v1498_v49, %v1448_v48  ;;  %v2239_v51 = vpop.f32.mrb[21].mxu1 }
 0x837   : > { %v1501_v52 = vpop.f32.mrb[22].mxu1 }
 0x838   : > { %v2240_v54 = vpop.f32.mrb[23].mxu1  ;;  %v1504_v55 = vadd.f32 %v1499_v50, %v3317_v13  ;;  %v2409_v13 = vld [vmem:[%s3678_s25 + $0x8] sm:$0xff]   ;;  %v1697_v50 = vrot.slane %v744_v30, %v3341_v25  ;;  %v1702_v52 = vrot.slane %v744_v30, %v3354_v37 }
 0x839   : > { %2244 = vmatpush3.bf16.msra.mxu0 %v2409_v13 }
 0x83a   : > { %v1505_v56 = vsel %vm750_vm0, %v1504_v55, 0.0  ;;  %2261 = vmatprep.subr.bf16.mxu0 %v2835_v10 }
 0x83b   : > { %1506 = vadd.xlane.f32.xlu1 %v1505_v56 }
 0x8c8   : > { %v1507_v57 = vpop.xlane.xlu1 %1506 }
 0x8c9   : > { %v1508_v58 = vmul.f32 0.03125, %v1507_v57 }
 0x8cb   : > { %v1509_v59 = vsub.f32 %v1504_v55, %v1508_v58 }
 0x8cd   : > { %v1510_v60 = vmul.f32 %v1509_v59, %v1509_v59 }
 0x8cf   : > { %v1511_v61 = vsel %vm750_vm0, %v1510_v60, 0.0  ;;  %v1768_v60 = vld [vmem:[%s646_s10] sm:$0xff]  ;;  %s2121_s10 = sshll.u32 %s2953_s27, 8 }
 0x8d0   : > { %1512 = vadd.xlane.f32.xlu0 %v1511_v61  ;;  %s3506_s17 = scalar_lea.hbm %s3683_s21, %s2121_s10 }
 0x95d   : > { %v1513_v63 = vpop.xlane.xlu0 %1512 }
 0x95e   : > { %v1514_v0 = vmul.f32 0.03125, %v1513_v63 }
 0x960   : > { %v1515_v1 = vadd.f32 1e-12, %v1514_v0 }
 0x962   : > { %2434 = vrsqrt.f32 %v1515_v1 }
 0x96c   : > { %v2435_v5 = vpop.eup %2434 }
 0x96d   : > { %v1517_v6 = vmul.f32 %v2435_v5, %v1509_v59 }
 0x96f   : > { %v1522_v8 = vmul.f32 %v1521_v4, %v1517_v6 }
 0x971   : > { %v1527_v53 = vadd.f32 %v1526_v7, %v1522_v8 }
 0x973   : > { %v1528_v9 = vpack.c.bf16 %v1527_v53, %v1527_v53 }
 0x975   : > { %2246 = vmatmul.mubr.msk.bf16.vlgmr.msra.gmra.mrb[24].mxu0 %vm750_vm0, %v1528_v9 }
 0x976   : > { %2265 = vmatprep.mubr.msk.bf16.mxu0 %vm2836_vm1, %v2835_v10  ;;  %2262 = vmatpush3.bf16.msra.mxu0 %v2414_v45 }
 0x977   : > { %2263 = vmatprep.subr.bf16.mxu0 %v2835_v10  ;;  %v3493_v10 = vld [vmem:[%s3681_s15] sm:$0x7] }
 0x978   : > { %v1712_v58 = vrot.slane %v3493_v10, %v3336_v23 }
 0x97a   : > { %2264 = vmatpush3.bf16.msra.mxu0 %v2415_v46 }
 0xa48   : > { %v1588_v15 = vpop.f32.mrb[24].mxu0 }
 0xa49   : > { %v1589_v16 = vadd.f32 %v2102_v14, %v1588_v15  ;;  %v2247_v17 = vpop.f32.mrb[25].mxu0 }
 0xa4a   : > { %v1591_v18 = vpop.f32.mrb[26].mxu0 }
 0xa4b   : > { %v1595_v19 = vmul.f32 0.70710677, %v1589_v16  ;;  %v2248_v20 = vpop.f32.mrb[27].mxu0  ;;  %v1594_v26 = vmul.f32 0.5, %v1589_v16 }
 0xa4d   : > { %2436 = verf.f32 %v1595_v19 }
 0xa57   : > { %v2437_v21 = vpop.eup %2436 }
 0xa58   : > { %v1597_v27 = vadd.f32 1.0, %v2437_v21 }
 0xa5a   : > { %v1598_v28 = vmul.f32 %v1597_v27, %v1594_v26 }
 0xa5c   : > { %v1599_v29 = vpack.c.bf16 %v1598_v28, %v1598_v28 }
 0xa5e   : > { %2258 = vmatmul.mubr.msk.bf16.vlgmr.msra.gmra.mrb[24].mxu1 %vm1636_vm8, %v1599_v29 }
 0xb31   : > { %v1674_v32 = vpop.f32.mrb[24].mxu1 }
 0xb32   : > { %v1675_v33 = vadd.f32 %v1674_v32, %v1611_v31  ;;  %v2259_v34 = vpop.f32.mrb[25].mxu1 }
 0xb33   : > { %v1677_v35 = vpop.f32.mrb[26].mxu1 }
 0xb34   : > { %v2260_v36 = vpop.f32.mrb[27].mxu1  ;;  %v1680_v38 = vadd.f32 %v1675_v33, %v1527_v53 }
 0xb36   : > { %v1681_v39 = vsel %vm750_vm0, %v1680_v38, 0.0 }
 0xb37   : > { %1682 = vadd.xlane.f32.xlu0 %v1681_v39 }
 0xbc4   : > { %v1683_v40 = vpop.xlane.xlu0 %1682 }
 0xbc5   : > { %v1684_v41 = vmul.f32 0.03125, %v1683_v40 }
 0xbc7   : > { %v1685_v42 = vsub.f32 %v1680_v38, %v1684_v41 }
 0xbc9   : > { %v1686_v43 = vmul.f32 %v1685_v42, %v1685_v42 }
 0xbcb   : > { %v1687_v44 = vsel %vm750_vm0, %v1686_v43, 0.0 }
 0xbcc   : > { %1688 = vadd.xlane.f32.xlu1 %v1687_v44 }
 0xc59   : > { %v1689_v47 = vpop.xlane.xlu1 %1688 }
 0xc5a   : > { %v1690_v48 = vmul.f32 0.03125, %v1689_v47 }
 0xc5c   : > { %v1691_v49 = vadd.f32 1e-12, %v1690_v48 }
 0xc5e   : > { %2438 = vrsqrt.f32 %v1691_v49 }
 0xc68   : > { %v2439_v51 = vpop.eup %2438 }
 0xc69   : > { %v1693_v54 = vmul.f32 %v2439_v51, %v1685_v42 }
 0xc6b   : > { %v1698_v55 = vmul.f32 %v1697_v50, %v1693_v54 }
 0xc6d   : > { %v1703_v56 = vadd.f32 %v1702_v52, %v1698_v55 }
 0xc6f   : > { %v1704_v57 = vpack.c.bf16 %v1703_v56, %v1703_v56 }
 0xc71   : > { %2266 = vmatmul.mubr.msk.bf16.vlgmr.msra.gmra.mrb[28].mxu0 %vm750_vm0, %v1704_v57 }
 0xd44   : > { %v1762_v59 = vpop.f32.mrb[28].mxu0 }
 0xd45   : > { %v1763_v61 = vadd.f32 %v1762_v59, %v1712_v58  ;;  %v2267_v62 = vpop.f32.mrb[29].mxu0 }
 0xd46   : > { %v1765_v13 = vpop.f32.mrb[30].mxu0 }
 0xd47   : > { %v2268_v63 = vpop.f32.mrb[31].mxu0  ;;  %v1769_v0 = vadd.f32 %v1768_v60, %v1763_v61 }
 0xd49   : > { %v1771_v1 = vsel %vm1770_vm9, %v1769_v0, 0.0 }
 0xd4a   : > { %1772 = vadd.xlane.f32.xlu0 %v1771_v1 }
 0xdd7   : > { %v1773_v2 = vpop.xlane.xlu0 %1772 }
 0xdd8   : > { %v1775_v3 = vmul.f32 0.020833334, %v1773_v2 }
 0xdda   : > { %v1776_v4 = vsub.f32 %v1769_v0, %v1775_v3 }
 0xddc   : > { %v1777_v23 = vmul.f32 %v1776_v4, %v1776_v4 }
 0xdde   : > { %v1778_v5 = vsel %vm1770_vm9, %v1777_v23, 0.0 }
 0xddf   : > { %1779 = vadd.xlane.f32.xlu1 %v1778_v5 }
 0xde0   : > { %2715 = shalt.err (!%p2712_p13)
}
 0xde1   : > { %s2716_s19 = scalar_lea.hbm %s3506_s17, 256  ;;  %s2720_s18 = scalar_lea.hbm %s3684_s29, 1024 }
 0xde2   : > { %p2717_p5 = scmp.ne.s32.totalorder %s3506_s17, %s2716_s19  ;;  %p2721_p1 = scmp.lt.u32.totalorder %s3506_s17, %s3684_s29 }
 0xde3   : > { %p2722_p7 = scmp.lt.u32.totalorder %s2720_s18, %s2716_s19  ;;  %p2724_p12 = scmp.lt.u32.totalorder %s2716_s19, %s3506_s17 }
 0xde4   : > { %p2718_p3 = pnand %p2717_p5, %p3685_p9 }
 0xde5   : > { %p2723_p10 = por %p2722_p7, %p2721_p1 }
 0xde6   : > { %p2719_p0 = pneg %p2718_p3 }
 0xde7   : > { %p2725_p6 = por %p2724_p12, %p2723_p10 }
 0xde9   : > { %p2726_p8 = pnand %p2725_p6, %p2719_p0 }
 0xdeb   : > { %2729 = shalt.err (!%p2726_p8)
}
 0xdec   : > { %s2844_s6 = smov 64   ;;  %s2845_s16 = smov 4   ;;  %v1788_v53 = vrot.slane %v3493_v10, %v3341_v25  ;;  %v1793_v11 = vrot.slane %v3493_v10, %v3354_v37 }
 0xded   : > { %2298 = dma.vmem_to_hbm [thread:$0]  (%p3685_p9), %s3508_s7, 256, %s3506_s17, %s1802_s13, %s2844_s6, %s2844_s6, %s2845_s16  }
 0xdee   : > { %s2116_s21 = sshll.u32 %s2953_s27, 7  ;;  %s730_s23 = scalar_lea.vmem [#allocation18], %s3267_s9 }
 0xdef   : > { %s1815_s14 = sshll.u32 %s730_s23, 4  ;;  %s3686_s13 = sld [smem:[#allocation45_spill]]  ;;  %s3545_s14 = int_to_ptr.vmem [resolvable:$true] %s1815_s14 }
 0xdf0   : > { %s1797_s5 = scalar_lea.sflag [#allocation5], %s3264_s20  ;;  %s2730_s19 = scalar_lea.vmem %s3545_s14, 128 }
 0xdf1   : > { %p2731_p11 = scmp.ne.s32.totalorder %s3545_s14, %s2730_s19  ;;  %s2846_s27 = smov [#allocation18]  }
 0xdf2   : > { %s2734_s9 = sshll.u32 %s2846_s27, 4  ;;  %s2735_s9 = int_to_ptr.vmem [resolvable:$false] %s2734_s9 }
 0xdf3   : > { %p2732_p4 = pnand %p2731_p11, %p3685_p9  ;;  %s2736_s0 = scalar_lea.vmem %s2735_s9, 256 }
 0xdf4   : > { %p2737_p13 = scmp.lt.s32.totalorder %s3545_s14, %s2735_s9  ;;  %p2738_p5 = scmp.lt.s32.totalorder %s2736_s0, %s2730_s19 }
 0xdf5   : > { %s3543_s28 = scalar_lea.hbm %s3686_s13, %s2116_s21  ;;  %p2733_p2 = pneg %p2732_p4 }
 0xdf6   : > { %p2739_p3 = por %p2738_p5, %p2737_p13 }
 0xdf8   : > { %p2740_p0 = pnand %p2739_p3, %p2733_p2 }
 0xe6c   : > { %v1780_v6 = vpop.xlane.xlu1 %1779 }
 0xe6d   : > { %v1781_v7 = vmul.f32 0.020833334, %v1780_v6 }
 0xe6f   : > { %v1782_v8 = vadd.f32 1e-05, %v1781_v7 }
 0xe71   : > { %2440 = vrsqrt.f32 %v1782_v8 }
 0xe7b   : > { %v2441_v9 = vpop.eup %2440 }
 0xe7c   : > { %v1784_v22 = vmul.f32 %v2441_v9, %v1776_v4 }
 0xe7e   : > { %v1789_v24 = vmul.f32 %v1788_v53, %v1784_v22 }
 0xe80   : > { %v1794_v12 = vadd.f32 %v1793_v11, %v1789_v24 }
 0xe82   : > { %1795 = vst.msk [vmem:[%s730_s23] sm:$0xff] %vm1770_vm9, %v1794_v12 }
 0xe83   : > { %2743 = shalt.err (!%p2740_p0)
}
 0xe84   : > { %s2744_s20 = scalar_lea.hbm %s3543_s28, 128  ;;  %s2748_s15 = scalar_lea.hbm %s3686_s13, 512 }
 0xe85   : > { %p2745_p1 = scmp.ne.s32.totalorder %s3543_s28, %s2744_s20  ;;  %p2749_p12 = scmp.lt.u32.totalorder %s3543_s28, %s3686_s13 }
 0xe86   : > { %p2750_p6 = scmp.lt.u32.totalorder %s2748_s15, %s2744_s20  ;;  %p2752_p11 = scmp.lt.u32.totalorder %s2744_s20, %s3543_s28 }
 0xe87   : > { %p2746_p7 = pnand %p2745_p1, %p3685_p9 }
 0xe88   : > { %p2751_p8 = por %p2750_p6, %p2749_p12 }
 0xe89   : > { %p2747_p10 = pneg %p2746_p7 }
 0xe8a   : > { %p2753_p4 = por %p2752_p11, %p2751_p8 }
 0xe8c   : > { %p2754_p2 = pnand %p2753_p4, %p2747_p10 }
 0xe8e   : > { %2757 = shalt.err (!%p2754_p2)
}
 0xe8f   : > { %2297 = dma.vmem_to_hbm [thread:$0]  (%p3685_p9), %s3545_s14, 128, %s3543_s28, %s1797_s5  }
 0xe90 PF: > { %s3687_s16 = sld [smem:[#allocation29_spill]]  ;;  %s3688_s21 = sld [smem:[#allocation34_spill]] }
 0xe91   : > { %p2348_p13 = scmp.ge.s32.totalorder %s2820_s24, 2 }
 0xe96   : > { %s1843_s23 = sand.u32 1, %s3687_s16   ;;  %p3689_p5 = scmp.ne.s32.totalorder %s3688_s21, 0 }
 0xe97   : > { %s1844_s7 = scalar_lea.sflag [#allocation5], %s1843_s23 }
 0xe98   : > { %p2331_p3 = pnand %p2348_p13, %p3689_p5 }
 0xe9a   : > { %2799 = dma.done.wait (!%p2331_p3), %s1844_s7, 128  }
 0xe9b   : > { %2801 = vsyncadd (!%p2331_p3), %s1844_s7, 4294967168  ;;  %s1853_s17 = scalar_lea.sflag [#allocation20], %s1843_s23 }
 0xe9c   : > { %2803 = dma.done.wait (!%p2331_p3), %s1853_s17, 256  }
 0xe9d   : > { %2805 = vsyncadd (!%p2331_p3), %s1853_s17, 4294967040  ;;  %s3690_s24 = sld [smem:[#allocation31_spill]]  ;;  %s3691_s11 = sld [smem:[#allocation30_spill]] }
 0xe9e   : > { %s3692_s23 = sld [smem:[#allocation32_spill]]  ;;  %s3693_s21 = smov %s2812_s22 }
 0xea3   : > { %p41_p9 = scmp.ge.s32.totalorder %s3690_s24, 6   ;;  %s3694_s22 = smov %s3691_s11 }
 0xea5   :  { %43 = sbr.rel (!%p41_p9) target bundleno = 26 (0x1a), region = 202 }
 0xeac   :  { %1858 = vsyncpa [#allocation4], 1 }
 0xead   :  { %1860 = vsyncpa [#allocation4 + $0x1], 1 }
 0xeae   :  { %1861 = vsyncpa [#allocation7], 1 }
 0xeaf   :  { %1863 = vsyncpa [#allocation7 + $0x1], 1 }
 0xeb0   :  { %1864 = vsyncpa [#allocation10], 1 }
 0xeb1   :  { %1866 = vsyncpa [#allocation10 + $0x1], 1 }
 0xeb2   :  { %1867 = vsyncpa [#allocation13], 1 }
 0xeb3   :  { %1868 = vsyncpa [#allocation16], 1 }
 0xeb4   :  { %1869 = vsyncpa [#allocation5], 1 }
 0xeb5   :  { %1871 = vsyncpa [#allocation5 + $0x1], 1 }
 0xeb6   :  { %1872 = vsyncpa [#allocation20], 1 }
 0xeb7   :  { %1874 = vsyncpa [#allocation20 + $0x1], 1 }

</bundles_post_ra>
